<compile_context>
chip_gen: v7x
topology: tpu7x:2x2x1
jax: 0.10.0
libtpu: 0.0.40
codegen_flags: <defaults>
</compile_context>

<pallas_src>
import functools

import jax
import jax.numpy as jnp
from jax.experimental import pallas as pl
from jax.experimental.pallas import tpu as pltpu

EPS = 1e-5


# ----------------------------- Pallas kernel --------------------------------

def _fused_preact_block_kernel(x_ref, w1_ref, w2_ref,
                               ps_ref, pb_ref, s1_ref, b1_ref, s2_ref, b2_ref,
                               o_ref, scr_ref, *, H, W):
    """One NHWC image per grid step: preact -> conv1 -> bn1 -> relu -> conv2 -> bn2 -> +res."""
    M = H * W
    C3 = scr_ref.shape[1]                         # 3 * Cin

    # Column-position masks, hoisted once and reused by both convs.  Applied as ONE f32
    # multiply per shifted staging copy:
    #   * the dx=-1 copy (stored at row offset W+1) may only pull invalid values from source
    #     column W-1 (row wrap) -> zero source column W-1 (`not_last`)
    #   * the dx=+1 copy (stored at row offset W-1) may only pull invalid values from source
    #     column 0 -> zero source column 0 (`not_first`)
    w_idx = jax.lax.broadcasted_iota(jnp.int32, (M, 1), 0) % W
    not_first = (w_idx >= 1).astype(jnp.float32)
    not_last = (w_idx < W - 1).astype(jnp.float32)

    # Zero the halo rows of the staging scratch once per grid step (cheap; done every step
    # because with "parallel" batch semantics each core owns its own scratch instance).  The
    # per-conv data stores below never touch their own halo rows, so this covers both convs.
    halo = jnp.zeros((W + 1, C3), scr_ref.dtype)
    scr_ref[pl.ds(0, W + 1), :] = halo
    scr_ref[pl.ds(M + W - 1, W + 1), :] = halo

    def conv3x3(act, w_ref):
        """3x3 / pad=1 / stride=1 conv of a row-major (M, Cin) f32 activation.

        The dx = -1 / 0 / +1 copies are staged (bf16) side by side in the row-padded scratch
        at row offsets W+1 / W / W-1; each dy group kh = 0,1,2 is then one sublane-aligned
        (M, 3*Cin) load at row offset kh*W feeding one MXU dot with K = 3*Cin.
        """
        cin = act.shape[1]
        cout = w_ref.shape[2]
        # Staging stores (cast to bf16 here; pre/mid die immediately afterwards).
        scr_ref[pl.ds(W + 1, M), pl.ds(0, cin)] = (act * not_last).astype(scr_ref.dtype)
        scr_ref[pl.ds(W, M), pl.ds(cin, cin)] = act.astype(scr_ref.dtype)
        scr_ref[pl.ds(W - 1, M), pl.ds(2 * cin, cin)] = (act * not_first).astype(scr_ref.dtype)

        acc = jnp.zeros((M, cout), jnp.float32)
        for kh in range(3):                            # dy = kh - 1 -> aligned offsets 0, W, 2W
            taps = scr_ref[pl.ds(kh * W, M), :]        # (M, 3*Cin) bf16
            acc = acc + jnp.dot(taps, w_ref[kh], preferred_element_type=jnp.float32)
        return acc

    # preact: folded BN + ReLU (all elementwise math stays f32; only MXU inputs are bf16).
    pre = jnp.maximum(x_ref[0] * ps_ref[...] + pb_ref[...], 0.0)
    # conv1 -> bn1 -> relu
    mid = jnp.maximum(conv3x3(pre, w1_ref) * s1_ref[...] + b1_ref[...], 0.0)
    # conv2 -> bn2 -> + residual (residual re-read from the input VMEM block at the epilogue)
    out = conv3x3(mid, w2_ref) * s2_ref[...] + b2_ref[...] + x_ref[0]

    o_ref[0] = out.astype(o_ref.dtype)


# ----------------------------- JAX glue -------------------------------------

def _fold_bn(gamma, beta, mean, var):
    scale = gamma / jnp.sqrt(var + EPS)
    bias = beta - mean * scale
    return (scale.reshape(1, -1).astype(jnp.float32),
            bias.reshape(1, -1).astype(jnp.float32))


def _flatten_conv_w(w_oihw):
    # (Cout, Cin, 3, 3) -> (3, 3*Cin, Cout) bf16.  Group g = kernel row kh (dy = kh-1); rows
    # within a group are ordered (kw, cin) to match the [dx=-1 | dx=0 | dx=+1] column layout
    # of the staged activation.
    cout, cin, kh, kw = w_oihw.shape
    w = jnp.transpose(w_oihw, (2, 3, 1, 0))            # (KH, KW, Cin, Cout)
    return w.reshape(kh, kw * cin, cout).astype(jnp.bfloat16)


def _vmem_limit_bytes():
    # Leave ~16 MiB headroom for compiler scratch / double buffers; cap at 112 MiB so
    # v5e/v6e (128 MiB physical) use big resident blocks while v7x (64 MiB/TC) gets ~48 MiB.
    try:
        cap = int(pltpu.get_tpu_info().vmem_capacity_bytes)
        return max(32 * 1024 * 1024, min(cap - 16 * 1024 * 1024, 112 * 1024 * 1024))
    except Exception:
        return 48 * 1024 * 1024


def preact_block_forward_nhwc(x_nhwc, params, *, weight_buffer_count=1):
    """Fused non-first PreActBlock on an NHWC activation (layout-transpose free)."""
    N, H, W, cin = x_nhwc.shape
    planes = params["conv1_w"].shape[0]
    assert planes == cin, "non-first PreActBlock: inplanes == planes, stride == 1"
    M = H * W

    x = x_nhwc.astype(jnp.float32).reshape(N, M, cin)

    pre_s, pre_b = _fold_bn(*params["bn_pre"])
    bn1_s, bn1_b = _fold_bn(*params["bn1"])
    bn2_s, bn2_b = _fold_bn(*params["bn2"])
    w1 = _flatten_conv_w(params["conv1_w"])          # (3, 3*cin, planes)   bf16, VMEM-resident
    w2 = _flatten_conv_w(params["conv2_w"])          # (3, 3*planes, planes) bf16, VMEM-resident

    kernel = functools.partial(_fused_preact_block_kernel, H=H, W=W)

    def const_spec(shape):
        # Constant block index: the array stays VMEM-resident across the whole grid.
        # Single-buffer it (Buffered(1)) when requested — saves ~half the weight VMEM at
        # 512-channel stages on v7x with zero perf cost since the block never changes.
        idx = lambda n: (0,) * len(shape)
        if weight_buffer_count is None:
            return pl.BlockSpec(shape, idx)
        return pl.BlockSpec(shape, idx, pipeline_mode=pl.Buffered(weight_buffer_count))

    def vec_spec(c):
        return pl.BlockSpec((1, c), lambda n: (0, 0))

    out = pl.pallas_call(
        kernel,
        out_shape=jax.ShapeDtypeStruct((N, M, planes), jnp.float32),
        grid=(N,),
        in_specs=[
            pl.BlockSpec((1, M, cin), lambda n: (n, 0, 0)),    # activation / residual
            const_spec((3, 3 * cin, planes)),                  # conv1 weights (resident)
            const_spec((3, 3 * planes, planes)),               # conv2 weights (resident)
            vec_spec(cin), vec_spec(cin),                      # preact scale / bias
            vec_spec(planes), vec_spec(planes),                # bn1 scale / bias
            vec_spec(planes), vec_spec(planes),                # bn2 scale / bias
        ],
        out_specs=pl.BlockSpec((1, M, planes), lambda n: (n, 0, 0)),
        scratch_shapes=[pltpu.VMEM((M + 2 * W, 3 * cin), jnp.bfloat16)],  # row-padded staging
        compiler_params=pltpu.CompilerParams(
            dimension_semantics=("parallel",),                 # batch splits across TCs
            vmem_limit_bytes=_vmem_limit_bytes(),
        ),
    )(x, w1, w2, pre_s, pre_b, bn1_s, bn1_b, bn2_s, bn2_b)

    return out.reshape(N, H, W, planes)


def preact_block_forward(x_nchw, params, *, weight_buffer_count=1):
    # TODO(synk): these NCHW<->NHWC transposes are an extra HBM pass each; keep the model
    #             NHWC end-to-end and call preact_block_forward_nhwc directly to drop them.
    x_nhwc = jnp.transpose(x_nchw, (0, 2, 3, 1))
    y = preact_block_forward_nhwc(x_nhwc, params, weight_buffer_count=weight_buffer_count)
    return jnp.transpose(y, (0, 3, 1, 2))


# ----------------------------- pure-JAX reference ----------------------------

def preact_block_reference(x_nchw, params, conv_dtype=jnp.float32):
    def bn(x, gamma, beta, mean, var):
        g = gamma[None, :, None, None]
        b = beta[None, :, None, None]
        m = mean[None, :, None, None]
        v = var[None, :, None, None]
        return (x - m) / jnp.sqrt(v + EPS) * g + b

    def conv3x3(x, w):
        return jax.lax.conv_general_dilated(
            x.astype(conv_dtype), w.astype(conv_dtype),
            window_strides=(1, 1), padding=((1, 1), (1, 1)),
            dimension_numbers=("NCHW", "OIHW", "NCHW"),
            preferred_element_type=jnp.float32)

    residual = x_nchw
    out = jax.nn.relu(bn(x_nchw, *params["bn_pre"]))
    out = jax.nn.relu(bn(conv3x3(out, params["conv1_w"]), *params["bn1"]))
    out = bn(conv3x3(out, params["conv2_w"]), *params["bn2"])
    return out + residual


# ----------------------------- main ------------------------------------------

if __name__ == "__main__":
    key = jax.random.PRNGKey(0)
    N, Cin, H, W = 2, 4, 16, 16
    planes = 4                      # non-first block: inplanes == planes, stride = 1
    ks = jax.random.split(key, 16)

    def bn_params(k0, k1, k2, k3, c):
        gamma = 1.0 + 0.1 * jax.random.normal(k0, (c,), jnp.float32)
        beta = 0.1 * jax.random.normal(k1, (c,), jnp.float32)
        mean = 0.1 * jax.random.normal(k2, (c,), jnp.float32)
        var = jax.nn.softplus(jax.random.normal(k3, (c,), jnp.float32)) + 0.5
        return (gamma, beta, mean, var)

    x = jax.random.normal(ks[0], (N, Cin, H, W), jnp.float32)
    params = {
        "bn_pre": bn_params(ks[1], ks[2], ks[3], ks[4], Cin),
        "conv1_w": 0.1 * jax.random.normal(ks[5], (planes, Cin, 3, 3), jnp.float32),
        "bn1": bn_params(ks[6], ks[7], ks[8], ks[9], planes),
        "conv2_w": 0.1 * jax.random.normal(ks[10], (planes, planes, 3, 3), jnp.float32),
        "bn2": bn_params(ks[11], ks[12], ks[13], ks[14], planes),
    }

    try:
        y = jax.block_until_ready(jax.jit(preact_block_forward)(x, params))
    except Exception:
        # TODO(synk): this JAX build rejected pl.Buffered(1) single-buffering of the resident
        #             weight blocks; fall back to default double buffering.
        y = jax.block_until_ready(
            jax.jit(functools.partial(preact_block_forward, weight_buffer_count=None))(
                x, params))
    assert y.shape == (N, planes, H, W), y.shape

    # Tight check against a reference quantized at the same points (bf16 conv inputs/weights,
    # f32 accumulation) -- validates the staged-tap conv / halo / masks / fusion exactly.
    y_ref_bf16 = preact_block_reference(x, params, conv_dtype=jnp.bfloat16)
    err_bf16 = float(jnp.max(jnp.abs(y - y_ref_bf16)))
    assert jnp.allclose(y, y_ref_bf16, atol=5e-3, rtol=5e-3), err_bf16

    # Sanity check against the full-f32 reference (looser: bf16 MXU inputs).
    y_ref = preact_block_reference(x, params)
    err_f32 = float(jnp.max(jnp.abs(y - y_ref)))
    assert jnp.allclose(y, y_ref, atol=5e-2, rtol=5e-2), err_f32

    print("KERNEL_OK")
</pallas_src>

<mosaic_0001>
module attributes {stable_mosaic.version = 11 : i64} {
  func.func @_fused_preact_block_kernel(%arg0: i32, %arg1: memref<1x256x4xf32, #tpu.memory_space<vmem>>, %arg2: memref<3x12x4xbf16, #tpu.memory_space<vmem>>, %arg3: memref<3x12x4xbf16, #tpu.memory_space<vmem>>, %arg4: memref<1x4xf32, #tpu.memory_space<vmem>>, %arg5: memref<1x4xf32, #tpu.memory_space<vmem>>, %arg6: memref<1x4xf32, #tpu.memory_space<vmem>>, %arg7: memref<1x4xf32, #tpu.memory_space<vmem>>, %arg8: memref<1x4xf32, #tpu.memory_space<vmem>>, %arg9: memref<1x4xf32, #tpu.memory_space<vmem>>, %arg10: memref<1x256x4xf32, #tpu.memory_space<vmem>>, %arg11: memref<288x12xbf16, #tpu.memory_space<vmem>>) attributes {dimension_semantics = [#tpu.dimension_semantics<parallel>], iteration_bounds = array<i64: 2>, scalar_prefetch = 0 : i64, scratch_operands = 1 : i64, tpu.core_type = #tpu.core_type<tc>, window_params = [{transform_indices = @transform_0, window_bounds = array<i64: 1, 256, 4>}, {pipeline_mode = #tpu.pipeline_mode<synchronous>, transform_indices = @transform_1, window_bounds = array<i64: 3, 12, 4>}, {pipeline_mode = #tpu.pipeline_mode<synchronous>, transform_indices = @transform_2, window_bounds = array<i64: 3, 12, 4>}, {pipeline_mode = #tpu.pipeline_mode<synchronous>, transform_indices = @transform_3, window_bounds = array<i64: 1, 4>}, {pipeline_mode = #tpu.pipeline_mode<synchronous>, transform_indices = @transform_4, window_bounds = array<i64: 1, 4>}, {pipeline_mode = #tpu.pipeline_mode<synchronous>, transform_indices = @transform_5, window_bounds = array<i64: 1, 4>}, {pipeline_mode = #tpu.pipeline_mode<synchronous>, transform_indices = @transform_6, window_bounds = array<i64: 1, 4>}, {pipeline_mode = #tpu.pipeline_mode<synchronous>, transform_indices = @transform_7, window_bounds = array<i64: 1, 4>}, {pipeline_mode = #tpu.pipeline_mode<synchronous>, transform_indices = @transform_8, window_bounds = array<i64: 1, 4>}, {transform_indices = @transform_9, window_bounds = array<i64: 1, 256, 4>}]} {
    %0 = tpu.iota {dimensions = array<i32: 0>} : vector<256x1xi32>
    %c16_i32 = arith.constant 16 : i32
    %c0_i32 = arith.constant 0 : i32
    %1 = arith.cmpi eq, %c16_i32, %c0_i32 : i32
    %c1_i32 = arith.constant 1 : i32
    %2 = arith.select %1, %c1_i32, %c16_i32 : i32
    %3 = vector.broadcast %2 : i32 to vector<256x1xi32>
    %4 = arith.remsi %0, %3 : vector<256x1xi32>
    %c0_i32_0 = arith.constant 0 : i32
    %5 = vector.broadcast %c0_i32_0 : i32 to vector<256x1xi32>
    %6 = arith.cmpi ne, %4, %5 : vector<256x1xi32>
    %c0_i32_1 = arith.constant 0 : i32
    %7 = vector.broadcast %c0_i32_1 : i32 to vector<256x1xi32>
    %8 = arith.cmpi slt, %4, %7 : vector<256x1xi32>
    %c0_i32_2 = arith.constant 0 : i32
    %9 = arith.cmpi slt, %2, %c0_i32_2 : i32
    %10 = vector.broadcast %9 : i1 to vector<256x1xi1>
    %11 = vector.broadcast %10 : vector<256x1xi1> to vector<256x1xi1>
    %12 = arith.xori %8, %11 : vector<256x1xi1>
    %13 = arith.andi %12, %6 : vector<256x1xi1>
    %14 = vector.broadcast %2 : i32 to vector<256x1xi32>
    %15 = arith.addi %4, %14 : vector<256x1xi32>
    %16 = arith.select %13, %15, %4 : vector<256x1xi1>, vector<256x1xi32>
    %c1_i32_3 = arith.constant 1 : i32
    %17 = vector.broadcast %c1_i32_3 : i32 to vector<256x1xi32>
    %18 = arith.cmpi sge, %16, %17 : vector<256x1xi32>
    %19 = arith.extui %18 : vector<256x1xi1> to vector<256x1xi32>
    %20 = arith.sitofp %19 : vector<256x1xi32> to vector<256x1xf32>
    %c15_i32 = arith.constant 15 : i32
    %21 = vector.broadcast %c15_i32 : i32 to vector<256x1xi32>
    %22 = arith.cmpi slt, %16, %21 : vector<256x1xi32>
    %23 = arith.extui %22 : vector<256x1xi1> to vector<256x1xi32>
    %24 = arith.sitofp %23 : vector<256x1xi32> to vector<256x1xf32>
    %cst = arith.constant 0.000000e+00 : bf16
    %25 = vector.broadcast %cst : bf16 to vector<17x12xbf16>
    %c0 = arith.constant 0 : index
    %c0_4 = arith.constant 0 : index
    %26 = vector.load %arg11[%c0, %c0_4] : memref<288x12xbf16, #tpu.memory_space<vmem>>, vector<17x12xbf16>
    tpu.vector_store %arg11[%c0, %c0_4], %25 {strides = array<i32>} : memref<288x12xbf16, #tpu.memory_space<vmem>>, vector<17x12xbf16>,
    %c271 = arith.constant 271 : index
    %c0_5 = arith.constant 0 : index
    %27 = vector.load %arg11[%c271, %c0_5] : memref<288x12xbf16, #tpu.memory_space<vmem>>, vector<17x12xbf16>
    tpu.vector_store %arg11[%c271, %c0_5], %25 {strides = array<i32>} : memref<288x12xbf16, #tpu.memory_space<vmem>>, vector<17x12xbf16>,
    %c0_6 = arith.constant 0 : index
    %c0_7 = arith.constant 0 : index
    %c0_8 = arith.constant 0 : index
    %28 = vector.load %arg1[%c0_6, %c0_7, %c0_8] : memref<1x256x4xf32, #tpu.memory_space<vmem>>, vector<1x256x4xf32>
    %29 = vector.shape_cast %28 : vector<1x256x4xf32> to vector<256x4xf32>
    %c0_9 = arith.constant 0 : index
    %c0_10 = arith.constant 0 : index
    %30 = vector.load %arg4[%c0_9, %c0_10] : memref<1x4xf32, #tpu.memory_space<vmem>>, vector<1x4xf32>
    %31 = vector.broadcast %30 : vector<1x4xf32> to vector<256x4xf32>
    %32 = arith.mulf %29, %31 : vector<256x4xf32>
    %c0_11 = arith.constant 0 : index
    %c0_12 = arith.constant 0 : index
    %33 = vector.load %arg5[%c0_11, %c0_12] : memref<1x4xf32, #tpu.memory_space<vmem>>, vector<1x4xf32>
    %34 = vector.broadcast %33 : vector<1x4xf32> to vector<256x4xf32>
    %35 = arith.addf %32, %34 : vector<256x4xf32>
    %cst_13 = arith.constant 0.000000e+00 : f32
    %36 = vector.broadcast %cst_13 : f32 to vector<256x4xf32>
    %37 = arith.maximumf %35, %36 : vector<256x4xf32>
    %38 = vector.broadcast %24 : vector<256x1xf32> to vector<256x4xf32>
    %39 = arith.mulf %37, %38 : vector<256x4xf32>
    %40 = arith.truncf %39 : vector<256x4xf32> to vector<256x4xbf16>
    %c17 = arith.constant 17 : index
    %c0_14 = arith.constant 0 : index
    %41 = vector.load %arg11[%c17, %c0_14] : memref<288x12xbf16, #tpu.memory_space<vmem>>, vector<256x4xbf16>
    tpu.vector_store %arg11[%c17, %c0_14], %40 {strides = array<i32>} : memref<288x12xbf16, #tpu.memory_space<vmem>>, vector<256x4xbf16>,
    %42 = arith.truncf %37 : vector<256x4xf32> to vector<256x4xbf16>
    %c16 = arith.constant 16 : index
    %c4 = arith.constant 4 : index
    %43 = vector.load %arg11[%c16, %c4] : memref<288x12xbf16, #tpu.memory_space<vmem>>, vector<256x4xbf16>
    tpu.vector_store %arg11[%c16, %c4], %42 {strides = array<i32>} : memref<288x12xbf16, #tpu.memory_space<vmem>>, vector<256x4xbf16>,
    %44 = vector.broadcast %20 : vector<256x1xf32> to vector<256x4xf32>
    %45 = arith.mulf %37, %44 : vector<256x4xf32>
    %46 = arith.truncf %45 : vector<256x4xf32> to vector<256x4xbf16>
    %c15 = arith.constant 15 : index
    %c8 = arith.constant 8 : index
    %47 = vector.load %arg11[%c15, %c8] : memref<288x12xbf16, #tpu.memory_space<vmem>>, vector<256x4xbf16>
    tpu.vector_store %arg11[%c15, %c8], %46 {strides = array<i32>} : memref<288x12xbf16, #tpu.memory_space<vmem>>, vector<256x4xbf16>,
    %cst_15 = arith.constant 0.000000e+00 : f32
    %48 = vector.broadcast %cst_15 : f32 to vector<256x4xf32>
    %c0_16 = arith.constant 0 : index
    %c0_17 = arith.constant 0 : index
    %49 = vector.load %arg11[%c0_16, %c0_17] : memref<288x12xbf16, #tpu.memory_space<vmem>>, vector<256x12xbf16>
    %c0_18 = arith.constant 0 : index
    %c0_19 = arith.constant 0 : index
    %c0_20 = arith.constant 0 : index
    %50 = vector.load %arg2[%c0_18, %c0_19, %c0_20] : memref<3x12x4xbf16, #tpu.memory_space<vmem>>, vector<1x12x4xbf16>
    %51 = vector.shape_cast %50 : vector<1x12x4xbf16> to vector<12x4xbf16>
    %cst_21 = arith.constant dense<0.000000e+00> : vector<256x4xf32>
    %52 = tpu.matmul %49, %51, %cst_21 {dimension_numbers = #tpu.dot_dimension_numbers<[1], [0], [0], [1], [0, 0, 1, 1], [], []>} : vector<256x12xbf16>, vector<12x4xbf16>, vector<256x4xf32> -> vector<256x4xf32>
    %53 = arith.addf %48, %52 : vector<256x4xf32>
    %c16_22 = arith.constant 16 : index
    %c0_23 = arith.constant 0 : index
    %54 = vector.load %arg11[%c16_22, %c0_23] : memref<288x12xbf16, #tpu.memory_space<vmem>>, vector<256x12xbf16>
    %c1 = arith.constant 1 : index
    %c0_24 = arith.constant 0 : index
    %c0_25 = arith.constant 0 : index
    %55 = vector.load %arg2[%c1, %c0_24, %c0_25] : memref<3x12x4xbf16, #tpu.memory_space<vmem>>, vector<1x12x4xbf16>
    %56 = vector.shape_cast %55 : vector<1x12x4xbf16> to vector<12x4xbf16>
    %cst_26 = arith.constant dense<0.000000e+00> : vector<256x4xf32>
    %57 = tpu.matmul %54, %56, %cst_26 {dimension_numbers = #tpu.dot_dimension_numbers<[1], [0], [0], [1], [0, 0, 1, 1], [], []>} : vector<256x12xbf16>, vector<12x4xbf16>, vector<256x4xf32> -> vector<256x4xf32>
    %58 = arith.addf %53, %57 : vector<256x4xf32>
    %c32 = arith.constant 32 : index
    %c0_27 = arith.constant 0 : index
    %59 = vector.load %arg11[%c32, %c0_27] : memref<288x12xbf16, #tpu.memory_space<vmem>>, vector<256x12xbf16>
    %c2 = arith.constant 2 : index
    %c0_28 = arith.constant 0 : index
    %c0_29 = arith.constant 0 : index
    %60 = vector.load %arg2[%c2, %c0_28, %c0_29] : memref<3x12x4xbf16, #tpu.memory_space<vmem>>, vector<1x12x4xbf16>
    %61 = vector.shape_cast %60 : vector<1x12x4xbf16> to vector<12x4xbf16>
    %cst_30 = arith.constant dense<0.000000e+00> : vector<256x4xf32>
    %62 = tpu.matmul %59, %61, %cst_30 {dimension_numbers = #tpu.dot_dimension_numbers<[1], [0], [0], [1], [0, 0, 1, 1], [], []>} : vector<256x12xbf16>, vector<12x4xbf16>, vector<256x4xf32> -> vector<256x4xf32>
    %63 = arith.addf %58, %62 : vector<256x4xf32>
    %c0_31 = arith.constant 0 : index
    %c0_32 = arith.constant 0 : index
    %64 = vector.load %arg6[%c0_31, %c0_32] : memref<1x4xf32, #tpu.memory_space<vmem>>, vector<1x4xf32>
    %65 = vector.broadcast %64 : vector<1x4xf32> to vector<256x4xf32>
    %66 = arith.mulf %63, %65 : vector<256x4xf32>
    %c0_33 = arith.constant 0 : index
    %c0_34 = arith.constant 0 : index
    %67 = vector.load %arg7[%c0_33, %c0_34] : memref<1x4xf32, #tpu.memory_space<vmem>>, vector<1x4xf32>
    %68 = vector.broadcast %67 : vector<1x4xf32> to vector<256x4xf32>
    %69 = arith.addf %66, %68 : vector<256x4xf32>
    %cst_35 = arith.constant 0.000000e+00 : f32
    %70 = vector.broadcast %cst_35 : f32 to vector<256x4xf32>
    %71 = arith.maximumf %69, %70 : vector<256x4xf32>
    %72 = vector.broadcast %24 : vector<256x1xf32> to vector<256x4xf32>
    %73 = arith.mulf %71, %72 : vector<256x4xf32>
    %74 = arith.truncf %73 : vector<256x4xf32> to vector<256x4xbf16>
    %c17_36 = arith.constant 17 : index
    %c0_37 = arith.constant 0 : index
    %75 = vector.load %arg11[%c17_36, %c0_37] : memref<288x12xbf16, #tpu.memory_space<vmem>>, vector<256x4xbf16>
    tpu.vector_store %arg11[%c17_36, %c0_37], %74 {strides = array<i32>} : memref<288x12xbf16, #tpu.memory_space<vmem>>, vector<256x4xbf16>,
    %76 = arith.truncf %71 : vector<256x4xf32> to vector<256x4xbf16>
    %c16_38 = arith.constant 16 : index
    %c4_39 = arith.constant 4 : index
    %77 = vector.load %arg11[%c16_38, %c4_39] : memref<288x12xbf16, #tpu.memory_space<vmem>>, vector<256x4xbf16>
    tpu.vector_store %arg11[%c16_38, %c4_39], %76 {strides = array<i32>} : memref<288x12xbf16, #tpu.memory_space<vmem>>, vector<256x4xbf16>,
    %78 = vector.broadcast %20 : vector<256x1xf32> to vector<256x4xf32>
    %79 = arith.mulf %71, %78 : vector<256x4xf32>
    %80 = arith.truncf %79 : vector<256x4xf32> to vector<256x4xbf16>
    %c15_40 = arith.constant 15 : index
    %c8_41 = arith.constant 8 : index
    %81 = vector.load %arg11[%c15_40, %c8_41] : memref<288x12xbf16, #tpu.memory_space<vmem>>, vector<256x4xbf16>
    tpu.vector_store %arg11[%c15_40, %c8_41], %80 {strides = array<i32>} : memref<288x12xbf16, #tpu.memory_space<vmem>>, vector<256x4xbf16>,
    %cst_42 = arith.constant 0.000000e+00 : f32
    %82 = vector.broadcast %cst_42 : f32 to vector<256x4xf32>
    %c0_43 = arith.constant 0 : index
    %c0_44 = arith.constant 0 : index
    %83 = vector.load %arg11[%c0_43, %c0_44] : memref<288x12xbf16, #tpu.memory_space<vmem>>, vector<256x12xbf16>
    %c0_45 = arith.constant 0 : index
    %c0_46 = arith.constant 0 : index
    %c0_47 = arith.constant 0 : index
    %84 = vector.load %arg3[%c0_45, %c0_46, %c0_47] : memref<3x12x4xbf16, #tpu.memory_space<vmem>>, vector<1x12x4xbf16>
    %85 = vector.shape_cast %84 : vector<1x12x4xbf16> to vector<12x4xbf16>
    %cst_48 = arith.constant dense<0.000000e+00> : vector<256x4xf32>
    %86 = tpu.matmul %83, %85, %cst_48 {dimension_numbers = #tpu.dot_dimension_numbers<[1], [0], [0], [1], [0, 0, 1, 1], [], []>} : vector<256x12xbf16>, vector<12x4xbf16>, vector<256x4xf32> -> vector<256x4xf32>
    %87 = arith.addf %82, %86 : vector<256x4xf32>
    %c16_49 = arith.constant 16 : index
    %c0_50 = arith.constant 0 : index
    %88 = vector.load %arg11[%c16_49, %c0_50] : memref<288x12xbf16, #tpu.memory_space<vmem>>, vector<256x12xbf16>
    %c1_51 = arith.constant 1 : index
    %c0_52 = arith.constant 0 : index
    %c0_53 = arith.constant 0 : index
    %89 = vector.load %arg3[%c1_51, %c0_52, %c0_53] : memref<3x12x4xbf16, #tpu.memory_space<vmem>>, vector<1x12x4xbf16>
    %90 = vector.shape_cast %89 : vector<1x12x4xbf16> to vector<12x4xbf16>
    %cst_54 = arith.constant dense<0.000000e+00> : vector<256x4xf32>
    %91 = tpu.matmul %88, %90, %cst_54 {dimension_numbers = #tpu.dot_dimension_numbers<[1], [0], [0], [1], [0, 0, 1, 1], [], []>} : vector<256x12xbf16>, vector<12x4xbf16>, vector<256x4xf32> -> vector<256x4xf32>
    %92 = arith.addf %87, %91 : vector<256x4xf32>
    %c32_55 = arith.constant 32 : index
    %c0_56 = arith.constant 0 : index
    %93 = vector.load %arg11[%c32_55, %c0_56] : memref<288x12xbf16, #tpu.memory_space<vmem>>, vector<256x12xbf16>
    %c2_57 = arith.constant 2 : index
    %c0_58 = arith.constant 0 : index
    %c0_59 = arith.constant 0 : index
    %94 = vector.load %arg3[%c2_57, %c0_58, %c0_59] : memref<3x12x4xbf16, #tpu.memory_space<vmem>>, vector<1x12x4xbf16>
    %95 = vector.shape_cast %94 : vector<1x12x4xbf16> to vector<12x4xbf16>
    %cst_60 = arith.constant dense<0.000000e+00> : vector<256x4xf32>
    %96 = tpu.matmul %93, %95, %cst_60 {dimension_numbers = #tpu.dot_dimension_numbers<[1], [0], [0], [1], [0, 0, 1, 1], [], []>} : vector<256x12xbf16>, vector<12x4xbf16>, vector<256x4xf32> -> vector<256x4xf32>
    %97 = arith.addf %92, %96 : vector<256x4xf32>
    %c0_61 = arith.constant 0 : index
    %c0_62 = arith.constant 0 : index
    %98 = vector.load %arg8[%c0_61, %c0_62] : memref<1x4xf32, #tpu.memory_space<vmem>>, vector<1x4xf32>
    %99 = vector.broadcast %98 : vector<1x4xf32> to vector<256x4xf32>
    %100 = arith.mulf %97, %99 : vector<256x4xf32>
    %c0_63 = arith.constant 0 : index
    %c0_64 = arith.constant 0 : index
    %101 = vector.load %arg9[%c0_63, %c0_64] : memref<1x4xf32, #tpu.memory_space<vmem>>, vector<1x4xf32>
    %102 = vector.broadcast %101 : vector<1x4xf32> to vector<256x4xf32>
    %103 = arith.addf %100, %102 : vector<256x4xf32>
    %c0_65 = arith.constant 0 : index
    %c0_66 = arith.constant 0 : index
    %c0_67 = arith.constant 0 : index
    %104 = vector.load %arg1[%c0_65, %c0_66, %c0_67] : memref<1x256x4xf32, #tpu.memory_space<vmem>>, vector<1x256x4xf32>
    %105 = vector.shape_cast %104 : vector<1x256x4xf32> to vector<256x4xf32>
    %106 = arith.addf %103, %105 : vector<256x4xf32>
    %c0_68 = arith.constant 0 : index
    %c0_69 = arith.constant 0 : index
    %c0_70 = arith.constant 0 : index
    %107 = vector.load %arg10[%c0_68, %c0_69, %c0_70] : memref<1x256x4xf32, #tpu.memory_space<vmem>>, vector<1x256x4xf32>
    %108 = vector.shape_cast %107 : vector<1x256x4xf32> to vector<256x4xf32>
    %109 = vector.shape_cast %106 : vector<256x4xf32> to vector<1x256x4xf32>
    tpu.vector_store %arg10[%c0_68, %c0_69, %c0_70], %109 {strides = array<i32>} : memref<1x256x4xf32, #tpu.memory_space<vmem>>, vector<1x256x4xf32>,
    return
  }
  func.func @transform_0(%arg0: i32) -> (i32, i32, i32) {
    %c0_i32 = arith.constant 0 : i32
    %c0_i32_0 = arith.constant 0 : i32
    %c0_i32_1 = arith.constant 0 : i32
    return %arg0, %c0_i32, %c0_i32_0 : i32, i32, i32
  }
  func.func @transform_1(%arg0: i32) -> (i32, i32, i32) {
    %c0_i32 = arith.constant 0 : i32
    %c0_i32_0 = arith.constant 0 : i32
    %c0_i32_1 = arith.constant 0 : i32
    %c0_i32_2 = arith.constant 0 : i32
    return %c0_i32, %c0_i32_0, %c0_i32_1 : i32, i32, i32
  }
  func.func @transform_2(%arg0: i32) -> (i32, i32, i32) {
    %c0_i32 = arith.constant 0 : i32
    %c0_i32_0 = arith.constant 0 : i32
    %c0_i32_1 = arith.constant 0 : i32
    %c0_i32_2 = arith.constant 0 : i32
    return %c0_i32, %c0_i32_0, %c0_i32_1 : i32, i32, i32
  }
  func.func @transform_3(%arg0: i32) -> (i32, i32) {
    %c0_i32 = arith.constant 0 : i32
    %c0_i32_0 = arith.constant 0 : i32
    %c0_i32_1 = arith.constant 0 : i32
    return %c0_i32, %c0_i32_0 : i32, i32
  }
  func.func @transform_4(%arg0: i32) -> (i32, i32) {
    %c0_i32 = arith.constant 0 : i32
    %c0_i32_0 = arith.constant 0 : i32
    %c0_i32_1 = arith.constant 0 : i32
    return %c0_i32, %c0_i32_0 : i32, i32
  }
  func.func @transform_5(%arg0: i32) -> (i32, i32) {
    %c0_i32 = arith.constant 0 : i32
    %c0_i32_0 = arith.constant 0 : i32
    %c0_i32_1 = arith.constant 0 : i32
    return %c0_i32, %c0_i32_0 : i32, i32
  }
  func.func @transform_6(%arg0: i32) -> (i32, i32) {
    %c0_i32 = arith.constant 0 : i32
    %c0_i32_0 = arith.constant 0 : i32
    %c0_i32_1 = arith.constant 0 : i32
    return %c0_i32, %c0_i32_0 : i32, i32
  }
  func.func @transform_7(%arg0: i32) -> (i32, i32) {
    %c0_i32 = arith.constant 0 : i32
    %c0_i32_0 = arith.constant 0 : i32
    %c0_i32_1 = arith.constant 0 : i32
    return %c0_i32, %c0_i32_0 : i32, i32
  }
  func.func @transform_8(%arg0: i32) -> (i32, i32) {
    %c0_i32 = arith.constant 0 : i32
    %c0_i32_0 = arith.constant 0 : i32
    %c0_i32_1 = arith.constant 0 : i32
    return %c0_i32, %c0_i32_0 : i32, i32
  }
  func.func @transform_9(%arg0: i32) -> (i32, i32, i32) {
    %c0_i32 = arith.constant 0 : i32
    %c0_i32_0 = arith.constant 0 : i32
    %c0_i32_1 = arith.constant 0 : i32
    return %arg0, %c0_i32, %c0_i32_0 : i32, i32, i32
  }
}

module attributes {stable_mosaic.version = 11 : i64} {
  func.func @_fused_preact_block_kernel(%arg0: i32, %arg1: memref<1x256x4xf32, #tpu.memory_space<vmem>>, %arg2: memref<3x12x4xbf16, #tpu.memory_space<vmem>>, %arg3: memref<3x12x4xbf16, #tpu.memory_space<vmem>>, %arg4: memref<1x4xf32, #tpu.memory_space<vmem>>, %arg5: memref<1x4xf32, #tpu.memory_space<vmem>>, %arg6: memref<1x4xf32, #tpu.memory_space<vmem>>, %arg7: memref<1x4xf32, #tpu.memory_space<vmem>>, %arg8: memref<1x4xf32, #tpu.memory_space<vmem>>, %arg9: memref<1x4xf32, #tpu.memory_space<vmem>>, %arg10: memref<1x256x4xf32, #tpu.memory_space<vmem>>, %arg11: memref<288x12xbf16, #tpu.memory_space<vmem>>) attributes {dimension_semantics = [#tpu.dimension_semantics<parallel>], iteration_bounds = array<i64: 2>, scalar_prefetch = 0 : i64, scratch_operands = 1 : i64, tpu.core_type = #tpu.core_type<tc>, window_params = [{transform_indices = @transform_0, window_bounds = array<i64: 1, 256, 4>}, {pipeline_mode = #tpu.pipeline_mode<synchronous>, transform_indices = @transform_1, window_bounds = array<i64: 3, 12, 4>}, {pipeline_mode = #tpu.pipeline_mode<synchronous>, transform_indices = @transform_2, window_bounds = array<i64: 3, 12, 4>}, {pipeline_mode = #tpu.pipeline_mode<synchronous>, transform_indices = @transform_3, window_bounds = array<i64: 1, 4>}, {pipeline_mode = #tpu.pipeline_mode<synchronous>, transform_indices = @transform_4, window_bounds = array<i64: 1, 4>}, {pipeline_mode = #tpu.pipeline_mode<synchronous>, transform_indices = @transform_5, window_bounds = array<i64: 1, 4>}, {pipeline_mode = #tpu.pipeline_mode<synchronous>, transform_indices = @transform_6, window_bounds = array<i64: 1, 4>}, {pipeline_mode = #tpu.pipeline_mode<synchronous>, transform_indices = @transform_7, window_bounds = array<i64: 1, 4>}, {pipeline_mode = #tpu.pipeline_mode<synchronous>, transform_indices = @transform_8, window_bounds = array<i64: 1, 4>}, {transform_indices = @transform_9, window_bounds = array<i64: 1, 256, 4>}]} {
    %0 = tpu.iota {dimensions = array<i32: 0>} : vector<256x1xi32>
    %c16_i32 = arith.constant 16 : i32
    %c0_i32 = arith.constant 0 : i32
    %1 = arith.cmpi eq, %c16_i32, %c0_i32 : i32
    %c1_i32 = arith.constant 1 : i32
    %2 = arith.select %1, %c1_i32, %c16_i32 : i32
    %3 = vector.broadcast %2 : i32 to vector<256x1xi32>
    %4 = arith.remsi %0, %3 : vector<256x1xi32>
    %c0_i32_0 = arith.constant 0 : i32
    %5 = vector.broadcast %c0_i32_0 : i32 to vector<256x1xi32>
    %6 = arith.cmpi ne, %4, %5 : vector<256x1xi32>
    %c0_i32_1 = arith.constant 0 : i32
    %7 = vector.broadcast %c0_i32_1 : i32 to vector<256x1xi32>
    %8 = arith.cmpi slt, %4, %7 : vector<256x1xi32>
    %c0_i32_2 = arith.constant 0 : i32
    %9 = arith.cmpi slt, %2, %c0_i32_2 : i32
    %10 = vector.broadcast %9 : i1 to vector<256x1xi1>
    %11 = vector.broadcast %10 : vector<256x1xi1> to vector<256x1xi1>
    %12 = arith.xori %8, %11 : vector<256x1xi1>
    %13 = arith.andi %12, %6 : vector<256x1xi1>
    %14 = vector.broadcast %2 : i32 to vector<256x1xi32>
    %15 = arith.addi %4, %14 : vector<256x1xi32>
    %16 = arith.select %13, %15, %4 : vector<256x1xi1>, vector<256x1xi32>
    %c1_i32_3 = arith.constant 1 : i32
    %17 = vector.broadcast %c1_i32_3 : i32 to vector<256x1xi32>
    %18 = arith.cmpi sge, %16, %17 : vector<256x1xi32>
    %19 = arith.extui %18 : vector<256x1xi1> to vector<256x1xi32>
    %20 = arith.sitofp %19 : vector<256x1xi32> to vector<256x1xf32>
    %c15_i32 = arith.constant 15 : i32
    %21 = vector.broadcast %c15_i32 : i32 to vector<256x1xi32>
    %22 = arith.cmpi slt, %16, %21 : vector<256x1xi32>
    %23 = arith.extui %22 : vector<256x1xi1> to vector<256x1xi32>
    %24 = arith.sitofp %23 : vector<256x1xi32> to vector<256x1xf32>
    %cst = arith.constant 0.000000e+00 : bf16
    %25 = vector.broadcast %cst : bf16 to vector<17x12xbf16>
    %c0 = arith.constant 0 : index
    %c0_4 = arith.constant 0 : index
    %26 = vector.load %arg11[%c0, %c0_4] : memref<288x12xbf16, #tpu.memory_space<vmem>>, vector<17x12xbf16>
    tpu.vector_store %arg11[%c0, %c0_4], %25 {strides = array<i32>} : memref<288x12xbf16, #tpu.memory_space<vmem>>, vector<17x12xbf16>,
    %c271 = arith.constant 271 : index
    %c0_5 = arith.constant 0 : index
    %27 = vector.load %arg11[%c271, %c0_5] : memref<288x12xbf16, #tpu.memory_space<vmem>>, vector<17x12xbf16>
    tpu.vector_store %arg11[%c271, %c0_5], %25 {strides = array<i32>} : memref<288x12xbf16, #tpu.memory_space<vmem>>, vector<17x12xbf16>,
    %c0_6 = arith.constant 0 : index
    %c0_7 = arith.constant 0 : index
    %c0_8 = arith.constant 0 : index
    %28 = vector.load %arg1[%c0_6, %c0_7, %c0_8] : memref<1x256x4xf32, #tpu.memory_space<vmem>>, vector<1x256x4xf32>
    %29 = vector.shape_cast %28 : vector<1x256x4xf32> to vector<256x4xf32>
    %c0_9 = arith.constant 0 : index
    %c0_10 = arith.constant 0 : index
    %30 = vector.load %arg4[%c0_9, %c0_10] : memref<1x4xf32, #tpu.memory_space<vmem>>, vector<1x4xf32>
    %31 = vector.broadcast %30 : vector<1x4xf32> to vector<256x4xf32>
    %32 = arith.mulf %29, %31 : vector<256x4xf32>
    %c0_11 = arith.constant 0 : index
    %c0_12 = arith.constant 0 : index
    %33 = vector.load %arg5[%c0_11, %c0_12] : memref<1x4xf32, #tpu.memory_space<vmem>>, vector<1x4xf32>
    %34 = vector.broadcast %33 : vector<1x4xf32> to vector<256x4xf32>
    %35 = arith.addf %32, %34 : vector<256x4xf32>
    %cst_13 = arith.constant 0.000000e+00 : f32
    %36 = vector.broadcast %cst_13 : f32 to vector<256x4xf32>
    %37 = arith.maximumf %35, %36 : vector<256x4xf32>
    %38 = vector.broadcast %24 : vector<256x1xf32> to vector<256x4xf32>
    %39 = arith.mulf %37, %38 : vector<256x4xf32>
    %40 = arith.truncf %39 : vector<256x4xf32> to vector<256x4xbf16>
    %c17 = arith.constant 17 : index
    %c0_14 = arith.constant 0 : index
    %41 = vector.load %arg11[%c17, %c0_14] : memref<288x12xbf16, #tpu.memory_space<vmem>>, vector<256x4xbf16>
    tpu.vector_store %arg11[%c17, %c0_14], %40 {strides = array<i32>} : memref<288x12xbf16, #tpu.memory_space<vmem>>, vector<256x4xbf16>,
    %42 = arith.truncf %37 : vector<256x4xf32> to vector<256x4xbf16>
    %c16 = arith.constant 16 : index
    %c4 = arith.constant 4 : index
    %43 = vector.load %arg11[%c16, %c4] : memref<288x12xbf16, #tpu.memory_space<vmem>>, vector<256x4xbf16>
    tpu.vector_store %arg11[%c16, %c4], %42 {strides = array<i32>} : memref<288x12xbf16, #tpu.memory_space<vmem>>, vector<256x4xbf16>,
    %44 = vector.broadcast %20 : vector<256x1xf32> to vector<256x4xf32>
    %45 = arith.mulf %37, %44 : vector<256x4xf32>
    %46 = arith.truncf %45 : vector<256x4xf32> to vector<256x4xbf16>
    %c15 = arith.constant 15 : index
    %c8 = arith.constant 8 : index
    %47 = vector.load %arg11[%c15, %c8] : memref<288x12xbf16, #tpu.memory_space<vmem>>, vector<256x4xbf16>
    tpu.vector_store %arg11[%c15, %c8], %46 {strides = array<i32>} : memref<288x12xbf16, #tpu.memory_space<vmem>>, vector<256x4xbf16>,
    %cst_15 = arith.constant 0.000000e+00 : f32
    %48 = vector.broadcast %cst_15 : f32 to vector<256x4xf32>
    %c0_16 = arith.constant 0 : index
    %c0_17 = arith.constant 0 : index
    %49 = vector.load %arg11[%c0_16, %c0_17] : memref<288x12xbf16, #tpu.memory_space<vmem>>, vector<256x12xbf16>
    %c0_18 = arith.constant 0 : index
    %c0_19 = arith.constant 0 : index
    %c0_20 = arith.constant 0 : index
    %50 = vector.load %arg2[%c0_18, %c0_19, %c0_20] : memref<3x12x4xbf16, #tpu.memory_space<vmem>>, vector<1x12x4xbf16>
    %51 = vector.shape_cast %50 : vector<1x12x4xbf16> to vector<12x4xbf16>
    %cst_21 = arith.constant dense<0.000000e+00> : vector<256x4xf32>
    %52 = tpu.matmul %49, %51, %cst_21 {dimension_numbers = #tpu.dot_dimension_numbers<[1], [0], [0], [1], [0, 0, 1, 1], [], []>} : vector<256x12xbf16>, vector<12x4xbf16>, vector<256x4xf32> -> vector<256x4xf32>
    %53 = arith.addf %48, %52 : vector<256x4xf32>
    %c16_22 = arith.constant 16 : index
    %c0_23 = arith.constant 0 : index
    %54 = vector.load %arg11[%c16_22, %c0_23] : memref<288x12xbf16, #tpu.memory_space<vmem>>, vector<256x12xbf16>
    %c1 = arith.constant 1 : index
    %c0_24 = arith.constant 0 : index
    %c0_25 = arith.constant 0 : index
    %55 = vector.load %arg2[%c1, %c0_24, %c0_25] : memref<3x12x4xbf16, #tpu.memory_space<vmem>>, vector<1x12x4xbf16>
    %56 = vector.shape_cast %55 : vector<1x12x4xbf16> to vector<12x4xbf16>
    %cst_26 = arith.constant dense<0.000000e+00> : vector<256x4xf32>
    %57 = tpu.matmul %54, %56, %cst_26 {dimension_numbers = #tpu.dot_dimension_numbers<[1], [0], [0], [1], [0, 0, 1, 1], [], []>} : vector<256x12xbf16>, vector<12x4xbf16>, vector<256x4xf32> -> vector<256x4xf32>
    %58 = arith.addf %53, %57 : vector<256x4xf32>
    %c32 = arith.constant 32 : index
    %c0_27 = arith.constant 0 : index
    %59 = vector.load %arg11[%c32, %c0_27] : memref<288x12xbf16, #tpu.memory_space<vmem>>, vector<256x12xbf16>
    %c2 = arith.constant 2 : index
    %c0_28 = arith.constant 0 : index
    %c0_29 = arith.constant 0 : index
    %60 = vector.load %arg2[%c2, %c0_28, %c0_29] : memref<3x12x4xbf16, #tpu.memory_space<vmem>>, vector<1x12x4xbf16>
    %61 = vector.shape_cast %60 : vector<1x12x4xbf16> to vector<12x4xbf16>
    %cst_30 = arith.constant dense<0.000000e+00> : vector<256x4xf32>
    %62 = tpu.matmul %59, %61, %cst_30 {dimension_numbers = #tpu.dot_dimension_numbers<[1], [0], [0], [1], [0, 0, 1, 1], [], []>} : vector<256x12xbf16>, vector<12x4xbf16>, vector<256x4xf32> -> vector<256x4xf32>
    %63 = arith.addf %58, %62 : vector<256x4xf32>
    %c0_31 = arith.constant 0 : index
    %c0_32 = arith.constant 0 : index
    %64 = vector.load %arg6[%c0_31, %c0_32] : memref<1x4xf32, #tpu.memory_space<vmem>>, vector<1x4xf32>
    %65 = vector.broadcast %64 : vector<1x4xf32> to vector<256x4xf32>
    %66 = arith.mulf %63, %65 : vector<256x4xf32>
    %c0_33 = arith.constant 0 : index
    %c0_34 = arith.constant 0 : index
    %67 = vector.load %arg7[%c0_33, %c0_34] : memref<1x4xf32, #tpu.memory_space<vmem>>, vector<1x4xf32>
    %68 = vector.broadcast %67 : vector<1x4xf32> to vector<256x4xf32>
    %69 = arith.addf %66, %68 : vector<256x4xf32>
    %cst_35 = arith.constant 0.000000e+00 : f32
    %70 = vector.broadcast %cst_35 : f32 to vector<256x4xf32>
    %71 = arith.maximumf %69, %70 : vector<256x4xf32>
    %72 = vector.broadcast %24 : vector<256x1xf32> to vector<256x4xf32>
    %73 = arith.mulf %71, %72 : vector<256x4xf32>
    %74 = arith.truncf %73 : vector<256x4xf32> to vector<256x4xbf16>
    %c17_36 = arith.constant 17 : index
    %c0_37 = arith.constant 0 : index
    %75 = vector.load %arg11[%c17_36, %c0_37] : memref<288x12xbf16, #tpu.memory_space<vmem>>, vector<256x4xbf16>
    tpu.vector_store %arg11[%c17_36, %c0_37], %74 {strides = array<i32>} : memref<288x12xbf16, #tpu.memory_space<vmem>>, vector<256x4xbf16>,
    %76 = arith.truncf %71 : vector<256x4xf32> to vector<256x4xbf16>
    %c16_38 = arith.constant 16 : index
    %c4_39 = arith.constant 4 : index
    %77 = vector.load %arg11[%c16_38, %c4_39] : memref<288x12xbf16, #tpu.memory_space<vmem>>, vector<256x4xbf16>
    tpu.vector_store %arg11[%c16_38, %c4_39], %76 {strides = array<i32>} : memref<288x12xbf16, #tpu.memory_space<vmem>>, vector<256x4xbf16>,
    %78 = vector.broadcast %20 : vector<256x1xf32> to vector<256x4xf32>
    %79 = arith.mulf %71, %78 : vector<256x4xf32>
    %80 = arith.truncf %79 : vector<256x4xf32> to vector<256x4xbf16>
    %c15_40 = arith.constant 15 : index
    %c8_41 = arith.constant 8 : index
    %81 = vector.load %arg11[%c15_40, %c8_41] : memref<288x12xbf16, #tpu.memory_space<vmem>>, vector<256x4xbf16>
    tpu.vector_store %arg11[%c15_40, %c8_41], %80 {strides = array<i32>} : memref<288x12xbf16, #tpu.memory_space<vmem>>, vector<256x4xbf16>,
    %cst_42 = arith.constant 0.000000e+00 : f32
    %82 = vector.broadcast %cst_42 : f32 to vector<256x4xf32>
    %c0_43 = arith.constant 0 : index
    %c0_44 = arith.constant 0 : index
    %83 = vector.load %arg11[%c0_43, %c0_44] : memref<288x12xbf16, #tpu.memory_space<vmem>>, vector<256x12xbf16>
    %c0_45 = arith.constant 0 : index
    %c0_46 = arith.constant 0 : index
    %c0_47 = arith.constant 0 : index
    %84 = vector.load %arg3[%c0_45, %c0_46, %c0_47] : memref<3x12x4xbf16, #tpu.memory_space<vmem>>, vector<1x12x4xbf16>
    %85 = vector.shape_cast %84 : vector<1x12x4xbf16> to vector<12x4xbf16>
    %cst_48 = arith.constant dense<0.000000e+00> : vector<256x4xf32>
    %86 = tpu.matmul %83, %85, %cst_48 {dimension_numbers = #tpu.dot_dimension_numbers<[1], [0], [0], [1], [0, 0, 1, 1], [], []>} : vector<256x12xbf16>, vector<12x4xbf16>, vector<256x4xf32> -> vector<256x4xf32>
    %87 = arith.addf %82, %86 : vector<256x4xf32>
    %c16_49 = arith.constant 16 : index
    %c0_50 = arith.constant 0 : index
    %88 = vector.load %arg11[%c16_49, %c0_50] : memref<288x12xbf16, #tpu.memory_space<vmem>>, vector<256x12xbf16>
    %c1_51 = arith.constant 1 : index
    %c0_52 = arith.constant 0 : index
    %c0_53 = arith.constant 0 : index
    %89 = vector.load %arg3[%c1_51, %c0_52, %c0_53] : memref<3x12x4xbf16, #tpu.memory_space<vmem>>, vector<1x12x4xbf16>
    %90 = vector.shape_cast %89 : vector<1x12x4xbf16> to vector<12x4xbf16>
    %cst_54 = arith.constant dense<0.000000e+00> : vector<256x4xf32>
    %91 = tpu.matmul %88, %90, %cst_54 {dimension_numbers = #tpu.dot_dimension_numbers<[1], [0], [0], [1], [0, 0, 1, 1], [], []>} : vector<256x12xbf16>, vector<12x4xbf16>, vector<256x4xf32> -> vector<256x4xf32>
    %92 = arith.addf %87, %91 : vector<256x4xf32>
    %c32_55 = arith.constant 32 : index
    %c0_56 = arith.constant 0 : index
    %93 = vector.load %arg11[%c32_55, %c0_56] : memref<288x12xbf16, #tpu.memory_space<vmem>>, vector<256x12xbf16>
    %c2_57 = arith.constant 2 : index
    %c0_58 = arith.constant 0 : index
    %c0_59 = arith.constant 0 : index
    %94 = vector.load %arg3[%c2_57, %c0_58, %c0_59] : memref<3x12x4xbf16, #tpu.memory_space<vmem>>, vector<1x12x4xbf16>
    %95 = vector.shape_cast %94 : vector<1x12x4xbf16> to vector<12x4xbf16>
    %cst_60 = arith.constant dense<0.000000e+00> : vector<256x4xf32>
    %96 = tpu.matmul %93, %95, %cst_60 {dimension_numbers = #tpu.dot_dimension_numbers<[1], [0], [0], [1], [0, 0, 1, 1], [], []>} : vector<256x12xbf16>, vector<12x4xbf16>, vector<256x4xf32> -> vector<256x4xf32>
    %97 = arith.addf %92, %96 : vector<256x4xf32>
    %c0_61 = arith.constant 0 : index
    %c0_62 = arith.constant 0 : index
    %98 = vector.load %arg8[%c0_61, %c0_62] : memref<1x4xf32, #tpu.memory_space<vmem>>, vector<1x4xf32>
    %99 = vector.broadcast %98 : vector<1x4xf32> to vector<256x4xf32>
    %100 = arith.mulf %97, %99 : vector<256x4xf32>
    %c0_63 = arith.constant 0 : index
    %c0_64 = arith.constant 0 : index
    %101 = vector.load %arg9[%c0_63, %c0_64] : memref<1x4xf32, #tpu.memory_space<vmem>>, vector<1x4xf32>
    %102 = vector.broadcast %101 : vector<1x4xf32> to vector<256x4xf32>
    %103 = arith.addf %100, %102 : vector<256x4xf32>
    %c0_65 = arith.constant 0 : index
    %c0_66 = arith.constant 0 : index
    %c0_67 = arith.constant 0 : index
    %104 = vector.load %arg1[%c0_65, %c0_66, %c0_67] : memref<1x256x4xf32, #tpu.memory_space<vmem>>, vector<1x256x4xf32>
    %105 = vector.shape_cast %104 : vector<1x256x4xf32> to vector<256x4xf32>
    %106 = arith.addf %103, %105 : vector<256x4xf32>
    %c0_68 = arith.constant 0 : index
    %c0_69 = arith.constant 0 : index
    %c0_70 = arith.constant 0 : index
    %107 = vector.load %arg10[%c0_68, %c0_69, %c0_70] : memref<1x256x4xf32, #tpu.memory_space<vmem>>, vector<1x256x4xf32>
    %108 = vector.shape_cast %107 : vector<1x256x4xf32> to vector<256x4xf32>
    %109 = vector.shape_cast %106 : vector<256x4xf32> to vector<1x256x4xf32>
    tpu.vector_store %arg10[%c0_68, %c0_69, %c0_70], %109 {strides = array<i32>} : memref<1x256x4xf32, #tpu.memory_space<vmem>>, vector<1x256x4xf32>,
    return
  }
  func.func @transform_0(%arg0: i32) -> (i32, i32, i32) {
    %c0_i32 = arith.constant 0 : i32
    %c0_i32_0 = arith.constant 0 : i32
    %c0_i32_1 = arith.constant 0 : i32
    return %arg0, %c0_i32, %c0_i32_0 : i32, i32, i32
  }
  func.func @transform_1(%arg0: i32) -> (i32, i32, i32) {
    %c0_i32 = arith.constant 0 : i32
    %c0_i32_0 = arith.constant 0 : i32
    %c0_i32_1 = arith.constant 0 : i32
    %c0_i32_2 = arith.constant 0 : i32
    return %c0_i32, %c0_i32_0, %c0_i32_1 : i32, i32, i32
  }
  func.func @transform_2(%arg0: i32) -> (i32, i32, i32) {
    %c0_i32 = arith.constant 0 : i32
    %c0_i32_0 = arith.constant 0 : i32
    %c0_i32_1 = arith.constant 0 : i32
    %c0_i32_2 = arith.constant 0 : i32
    return %c0_i32, %c0_i32_0, %c0_i32_1 : i32, i32, i32
  }
  func.func @transform_3(%arg0: i32) -> (i32, i32) {
    %c0_i32 = arith.constant 0 : i32
    %c0_i32_0 = arith.constant 0 : i32
    %c0_i32_1 = arith.constant 0 : i32
    return %c0_i32, %c0_i32_0 : i32, i32
  }
  func.func @transform_4(%arg0: i32) -> (i32, i32) {
    %c0_i32 = arith.constant 0 : i32
    %c0_i32_0 = arith.constant 0 : i32
    %c0_i32_1 = arith.constant 0 : i32
    return %c0_i32, %c0_i32_0 : i32, i32
  }
  func.func @transform_5(%arg0: i32) -> (i32, i32) {
    %c0_i32 = arith.constant 0 : i32
    %c0_i32_0 = arith.constant 0 : i32
    %c0_i32_1 = arith.constant 0 : i32
    return %c0_i32, %c0_i32_0 : i32, i32
  }
  func.func @transform_6(%arg0: i32) -> (i32, i32) {
    %c0_i32 = arith.constant 0 : i32
    %c0_i32_0 = arith.constant 0 : i32
    %c0_i32_1 = arith.constant 0 : i32
    return %c0_i32, %c0_i32_0 : i32, i32
  }
  func.func @transform_7(%arg0: i32) -> (i32, i32) {
    %c0_i32 = arith.constant 0 : i32
    %c0_i32_0 = arith.constant 0 : i32
    %c0_i32_1 = arith.constant 0 : i32
    return %c0_i32, %c0_i32_0 : i32, i32
  }
  func.func @transform_8(%arg0: i32) -> (i32, i32) {
    %c0_i32 = arith.constant 0 : i32
    %c0_i32_0 = arith.constant 0 : i32
    %c0_i32_1 = arith.constant 0 : i32
    return %c0_i32, %c0_i32_0 : i32, i32
  }
  func.func @transform_9(%arg0: i32) -> (i32, i32, i32) {
    %c0_i32 = arith.constant 0 : i32
    %c0_i32_0 = arith.constant 0 : i32
    %c0_i32_1 = arith.constant 0 : i32
    return %arg0, %c0_i32, %c0_i32_0 : i32, i32, i32
  }
}

</mosaic_0001>

<bundles_post_ra>
// kernel: preact_block_forward.1
= control target key start
LH: loop header
LB: loop body
LE: loop exit
PB: predicated region body
PF: predicated region fallthrough
CT: control target
= control target key end

     0   :  { %s4604_s30 = smov 0   ;;  %s6126_s0 = inlined_call_operand.vmem [shape: f32[2,256,4], index: 0, kind: input, shape index: {}]   ;;  %s6127_s1 = inlined_call_operand.vmem [shape: bf16[3,12,4], index: 1, kind: input, shape index: {}]   ;;  %s6128_s2 = inlined_call_operand.vmem [shape: bf16[3,12,4], index: 2, kind: input, shape index: {}]   ;;  %s6129_s3 = inlined_call_operand.vmem [shape: f32[1,4], index: 3, kind: input, shape index: {}]   ;;  %s6130_s4 = inlined_call_operand.vmem [shape: f32[1,4], index: 4, kind: input, shape index: {}]   ;;  %s6131_s5 = inlined_call_operand.vmem [shape: f32[1,4], index: 5, kind: input, shape index: {}]   ;;  %s6132_s6 = inlined_call_operand.vmem [shape: f32[1,4], index: 6, kind: input, shape index: {}]   ;;  %s6133_s7 = inlined_call_operand.vmem [shape: f32[1,4], index: 7, kind: input, shape index: {}]   ;;  %s6134_s8 = inlined_call_operand.vmem [shape: f32[1,4], index: 8, kind: input, shape index: {}]   ;;  %s6135_s9 = inlined_call_operand.vmem [shape: f32[2,256,4], index: 9, kind: output, shape index: {}]  }
   0x1 LB: > { %s3923_s10 = sadd.s32 4294967295, %s4548_s30   ;;  %p3927_p0 = scmp.ge.s32.totalorder %s4548_s30, 1  ;;  %s4548_s30 = sphi %s4604_s30, %s19_s30  }
   0x2   : > { %p287_p1 = scmp.lt.s32.totalorder %s4548_s30, 3 }
   0x4   : > { %p288_p2 = pnand %p3927_p0, %p287_p1 }
   0x6   : > { %291 = sbr.rel (%p288_p2) target bundleno = 1091 (0x443), region = 56 }
   0xd   : > { %p323_p3 = scmp.lt.s32.totalorder %s3923_s10, 1  ;;  %v334_v0 = vlaneseq  ;;  %v4619_v2 = vld [vmem:[%s6129_s3] ss:$0 sm:$0xff]  ;;  %v6136_v15 = vmov 0.0   ;;  %vm1464_vm4 = vsmask.f32 7424 }
   0xe   : > { %v4636_v7 = vld [vmem:[%s6130_s4] ss:$0 sm:$0xff]  ;;  %s4551_s19 = smov 4   ;;  %s4552_s20 = smov 8  }
   0xf   : > { %s6203_s10 = smov (!%p323_p3, %s3923_s10), 1  ;;  %v4614_v1 = vshrl.u32 %v334_v0, 7 }
  0x10   : > { %s4082_s13 = sshll.u32 %s6203_s10, 8 }
  0x11   : > { %v336_v3 = vadd.s32 8, %v4614_v1  ;;  %v371_v4 = vand.u32 15, %v4614_v1  ;;  %v337_v5 = vadd.s32 16, %v4614_v1  ;;  %v339_v6 = vadd.s32 32, %v4614_v1  ;;  %s4631_s16 = scalar_lea.vmem %s6126_s0, %s4082_s13  ;;  %s5967_s26 = scalar_lea.vmem %s6135_s9, %s4082_s13 }
  0x12   : > { %v342_v8 = vadd.s32 56, %v4614_v1  ;;  %v4640_v9 = vadd.s32 48, %v4614_v1  ;;  %v958_v11 = vld [vmem:[%s4631_s16] sm:$0xff]  ;;  %v959_v12 = vld [vmem:[%s4631_s16 + $0x8] sm:$0xff]  ;;  %v960_v14 = vld [vmem:[%s4631_s16 + $0x10] sm:$0xff]  ;;  %v343_v48 = vadd.s32 64, %v4614_v1 }
  0x13   : > { %v378_v10 = vand.u32 15, %v336_v3  ;;  %vm751_vm0 = vcmp.ge.s32.totalorder %v371_v4, 1  ;;  %v385_v13 = vand.u32 15, %v337_v5  ;;  %v997_v17 = vmul.f32 %v4619_v2, %v958_v11  ;;  %v961_v19 = vld [vmem:[%s4631_s16 + $0x18] sm:$0xff]  ;;  %v962_v21 = vld [vmem:[%s4631_s16 + $0x20] sm:$0xff]  ;;  %v963_v24 = vld [vmem:[%s4631_s16 + $0x28] sm:$0xff] }
  0x14   : > { %v4646_v16 = vsel %vm751_vm0, 1.0, %v6136_v15  ;;  %v998_v18 = vmul.f32 %v4619_v2, %v959_v12  ;;  %v999_v20 = vmul.f32 %v4619_v2, %v960_v14  ;;  %v1000_v22 = vmul.f32 %v4619_v2, %v961_v19  ;;  %v964_v44 = vld [vmem:[%s4631_s16 + $0x30] sm:$0xff]  ;;  %v965_v45 = vld [vmem:[%s4631_s16 + $0x38] sm:$0xff]  ;;  %v967_v19 = vld [vmem:[%s4631_s16 + $0x48] sm:$0xff] }
  0x15   : > { %vm848_vm1 = vcmp.lt.s32.totalorder %v378_v10, 15  ;;  %vm753_vm2 = vcmp.ge.s32.totalorder %v385_v13, 1  ;;  %v399_v23 = vand.u32 15, %v339_v6  ;;  %v1036_v26 = vadd.f32 %v4636_v7, %v997_v17  ;;  %v966_v6 = vld [vmem:[%s4631_s16 + $0x40] sm:$0xff] }
  0x16   : > { %v4656_v25 = vsel %vm848_vm1, 1.0, %v6136_v15  ;;  %v1037_v27 = vadd.f32 %v4636_v7, %v998_v18  ;;  %v4661_v28 = vsel %vm753_vm2, 1.0, %v6136_v15  ;;  %v1038_v29 = vadd.f32 %v4636_v7, %v999_v20 }
  0x17   : > { %v1039_v30 = vadd.f32 %v4636_v7, %v1000_v22  ;;  %vm755_vm3 = vcmp.ge.s32.totalorder %v399_v23, 1  ;;  %v1001_v31 = vmul.f32 %v4619_v2, %v962_v21  ;;  %v1068_v32 = vmax.f32 %v1036_v26, 0.0 }
  0x18   : > { %v1069_v33 = vmax.f32 %v1037_v27, 0.0  ;;  %v4667_v34 = vsel %vm755_vm3, 1.0, %v6136_v15  ;;  %v1002_v35 = vmul.f32 %v4619_v2, %v963_v24  ;;  %v4670_v36 = vmax.f32 %v1038_v29, 0.0  ;;  %v968_v27 = vld [vmem:[%s4631_s16 + $0x50] sm:$0xff]  ;;  %v969_v29 = vld [vmem:[%s4631_s16 + $0x58] sm:$0xff] }
  0x19   : > { %v4672_v37 = vmax.f32 %v1039_v30, 0.0  ;;  %v1040_v38 = vadd.f32 %v4636_v7, %v1001_v31  ;;  %v420_v39 = vand.u32 15, %v342_v8  ;;  %v1416_v42 = vmul.f32 %v4646_v16, %v1068_v32 }
  0x1a   : > { %v1101_v40 = vmul.f32 %v4656_v25, %v1069_v33  ;;  %v1319_v41 = vpack.c.bf16 %v1069_v33, %v1068_v32  ;;  %v1041_v43 = vadd.f32 %v4636_v7, %v1002_v35  ;;  %v1418_v46 = vmul.f32 %v4661_v28, %v4670_v36 }
  0x1b   : > { %v4682_v47 = vmax.f32 %v1040_v38, 0.0  ;;  %vm854_vm5 = vcmp.lt.s32.totalorder %v420_v39, 15  ;;  %v1448_v50 = vpack.c.bf16 %v1069_v33, %v1416_v42  ;;  %v1320_v51 = vpack.c.bf16 %v4672_v37, %v4670_v36 }
  0x1c   : > { %1351 = vrot.lane.b32.xlu0 %v1319_v41, %s4551_s19  ;;  %v4686_v49 = vpack.c.bf16 %v1101_v40, %v1068_v32  ;;  %v4690_v52 = vmax.f32 %v1041_v43, 0.0  ;;  %v1449_v53 = vpack.c.bf16 %v4672_v37, %v1418_v46  ;;  %v1003_v55 = vmul.f32 %v4619_v2, %v964_v44 }
  0x1d   : > { %v1420_v54 = vmul.f32 %v4667_v34, %v4682_v47  ;;  %v1004_v56 = vmul.f32 %v4619_v2, %v965_v45  ;;  %v1466_v57 = vshll.u32 %v1448_v50, 16  ;;  %v1469_v58 = vshrl.u32 %v1448_v50, 16 }
  0x1e   : > { %v4698_v59 = vsel %vm854_vm5, 1.0, %v6136_v15  ;;  %v346_v60 = vadd.s32 88, %v4614_v1  ;;  %v1473_v61 = vshll.u32 %v1449_v53, 16  ;;  %v1477_v63 = vshrl.u32 %v1449_v53, 16 }
  0x1f   : > { %v1450_v62 = vpack.c.bf16 %v4690_v52, %v1420_v54  ;;  %v4702_v0 = vrot.slane %v1466_v57, 1  ;;  %v1321_v3 = vpack.c.bf16 %v4690_v52, %v4682_v47  ;;  %v1042_v4 = vadd.f32 %v4636_v7, %v1003_v55  ;;  %v970_v54 = vld [vmem:[%s4631_s16 + $0x60] sm:$0xff] }
  0x20   : > { %1353 = vrot.lane.b32.xlu0 %v1320_v51, %s4551_s19  ;;  %v1043_v5 = vadd.f32 %v4636_v7, %v1004_v56  ;;  %v1475_v8 = vrot.slane %v1473_v61, 1  ;;  %v413_v11 = vand.u32 15, %v4640_v9  ;;  %v427_v18 = vand.u32 15, %v343_v48 }
  0x21   : > { %v1481_v10 = vshll.u32 %v1450_v62, 16  ;;  %v1485_v12 = vshrl.u32 %v1450_v62, 16  ;;  %v1471_v13 = vor.u32 %v1469_v58, %v4702_v0  ;;  %v1074_v14 = vmax.f32 %v1042_v4, 0.0 }
  0x22   : > { %v1075_v17 = vmax.f32 %v1043_v5, 0.0  ;;  %v1479_v20 = vor.u32 %v1477_v63, %v1475_v8  ;;  %vm757_vm6 = vcmp.ge.s32.totalorder %v413_v11, 1  ;;  %v1005_v22 = vmul.f32 %v4619_v2, %v966_v6  ;;  %v971_v6 = vld [vmem:[%s4631_s16 + $0x68] sm:$0xff] }
  0x23   : > { %v1483_v21 = vrot.slane %v1481_v10, 1  ;;  %v1476_v23 = vsel %vm1464_vm4, %v1471_v13, %v1475_v8  ;;  %v4718_v26 = vsel %vm757_vm6, 1.0, %v6136_v15  ;;  %vm759_vm7 = vcmp.ge.s32.totalorder %v427_v18, 1  ;;  %v972_v18 = vld [vmem:[%s4631_s16 + $0x70] sm:$0xff] }
  0x24   : > { %1355 = vrot.lane.b32.xlu0 %v1321_v3, %s4551_s19  ;;  %v1107_v9 = vmul.f32 %v4698_v59, %v1075_v17  ;;  %v1322_v24 = vpack.c.bf16 %v1075_v17, %v1074_v14  ;;  %1594 = vrot.lane.b32.xlu1 %v1476_v23, %s4552_s20  ;;  %v1422_v31 = vmul.f32 %v4718_v26, %v1074_v14  ;;  %v4728_v35 = vsel %vm759_vm7, 1.0, %v6136_v15 }
  0x25   : > { %v1484_v30 = vsel %vm1464_vm4, %v1479_v20, %v1483_v21  ;;  %v1487_v32 = vor.u32 %v1485_v12, %v1483_v21  ;;  %v1006_v38 = vmul.f32 %v4619_v2, %v967_v19  ;;  %v1044_v39 = vadd.f32 %v4636_v7, %v1005_v22  ;;  %v973_v19 = vld [vmem:[%s4631_s16 + $0x78] sm:$0xff] }
  0x26   : > { %v4725_v33 = vpack.c.bf16 %v1107_v9, %v1074_v14  ;;  %v1451_v40 = vpack.c.bf16 %v1075_v17, %v1422_v31  ;;  %v448_v41 = vand.u32 15, %v346_v60  ;;  %v1007_v42 = vmul.f32 %v4619_v2, %v968_v27 }
  0x27   : > { %v1008_v43 = vmul.f32 %v4619_v2, %v969_v29  ;;  %v1045_v44 = vadd.f32 %v4636_v7, %v1006_v38  ;;  %v4735_v45 = vmax.f32 %v1044_v39, 0.0  ;;  %v345_v46 = vadd.s32 80, %v4614_v1 }
  0x28   : > { %v347_v48 = vadd.s32 96, %v4614_v1  ;;  %1596 = vrot.lane.b32.xlu1 %v1484_v30, %s4552_s20  ;;  %v1489_v50 = vshll.u32 %v1451_v40, 16  ;;  %v1493_v51 = vshrl.u32 %v1451_v40, 16  ;;  %vm858_vm8 = vcmp.lt.s32.totalorder %v448_v41, 15 }
  0x29   : > { %v1046_v53 = vadd.f32 %v4636_v7, %v1007_v42  ;;  %v4742_v55 = vmax.f32 %v1045_v44, 0.0  ;;  %v1424_v56 = vmul.f32 %v4728_v35, %v4735_v45  ;;  %v4747_v57 = vsel %vm858_vm8, 1.0, %v6136_v15 }
  0x2a   : > { %v1047_v58 = vadd.f32 %v4636_v7, %v1008_v43  ;;  %v1491_v60 = vrot.slane %v1489_v50, 1  ;;  %v441_v62 = vand.u32 15, %v345_v46  ;;  %v455_v63 = vand.u32 15, %v347_v48 }
  0x2b   : > { %v1078_v61 = vmax.f32 %v1046_v53, 0.0  ;;  %v1452_v3 = vpack.c.bf16 %v4742_v55, %v1424_v56  ;;  %v1323_v4 = vpack.c.bf16 %v4742_v55, %v4735_v45  ;;  %v1009_v8 = vmul.f32 %v4619_v2, %v970_v54  ;;  %v974_v54 = vld [vmem:[%s4631_s16 + $0x80] sm:$0xff]  ;;  %v975_v56 = vld [vmem:[%s4631_s16 + $0x88] sm:$0xff] }
  0x2c   : > { %v1079_v5 = vmax.f32 %v1047_v58, 0.0  ;;  %1357 = vrot.lane.b32.xlu1 %v1322_v24, %s4551_s19  ;;  %v1492_v10 = vsel %vm1464_vm4, %v1487_v32, %v1491_v60  ;;  %v1495_v11 = vor.u32 %v1493_v51, %v1491_v60  ;;  %vm761_vm9 = vcmp.ge.s32.totalorder %v441_v62, 1 }
  0x2d   : > { %vm763_vm10 = vcmp.ge.s32.totalorder %v455_v63, 1  ;;  %1598 = vrot.lane.b32.xlu0 %v1492_v10, %s4552_s20  ;;  %v1497_v12 = vshll.u32 %v1452_v3, 16  ;;  %v4760_v17 = vsel %vm761_vm9, 1.0, %v6136_v15  ;;  %v1501_v21 = vshrl.u32 %v1452_v3, 16 }
  0x2e   : > { %v1111_v13 = vmul.f32 %v4747_v57, %v1079_v5  ;;  %v1324_v14 = vpack.c.bf16 %v1079_v5, %v1078_v61  ;;  %v1426_v20 = vmul.f32 %v4760_v17, %v1078_v61  ;;  %v4766_v22 = vsel %vm763_vm10, 1.0, %v6136_v15 }
  0x2f   : > { %v1010_v23 = vmul.f32 %v4619_v2, %v971_v6  ;;  %v1499_v9 = vrot.slane %v1497_v12, 1  ;;  %v1048_v27 = vadd.f32 %v4636_v7, %v1009_v8  ;;  %v350_v29 = vadd.s32 120, %v4614_v1 }
  0x30   : > { %v4769_v24 = vpack.c.bf16 %v1111_v13, %v1078_v61  ;;  %v1453_v30 = vpack.c.bf16 %v1079_v5, %v1426_v20  ;;  %v1011_v32 = vmul.f32 %v4619_v2, %v972_v18  ;;  %v1012_v38 = vmul.f32 %v4619_v2, %v973_v19  ;;  %v976_v19 = vld [vmem:[%s4631_s16 + $0x90] sm:$0xff] }
  0x31   : > { %v1049_v31 = vadd.f32 %v4636_v7, %v1010_v23  ;;  %v1500_v39 = vsel %vm1464_vm4, %v1495_v11, %v1499_v9  ;;  %1359 = vrot.lane.b32.xlu0 %v1323_v4, %s4551_s19  ;;  %v1503_v40 = vor.u32 %v1501_v21, %v1499_v9  ;;  %v4778_v41 = vmax.f32 %v1048_v27, 0.0 }
  0x32   : > { %v476_v42 = vand.u32 15, %v350_v29  ;;  %1600 = vrot.lane.b32.xlu1 %v1500_v39, %s4552_s20  ;;  %v1505_v43 = vshll.u32 %v1453_v30, 16  ;;  %v1509_v46 = vshrl.u32 %v1453_v30, 16  ;;  %v1050_v48 = vadd.f32 %v4636_v7, %v1011_v32 }
  0x33   : > { %v4781_v44 = vmax.f32 %v1049_v31, 0.0  ;;  %v1428_v50 = vmul.f32 %v4766_v22, %v4778_v41  ;;  %v1051_v51 = vadd.f32 %v4636_v7, %v1012_v38  ;;  %v349_v53 = vadd.s32 112, %v4614_v1  ;;  %v977_v31 = vld [vmem:[%s4631_s16 + $0x98] sm:$0xff] }
  0x34   : > { %vm862_vm11 = vcmp.lt.s32.totalorder %v476_v42, 15  ;;  %v1149_v58 = vshrl.u32 %v4686_v49, 16  ;;  %v1507_v61 = vrot.slane %v1505_v43, 1  ;;  %v4795_v3 = vmax.f32 %v1050_v48, 0.0 }
  0x35   : > { %v1325_v62 = vpack.c.bf16 %v4781_v44, %v4778_v41  ;;  %v1454_v63 = vpack.c.bf16 %v4781_v44, %v1428_v50  ;;  %v469_v4 = vand.u32 15, %v349_v53  ;;  %v351_v5 = vadd.s32 128, %v4614_v1 }
  0x36   : > { %1361 = vrot.lane.b32.xlu1 %v1324_v14, %s4551_s19  ;;  %v1508_v6 = vsel %vm1464_vm4, %v1503_v40, %v1507_v61  ;;  %v4801_v8 = vsel %vm862_vm11, 1.0, %v6136_v15  ;;  %v1013_v10 = vmul.f32 %v4619_v2, %v974_v54  ;;  %v1014_v11 = vmul.f32 %v4619_v2, %v975_v56 }
  0x37   : > { %1602 = vrot.lane.b32.xlu0 %v1508_v6, %s4552_s20  ;;  %v1511_v12 = vor.u32 %v1509_v46, %v1507_v61  ;;  %v1513_v13 = vshll.u32 %v1454_v63, 16  ;;  %v1083_v18 = vmax.f32 %v1051_v51, 0.0  ;;  %vm765_vm12 = vcmp.ge.s32.totalorder %v469_v4, 1  ;;  %v978_v6 = vld [vmem:[%s4631_s16 + $0xa0] sm:$0xff] }
  0x38   : > { %v4808_v20 = vsel %vm765_vm12, 1.0, %v6136_v15  ;;  %v1517_v14 = vshrl.u32 %v1454_v63, 16  ;;  %v483_v21 = vand.u32 15, %v351_v5  ;;  %v1052_v23 = vadd.f32 %v4636_v7, %v1013_v10 }
  0x39   : > { %v1515_v9 = vrot.slane %v1513_v13, 1  ;;  %v1326_v27 = vpack.c.bf16 %v1083_v18, %v4795_v3  ;;  %v1430_v29 = vmul.f32 %v4808_v20, %v4795_v3  ;;  %v1053_v30 = vadd.f32 %v4636_v7, %v1014_v11 }
  0x3a   : > { %vm767_vm13 = vcmp.ge.s32.totalorder %v483_v21, 1  ;;  %v4816_v32 = vmax.f32 %v1052_v23, 0.0  ;;  %v354_v38 = vadd.s32 152, %v4614_v1  ;;  %v1015_v39 = vmul.f32 %v4619_v2, %v976_v19  ;;  %v979_v23 = vld [vmem:[%s4631_s16 + $0xa8] sm:$0xff] }
  0x3b   : > { %v1516_v40 = vsel %vm1464_vm4, %v1511_v12, %v1515_v9  ;;  %1363 = vrot.lane.b32.xlu0 %v1325_v62, %s4551_s19  ;;  %v1455_v42 = vpack.c.bf16 %v1083_v18, %v1430_v29  ;;  %v1519_v43 = vor.u32 %v1517_v14, %v1515_v9  ;;  %v4823_v46 = vsel %vm767_vm13, 1.0, %v6136_v15 }
  0x3c   : > { %6154 = vst [vmem:[#allocation3_spill] sm:$0xff] %v4823_v46  ;;  %1604 = vrot.lane.b32.xlu1 %v1516_v40, %s4552_s20  ;;  %v4826_v48 = vmax.f32 %v1053_v30, 0.0  ;;  %v1432_v50 = vmul.f32 %v4823_v46, %v4816_v32  ;;  %v504_v51 = vand.u32 15, %v354_v38  ;;  %v1016_v53 = vmul.f32 %v4619_v2, %v977_v31 }
  0x3d   : > { %v1521_v54 = vshll.u32 %v1455_v42, 16  ;;  %v1525_v56 = vshrl.u32 %v1455_v42, 16  ;;  %v1054_v61 = vadd.f32 %v4636_v7, %v1015_v39  ;;  %v353_v62 = vadd.s32 144, %v4614_v1 }
  0x3e   : > { %v1115_v63 = vmul.f32 %v4801_v8, %v1083_v18  ;;  %v1456_v4 = vpack.c.bf16 %v4826_v48, %v1432_v50  ;;  %vm866_vm14 = vcmp.lt.s32.totalorder %v504_v51, 15  ;;  %v1055_v5 = vadd.f32 %v4636_v7, %v1016_v53  ;;  %v980_v51 = vld [vmem:[%s4631_s16 + $0xb0] sm:$0xff]  ;;  %v981_v53 = vld [vmem:[%s4631_s16 + $0xb8] sm:$0xff] }
  0x3f   : > { %v1523_v10 = vrot.slane %v1521_v54, 1  ;;  %v4838_v11 = vsel %vm866_vm14, 1.0, %v6136_v15  ;;  %v1086_v12 = vmax.f32 %v1054_v61, 0.0  ;;  %v497_v13 = vand.u32 15, %v353_v62 }
  0x40   : > { %6155 = vst [vmem:[#allocation4_spill] sm:$0xff] %v4838_v11  ;;  %1365 = vrot.lane.b32.xlu1 %v1326_v27, %s4551_s19  ;;  %v1529_v19 = vshll.u32 %v1456_v4, 16  ;;  %v1087_v14 = vmax.f32 %v1055_v5, 0.0  ;;  %v1533_v21 = vshrl.u32 %v1456_v4, 16  ;;  %v355_v18 = vadd.s32 160, %v4614_v1 }
  0x41   : > { %v1524_v9 = vsel %vm1464_vm4, %v1519_v43, %v1523_v10  ;;  %v1527_v29 = vor.u32 %v1525_v56, %v1523_v10  ;;  %vm769_vm15 = vcmp.ge.s32.totalorder %v497_v13, 1  ;;  %v1017_v30 = vmul.f32 %v4619_v2, %v978_v6 }
  0x42   : > { %1606 = vrot.lane.b32.xlu0 %v1524_v9, %s4552_s20  ;;  %v1531_v31 = vrot.slane %v1529_v19, 1  ;;  %v1327_v27 = vpack.c.bf16 %v4826_v48, %v4816_v32  ;;  %v1119_v38 = vmul.f32 %v4838_v11, %v1087_v14  ;;  %v4850_v39 = vsel %vm769_vm15, 1.0, %v6136_v15 }
  0x43   : > { %6156 = vst [vmem:[#allocation5_spill] sm:$0xff] %v4850_v39  ;;  %v1434_v40 = vmul.f32 %v4850_v39, %v1086_v12  ;;  %v511_v42 = vand.u32 15, %v355_v18  ;;  %v1018_v43 = vmul.f32 %v4619_v2, %v979_v23  ;;  %v1056_v50 = vadd.f32 %v4636_v7, %v1017_v30 }
  0x44   : > { %v1532_v54 = vsel %vm1464_vm4, %v1527_v29, %v1531_v31  ;;  %v1328_v56 = vpack.c.bf16 %v1087_v14, %v1086_v12  ;;  %v1535_v61 = vor.u32 %v1533_v21, %v1531_v31  ;;  %v358_v62 = vadd.s32 184, %v4614_v1 }
  0x45   : > { %1608 = vrot.lane.b32.xlu1 %v1532_v54, %s4552_s20  ;;  %v1457_v4 = vpack.c.bf16 %v1087_v14, %v1434_v40  ;;  %vm771_vm0 = vcmp.ge.s32.totalorder %v511_v42, 1  ;;  %v1057_v5 = vadd.f32 %v4636_v7, %v1018_v43  ;;  %v4861_v6 = vmax.f32 %v1056_v50, 0.0  ;;  %v982_v54 = vld [vmem:[%s4631_s16 + $0xc0] sm:$0xff] }
  0x46   : > { %1367 = vrot.lane.b32.xlu0 %v1327_v27, %s4551_s19  ;;  %v4865_v10 = vsel %vm771_vm0, 1.0, %v6136_v15  ;;  %v532_v13 = vand.u32 15, %v358_v62  ;;  %v1019_v19 = vmul.f32 %v4619_v2, %v980_v51  ;;  %v1020_v21 = vmul.f32 %v4619_v2, %v981_v53  ;;  %v983_v62 = vld [vmem:[%s4631_s16 + $0xc8] sm:$0xff] }
  0x47   : > { %6157 = vst [vmem:[#allocation6_spill] sm:$0xff] %v4865_v10  ;;  %v1537_v18 = vshll.u32 %v1457_v4, 16  ;;  %v4869_v23 = vmax.f32 %v1057_v5, 0.0  ;;  %v1436_v14 = vmul.f32 %v4865_v10, %v4861_v6  ;;  %v1541_v9 = vshrl.u32 %v1457_v4, 16 }
  0x48   : > { %v4875_v29 = vrot.slane %v1149_v58, 7  ;;  %v1058_v30 = vadd.f32 %v4636_v7, %v1019_v19  ;;  %v1059_v31 = vadd.f32 %v4636_v7, %v1020_v21  ;;  %v357_v27 = vadd.s32 176, %v4614_v1 }
  0x49   : > { %v4881_v40 = vpack.c.bf16 %v1115_v63, %v4795_v3  ;;  %1369 = vrot.lane.b32.xlu1 %v1328_v56, %s4551_s19  ;;  %v1539_v42 = vrot.slane %v1537_v18, 1  ;;  %v1458_v43 = vpack.c.bf16 %v4869_v23, %v1436_v14  ;;  %vm870_vm1 = vcmp.lt.s32.totalorder %v532_v13, 15  ;;  %v984_v18 = vld [vmem:[%s4631_s16 + $0xd0] sm:$0xff] }
  0x4a   : > { %v4885_v50 = vpack.c.bf16 %v1119_v38, %v1086_v12  ;;  %v4887_v51 = vmax.f32 %v1058_v30, 0.0  ;;  %v525_v58 = vand.u32 15, %v357_v27  ;;  %v359_v53 = vadd.s32 192, %v4614_v1  ;;  %v988_v27 = vld [vmem:[%s4631_s16 + $0xf0] sm:$0xff] }
  0x4b   : > { %v1540_v4 = vsel %vm1464_vm4, %v1535_v61, %v1539_v42  ;;  %v1543_v3 = vor.u32 %v1541_v9, %v1539_v42  ;;  %v1545_v63 = vshll.u32 %v1458_v43, 16  ;;  %v1329_v56 = vpack.c.bf16 %v4869_v23, %v4861_v6 }
  0x4c   : > { %1610 = vrot.lane.b32.xlu0 %v1540_v4, %s4552_s20  ;;  %v4897_v12 = vsel %vm870_vm1, 1.0, %v6136_v15  ;;  %v1091_v38 = vmax.f32 %v1059_v31, 0.0  ;;  %vm773_vm2 = vcmp.ge.s32.totalorder %v525_v58, 1  ;;  %v539_v5 = vand.u32 15, %v359_v53  ;;  %v985_v31 = vld [vmem:[%s4631_s16 + $0xd8] sm:$0xff] }
  0x4d   : > { %6158 = vst [vmem:[#allocation7_spill] sm:$0xff] %v4897_v12  ;;  %v1547_v13 = vrot.slane %v1545_v63, 1  ;;  %v4900_v19 = vsel %vm773_vm2, 1.0, %v6136_v15  ;;  %v1021_v61 = vmul.f32 %v4619_v2, %v982_v54  ;;  %v1022_v21 = vmul.f32 %v4619_v2, %v983_v62 }
  0x4e   : > { %6159 = vst [vmem:[#allocation8_spill] sm:$0xff] %v4900_v19  ;;  %v1438_v14 = vmul.f32 %v4900_v19, %v4887_v51  ;;  %v1549_v9 = vshrl.u32 %v1458_v43, 16  ;;  %vm775_vm3 = vcmp.ge.s32.totalorder %v539_v5, 1  ;;  %v362_v30 = vadd.s32 216, %v4614_v1 }
  0x4f   : > { %v1548_v42 = vsel %vm1464_vm4, %v1543_v3, %v1547_v13  ;;  %v1330_v58 = vpack.c.bf16 %v1091_v38, %v4887_v51  ;;  %v4913_v53 = vsel %vm775_vm3, 1.0, %v6136_v15  ;;  %v1060_v54 = vadd.f32 %v4636_v7, %v1021_v61  ;;  %v989_v15 = vld [vmem:[%s4631_s16 + $0xf8] sm:$0xff] }
  0x50   : > { %6160 = vst [vmem:[#allocation9_spill] sm:$0xff] %v4913_v53  ;;  %1612 = vrot.lane.b32.xlu1 %v1548_v42, %s4552_s20  ;;  %1371 = vrot.lane.b32.xlu0 %v1329_v56, %s4551_s19  ;;  %v1459_v43 = vpack.c.bf16 %v1091_v38, %v1438_v14  ;;  %v1061_v62 = vadd.f32 %v4636_v7, %v1022_v21  ;;  %v560_v4 = vand.u32 15, %v362_v30  ;;  %v366_v60 = vadd.s32 248, %v4614_v1 }
  0x51   : > { %v1023_v63 = vmul.f32 %v4619_v2, %v984_v18  ;;  %v4920_v5 = vmax.f32 %v1060_v54, 0.0  ;;  %v1024_v3 = vmul.f32 %v4619_v2, %v985_v31  ;;  %v1027_v10 = vmul.f32 %v4619_v2, %v988_v27 }
  0x52   : > { %v1551_v61 = vor.u32 %v1549_v9, %v1547_v13  ;;  %v1553_v19 = vshll.u32 %v1459_v43, 16  ;;  %v4926_v42 = vmax.f32 %v1061_v62, 0.0  ;;  %vm874_vm5 = vcmp.lt.s32.totalorder %v560_v4, 15 }
  0x53   : > { %vm945_vm6 = vcmask 90112   ;;  %vm946_vm7 = vsmask.f32 256  ;;  %v1440_v56 = vmul.f32 %v4913_v53, %v4920_v5  ;;  %v1557_v21 = vshrl.u32 %v1459_v43, 16 }
  0x54   : > { %v1062_v18 = vadd.f32 %v4636_v7, %v1023_v63  ;;  %v1063_v14 = vadd.f32 %v4636_v7, %v1024_v3  ;;  %v1123_v30 = vmul.f32 %v4897_v12, %v1091_v38  ;;  %1373 = vrot.lane.b32.xlu1 %v1330_v58, %s4551_s19  ;;  %v1555_v31 = vrot.slane %v1553_v19, 1  ;;  %vm4972_vm13 = vmand %vm945_vm6, %vm946_vm7 }
  0x55   : > { %v588_v13 = vand.u32 15, %v366_v60  ;;  %v1028_v9 = vmul.f32 %v4619_v2, %v989_v15  ;;  %v1460_v27 = vpack.c.bf16 %v4926_v42, %v1440_v56  ;;  %v1331_v54 = vpack.c.bf16 %v4926_v42, %v4920_v5  ;;  %v986_v56 = vld [vmem:[%s4631_s16 + $0xe0] sm:$0xff] }
  0x56   : > { %v6161_v62 = vmov 0.0   ;;  %v1066_v4 = vadd.f32 %v4636_v7, %v1027_v10  ;;  %v1556_v63 = vsel %vm1464_vm4, %v1551_v61, %v1555_v31  ;;  %v1095_v38 = vmax.f32 %v1063_v14, 0.0 }
  0x57   : > { %v4939_v43 = vsel %vm874_vm5, 1.0, %v6161_v62  ;;  %vm878_vm8 = vcmp.lt.s32.totalorder %v588_v13, 15  ;;  %v1067_v19 = vadd.f32 %v4636_v7, %v1028_v9  ;;  %1614 = vrot.lane.b32.xlu0 %v1556_v63, %s4552_s20  ;;  %v1559_v15 = vor.u32 %v1557_v21, %v1555_v31  ;;  %v987_v63 = vld [vmem:[%s4631_s16 + $0xe8] sm:$0xff] }
  0x58   : > { %6162 = vst [vmem:[#allocation10_spill] sm:$0xff] %v4939_v43  ;;  %v1561_v60 = vshll.u32 %v1460_v27, 16  ;;  %v1094_v58 = vmax.f32 %v1062_v18, 0.0  ;;  %v4946_v3 = vsel %vm878_vm8, 1.0, %v6161_v62  ;;  %v1127_v53 = vmul.f32 %v4939_v43, %v1095_v38 }
  0x59   : > { %6163 = vst [vmem:[#allocation11_spill] sm:$0xff] %v4946_v3  ;;  %v1098_v12 = vmax.f32 %v1066_v4, 0.0  ;;  %v1099_v10 = vmax.f32 %v1067_v19, 0.0  ;;  %v361_v61 = vadd.s32 208, %v4614_v1  ;;  %v363_v46 = vadd.s32 224, %v4614_v1 }
  0x5a   : > { %v1563_v14 = vrot.slane %v1561_v60, 1  ;;  %v1332_v13 = vpack.c.bf16 %v1095_v38, %v1094_v58  ;;  %v364_v9 = vadd.s32 232, %v4614_v1  ;;  %v1565_v31 = vshrl.u32 %v1460_v27, 16 }
  0x5b   : > { %v1131_v21 = vmul.f32 %v4946_v3, %v1099_v10  ;;  %v553_v18 = vand.u32 15, %v361_v61  ;;  %v1025_v11 = vmul.f32 %v4619_v2, %v986_v56  ;;  %1375 = vrot.lane.b32.xlu0 %v1331_v54, %s4551_s19  ;;  %v1334_v4 = vpack.c.bf16 %v1099_v10, %v1098_v12  ;;  %v948_v54 = vld [vmem:[#allocation2 + $0x8] sm:$0x1] }
  0x5c   : > { %v1564_v39 = vsel %vm1464_vm4, %v1559_v15, %v1563_v14  ;;  %v567_v19 = vand.u32 15, %v363_v46  ;;  %v574_v43 = vand.u32 15, %v364_v9  ;;  %vm1292_vm9 = vcmask 31744  }
  0x5d   : > { %vm1293_vm10 = vsmask.f32 7938  ;;  %1616 = vrot.lane.b32.xlu1 %v1564_v39, %s4552_s20  ;;  %v4959_v60 = vpack.c.bf16 %v1131_v21, %v1098_v12  ;;  %vm777_vm11 = vcmp.ge.s32.totalorder %v553_v18, 1  ;;  %v1026_v3 = vmul.f32 %v4619_v2, %v987_v63 }
  0x5e   : > { %v1064_v27 = vadd.f32 %v4636_v7, %v1025_v11  ;;  %v4964_v56 = vpack.c.bf16 %v1123_v30, %v4887_v51  ;;  %v4967_v15 = vsel %vm777_vm11, 1.0, %v6161_v62  ;;  %vm779_vm12 = vcmp.ge.s32.totalorder %v567_v19, 1  ;;  %vm5019_vm0 = vmand %vm1292_vm9, %vm1293_vm10 }
  0x5f   : > { %6164 = vst [vmem:[#allocation12_spill] sm:$0xff] %v4967_v15  ;;  %v365_v46 = vadd.s32 240, %v4614_v1  ;;  %v4976_v61 = vpack.c.bf16 %v1127_v53, %v1094_v58  ;;  %v1442_v2 = vmul.f32 %v4967_v15, %v1094_v58  ;;  %v1567_v11 = vor.u32 %v1565_v31, %v1563_v14  ;;  %1381 = vrot.lane.b32.xlu0 %v1334_v4, %s4551_s19 }
  0x60   : > { %v4980_v51 = vsel %vm779_vm12, 1.0, %v6161_v62  ;;  %vm4983_vm14 = vcmp.lt.s32.totalorder %v574_v43, 15  ;;  %v1065_v9 = vadd.f32 %v4636_v7, %v1026_v3  ;;  %v4988_v63 = vmax.f32 %v1064_v27, 0.0 }
  0x61   : > { %6167 = vst [vmem:[#allocation13_spill] sm:$0xff] %v4980_v51  ;;  %v581_v21 = vand.u32 15, %v365_v46  ;;  %1377 = vrot.lane.b32.xlu1 %v1332_v13, %s4551_s19  ;;  %v1268_v53 = vshrl.u32 %v4959_v60, 16  ;;  %v1461_v14 = vpack.c.bf16 %v1095_v38, %v1442_v2  ;;  %v949_v18 = vsel %vm4972_vm13, 0, %v948_v54 }
  0x62   : > { %v4995_v31 = vmax.f32 %v1065_v9, 0.0  ;;  %v1444_v43 = vmul.f32 %v4980_v51, %v4988_v63  ;;  %950 = vst [vmem:[#allocation2 + $0x8] sm:$0x1] %v949_v18  ;;  %v338_v7 = vadd.s32 24, %v4614_v1  ;;  %v340_v19 = vadd.s32 40, %v4614_v1 }
  0x63   : > { %vm781_vm15 = vcmp.ge.s32.totalorder %v581_v21, 1  ;;  %v1569_v3 = vshll.u32 %v1461_v14, 16  ;;  %v1573_v4 = vshrl.u32 %v1461_v14, 16  ;;  %v6171_v39 = vshll.u32 %v4686_v49, 16 }
  0x64   : > { %v5001_v13 = vsel %vm781_vm15, 1.0, %v6161_v62  ;;  %v1462_v38 = vpack.c.bf16 %v4995_v31, %v1444_v43  ;;  %v1333_v27 = vpack.c.bf16 %v4995_v31, %v4988_v63  ;;  %v392_v9 = vand.u32 15, %v338_v7  ;;  %v4536_v43 = vld [vmem:[%s6127_s1 + $0x8] sm:$0x3f]  }
  0x65   : > { %6170 = vst [vmem:[#allocation14_spill] sm:$0xff] %v5001_v13  ;;  %v1446_v46 = vmul.f32 %v5001_v13, %v1098_v12  ;;  %v1154_v54 = vor.u32 %v6171_v39, %v4875_v29  ;;  %v1571_v2 = vrot.slane %v1569_v3, 1  ;;  %v406_v21 = vand.u32 15, %v340_v19 }
  0x66   : > { %v1172_v14 = vshrl.u32 %v4725_v33, 16  ;;  %v1577_v18 = vshll.u32 %v1462_v38, 16  ;;  %v1581_v51 = vshrl.u32 %v1462_v38, 16  ;;  %v1175_v15 = vshll.u32 %v4725_v33, 16 }
  0x67   : > { %v1463_v58 = vpack.c.bf16 %v1099_v10, %v1446_v46  ;;  %v1572_v12 = vsel %vm1464_vm4, %v1567_v11, %v1571_v2  ;;  %v1575_v13 = vor.u32 %v1573_v4, %v1571_v2  ;;  %vm850_vm1 = vcmp.lt.s32.totalorder %v392_v9, 15  ;;  %v5041_v9 = vld [vmem:[%s6127_s1] sm:$0x3f]  }
  0x68   : > { %vm852_vm2 = vcmp.lt.s32.totalorder %v406_v21, 15  ;;  %1618 = vrot.lane.b32.xlu1 %v1572_v12, %s4552_s20  ;;  %v1579_v10 = vrot.slane %v1577_v18, 1  ;;  %v5025_v3 = vsel %vm850_vm1, 1.0, %v6161_v62  ;;  %v5032_v38 = vrot.slane %v1172_v14, 7 }
  0x69   : > { %v1585_v7 = vshll.u32 %v1463_v58, 16  ;;  %v1589_v33 = vshrl.u32 %v1463_v58, 16  ;;  %v1295_v19 = vld [vmem:[#allocation2 + $0x8] sm:$0xff]  ;;  %v1103_v11 = vmul.f32 %v5025_v3, %v4672_v37  ;;  %v5030_v4 = vsel %vm852_vm2, 1.0, %v6161_v62 }
  0x6a   : > { %vm1744_vm3 = vcmask 1045504   ;;  %v1580_v46 = vsel %vm1464_vm4, %v1575_v13, %v1579_v10  ;;  %v1583_v2 = vor.u32 %v1581_v51, %v1579_v10  ;;  %v1296_v58 = vsel %vm5019_vm0, %v1154_v54, %v1295_v19 }
  0x6b   : > { %v1587_v39 = vrot.slane %v1585_v7, 1  ;;  %4518 = vmatprep.subr.msk.bf16.mxu0 %vm1744_vm3, %v4536_v43  ;;  %v5043_v37 = vrot.slane %v1268_v53, 7  ;;  %v5048_v21 = vsel %vm4983_vm14, 1.0, %v6161_v62  ;;  %1620 = vrot.lane.b32.xlu0 %v1580_v46, %s4552_s20  ;;  %1297 = vst [vmem:[#allocation2 + $0x8] sm:$0xff] %v1296_v58  ;;  %v1133_v51 = vpack.c.bf16 %v1103_v11, %v4670_v36 }
  0x6c   : > { %v1105_v13 = vmul.f32 %v5030_v4, %v4690_v52  ;;  %1379 = vrot.lane.b32.xlu1 %v1333_v27, %s4551_s19  ;;  %v1746_v53 = vsel %vm1744_vm3, %v4536_v43, 0  ;;  %v344_v18 = vadd.s32 72, %v4614_v1  ;;  %v1177_v7 = vor.u32 %v1175_v15, %v5032_v38 }
  0x6d   : > { %v1591_v54 = vor.u32 %v1589_v33, %v1587_v39  ;;  %v1588_v14 = vsel %vm1464_vm4, %v1583_v2, %v1587_v39  ;;  %v1156_v30 = vshrl.u32 %v1133_v51, 16  ;;  %v1159_v12 = vshll.u32 %v1133_v51, 16  ;;  %4187 = vmatpush3.bf16.msra.mxu0 %v1746_v53 }
  0x6e   : > { %v1134_v10 = vpack.c.bf16 %v1105_v13, %v4682_v47  ;;  %4519 = vmatprep.subr.msk.bf16.mxu0 %vm1744_vm3, %v5041_v9  ;;  %v434_v36 = vand.u32 15, %v344_v18  ;;  %v1188_v52 = vshrl.u32 %v4769_v24, 16  ;;  %v1191_v27 = vshll.u32 %v4769_v24, 16 }
  0x6f   : > { %v348_v33 = vadd.s32 104, %v4614_v1  ;;  %1622 = vrot.lane.b32.xlu0 %v1588_v14, %s4552_s20  ;;  %v1158_v43 = vrot.slane %v1156_v30, 7  ;;  %v1204_v47 = vshrl.u32 %v4881_v40, 16  ;;  %v1207_v39 = vshll.u32 %v4881_v40, 16 }
  0x70   : > { %v1164_v19 = vshrl.u32 %v1134_v10, 16  ;;  %v1167_v11 = vshll.u32 %v1134_v10, 16  ;;  %1624 = vrot.lane.b32.xlu1 %v1591_v54, %s4552_s20  ;;  %vm856_vm5 = vcmp.lt.s32.totalorder %v434_v36, 15  ;;  %v5068_v15 = vrot.slane %v1188_v52, 7 }
  0x71   : > { %v462_v46 = vand.u32 15, %v348_v33  ;;  %v1161_v2 = vor.u32 %v1159_v12, %v1158_v43  ;;  %v5072_v24 = vsel %vm856_vm5, 1.0, %v6161_v62  ;;  %v5074_v51 = vrot.slane %v1204_v47, 7 }
  0x72   : > { %v1166_v58 = vrot.slane %v1164_v19, 7  ;;  %v1109_v13 = vmul.f32 %v5072_v24, %v4742_v55  ;;  %v1193_v14 = vor.u32 %v1191_v27, %v5068_v15  ;;  %v352_v54 = vadd.s32 136, %v4614_v1 }
  0x73   : > { %vm860_vm6 = vcmp.lt.s32.totalorder %v462_v46, 15  ;;  %1592 = vrot.lane.b32.xlu0 %v4702_v0, %s4552_s20  ;;  %v1162_v40 = vsel %vm946_vm7, %v4875_v29, %v1161_v2  ;;  %v1209_v0 = vor.u32 %v1207_v39, %v5074_v51  ;;  %v1220_v36 = vshrl.u32 %v4885_v50, 16 }
  0x74   : > { %v1169_v53 = vor.u32 %v1167_v11, %v1166_v58  ;;  %v1178_v18 = vsel %vm946_vm7, %v1166_v58, %v1177_v7  ;;  %v5086_v30 = vsel %vm860_vm6, 1.0, %v6161_v62  ;;  %1299 = vst.msk [vmem:[#allocation2 + $0x10] sm:$0xff] %vm1292_vm9, %v1162_v40  ;;  %v1136_v55 = vpack.c.bf16 %v1109_v13, %v4735_v45 }
  0x75   : > { %1301 = vst.msk [vmem:[#allocation2 + $0x20] sm:$0xff] %vm1292_vm9, %v1178_v18  ;;  %v1113_v12 = vmul.f32 %v5086_v30, %v4781_v44  ;;  %v490_v10 = vand.u32 15, %v352_v54  ;;  %v1223_v7 = vshll.u32 %v4885_v50, 16  ;;  %v356_v52 = vadd.s32 168, %v4614_v1 }
  0x76   : > { %v1170_v29 = vsel %vm946_vm7, %v1158_v43, %v1169_v53  ;;  %v1180_v27 = vshrl.u32 %v1136_v55, 16  ;;  %v1183_v33 = vshll.u32 %v1136_v55, 16  ;;  %v5103_v19 = vrot.slane %v1220_v36, 7 }
  0x77   : > { %1300 = vst.msk [vmem:[#allocation2 + $0x18] sm:$0xff] %vm1292_vm9, %v1170_v29  ;;  %v1138_v45 = vpack.c.bf16 %v1113_v12, %v4778_v41  ;;  %vm864_vm8 = vcmp.lt.s32.totalorder %v490_v10, 15  ;;  %v518_v11 = vand.u32 15, %v356_v52  ;;  %v1236_v43 = vshrl.u32 %v4964_v56, 16 }
  0x78   : > { %v5101_v44 = vsel %vm864_vm8, 1.0, %v6161_v62  ;;  %v1182_v47 = vrot.slane %v1180_v27, 7  ;;  %v1129_v2 = vmul.f32 %v5048_v21, %v4995_v31  ;;  %v1239_v58 = vshll.u32 %v4964_v56, 16  ;;  %v954_v27 = vld [vmem:[#allocation2 + $0x80] sm:$0x80] }
  0x79   : > { %v1196_v46 = vshrl.u32 %v1138_v45, 16  ;;  %v1199_v50 = vshll.u32 %v1138_v45, 16  ;;  %v1117_v39 = vmul.f32 %v5101_v44, %v4826_v48  ;;  %vm868_vm10 = vcmp.lt.s32.totalorder %v518_v11, 15 }
  0x7a   : > { %v5110_v41 = vrot.slane %v1236_v43, 7  ;;  %v1185_v13 = vor.u32 %v1183_v33, %v1182_v47  ;;  %v1194_v54 = vsel %vm946_vm7, %v1182_v47, %v1193_v14  ;;  %v1225_v18 = vor.u32 %v1223_v7, %v5103_v19 }
  0x7b   : > { %v1198_v40 = vrot.slane %v1196_v46, 7  ;;  %v1140_v53 = vpack.c.bf16 %v1117_v39, %v4816_v32  ;;  %1303 = vst.msk [vmem:[#allocation2 + $0x30] sm:$0xff] %vm1292_vm9, %v1194_v54  ;;  %v5118_v48 = vsel %vm868_vm10, 1.0, %v6161_v62  ;;  %v360_v31 = vadd.s32 200, %v4614_v1 }
  0x7c   : > { %v1252_v55 = vshrl.u32 %v4976_v61, 16  ;;  %v1186_v56 = vsel %vm946_vm7, %v5032_v38, %v1185_v13  ;;  %v1121_v29 = vmul.f32 %v5118_v48, %v4869_v23  ;;  %v1241_v36 = vor.u32 %v1239_v58, %v5110_v41 }
  0x7d   : > { %v1201_v12 = vor.u32 %v1199_v50, %v1198_v40  ;;  %v1210_v14 = vsel %vm946_vm7, %v1198_v40, %v1209_v0  ;;  %v1212_v10 = vshrl.u32 %v1140_v53, 16  ;;  %1302 = vst.msk [vmem:[#allocation2 + $0x28] sm:$0xff] %vm1292_vm9, %v1186_v56  ;;  %v1215_v32 = vshll.u32 %v1140_v53, 16 }
  0x7e   : > { %1305 = vst.msk [vmem:[#allocation2 + $0x40] sm:$0xff] %vm1292_vm9, %v1210_v14  ;;  %v546_v1 = vand.u32 15, %v360_v31  ;;  %v1254_v38 = vrot.slane %v1252_v55, 7  ;;  %vm951_vm11 = vcmask 97287   ;;  %v1142_v0 = vpack.c.bf16 %v1121_v29, %v4861_v6 }
  0x7f   : > { %v1202_v7 = vsel %vm946_vm7, %v5068_v15, %v1201_v12  ;;  %v1214_v52 = vrot.slane %v1212_v10, 7  ;;  %vm952_vm13 = vsmask.f32 7966  ;;  %v1146_v33 = vpack.c.bf16 %v1129_v2, %v4988_v63 }
  0x80   : > { %1304 = vst.msk [vmem:[#allocation2 + $0x38] sm:$0xff] %vm1292_vm9, %v1202_v7  ;;  %vm872_vm12 = vcmp.lt.s32.totalorder %v546_v1, 15  ;;  %v1255_v15 = vshll.u32 %v4976_v61, 16  ;;  %vm953_vm14 = vmand %vm951_vm11, %vm952_vm13  ;;  %v1228_v43 = vshrl.u32 %v1142_v0, 16  ;;  %v1231_v47 = vshll.u32 %v1142_v0, 16 }
  0x81   : > { %v1217_v45 = vor.u32 %v1215_v32, %v1214_v52  ;;  %v1226_v23 = vsel %vm946_vm7, %v1214_v52, %v1225_v18  ;;  %v5137_v11 = vsel %vm872_vm12, 1.0, %v6161_v62  ;;  %v955_v46 = vsel %vm953_vm14, 0, %v954_v27 }
  0x82   : > { %1307 = vst.msk [vmem:[#allocation2 + $0x50] sm:$0xff] %vm1292_vm9, %v1226_v23  ;;  %v1125_v6 = vmul.f32 %v5137_v11, %v4926_v42  ;;  %956 = vst [vmem:[#allocation2 + $0x80] sm:$0x80] %v955_v46  ;;  %v1260_v50 = vshrl.u32 %v1146_v33, 16  ;;  %v6174_v62 = vshll.u32 %v4959_v60, 16  ;;  %v1263_v61 = vshll.u32 %v1146_v33, 16 }
  0x83   : > { %v1218_v63 = vsel %vm946_vm7, %v5074_v51, %v1217_v45  ;;  %vm943_vm15 = vcmask 97280   ;;  %v1230_v2 = vrot.slane %v1228_v43, 7  ;;  %v1257_v13 = vor.u32 %v1255_v15, %v1254_v38  ;;  %v5191_v33 = vld [vmem:[%s6127_s1 + $0x10] sm:$0x3f]  }
  0x84   : > { %v1273_v39 = vor.u32 %v6174_v62, %v5043_v37  ;;  %1306 = vst.msk [vmem:[#allocation2 + $0x48] sm:$0xff] %vm1292_vm9, %v1218_v63  ;;  %v1144_v58 = vpack.c.bf16 %v1125_v6, %v4920_v5  ;;  %v1262_v54 = vrot.slane %v1260_v50, 7  ;;  %v4553_v42 = vmov 0  }
  0x85   : > { %944 = vst.msk [vmem:[#allocation2] sm:$0xff] %vm943_vm15, %v4553_v42  ;;  %957 = vst.msk [vmem:[#allocation2 + $0x88] sm:$0xff] %vm943_vm15, %v4553_v42  ;;  %v1233_v51 = vor.u32 %v1231_v47, %v1230_v2  ;;  %v1242_v40 = vsel %vm946_vm7, %v1230_v2, %v1241_v36  ;;  %vm1314_vm1 = vcmask 24576   ;;  %vm1399_vm5 = vcmask 64544  }
  0x86   : > { %v1244_v53 = vshrl.u32 %v1144_v58, 16  ;;  %v1247_v60 = vshll.u32 %v1144_v58, 16  ;;  %1309 = vst.msk [vmem:[#allocation2 + $0x60] sm:$0xff] %vm1292_vm9, %v1242_v40  ;;  %v1274_v18 = vsel %vm946_vm7, %v1262_v54, %v1273_v39  ;;  %v1265_v31 = vor.u32 %v1263_v61, %v1262_v54  ;;  %vm5164_vm2 = vmand %vm1314_vm1, %vm946_vm7 }
  0x87   : > { %v1234_v5 = vsel %vm946_vm7, %v5103_v19, %v1233_v51  ;;  %1313 = vst.msk [vmem:[#allocation2 + $0x80] sm:$0xff] %vm1292_vm9, %v1274_v18  ;;  %vm1648_vm6 = vcmask 97344   ;;  %v1918_v0 = vsel %vm1744_vm3, %v5041_v9, 0  ;;  %vm1643_vm10 = vcmask 97351  }
  0x88   : > { %v1246_v55 = vrot.slane %v1244_v53, 7  ;;  %1308 = vst.msk [vmem:[#allocation2 + $0x58] sm:$0xff] %vm1292_vm9, %v1234_v5  ;;  %v1266_v56 = vsel %vm946_vm7, %v1254_v38, %v1265_v31  ;;  %vm5258_vm8 = vmand %vm1648_vm6, %vm1464_vm4 }
  0x89   : > { %1312 = vst.msk [vmem:[#allocation2 + $0x78] sm:$0xff] %vm1292_vm9, %v1266_v56  ;;  %vm5267_vm11 = vmand %vm1643_vm10, %vm952_vm13 }
  0x8a   : > { %v1249_v12 = vor.u32 %v1247_v60, %v1246_v55  ;;  %v1258_v14 = vsel %vm946_vm7, %v1246_v55, %v1257_v13 }
  0x8b   : > { %1311 = vst.msk [vmem:[#allocation2 + $0x70] sm:$0xff] %vm1292_vm9, %v1258_v14 }
  0x8c   : > { %v1250_v19 = vsel %vm946_vm7, %v5110_v41, %v1249_v12  ;;  %v1316_v32 = vld [vmem:[#allocation2 + $0x88] sm:$0x1] }
  0x8d   : > { %1310 = vst.msk [vmem:[#allocation2 + $0x68] sm:$0xff] %vm1292_vm9, %v1250_v19  ;;  %v1317_v29 = vsel %vm5164_vm2, %v5043_v37, %v1316_v32 }
  0x8e   : > { %1318 = vst [vmem:[#allocation2 + $0x88] sm:$0x1] %v1317_v29  ;;  %v1352_v36 = vpop.permute.xlu0 %1351 }
  0x8f   : > { %1400 = vst.msk [vmem:[#allocation2 + $0x8] sm:$0xff] %vm1399_vm5, %v1352_v36 }
  0x92   : > { %v1354_v1 = vpop.permute.xlu0 %1353 }
  0x93   : > { %1401 = vst.msk [vmem:[#allocation2 + $0x10] sm:$0xff] %vm1399_vm5, %v1354_v1 }
  0x96   : > { %v1356_v7 = vpop.permute.xlu0 %1355  ;;  %v1595_v52 = vpop.permute.xlu1 %1594 }
  0x97   : > { %1402 = vst.msk [vmem:[#allocation2 + $0x18] sm:$0xff] %vm1399_vm5, %v1356_v7  ;;  %v6177_v7 = vmov 0 }
  0x98   : > { %1649 = vst.msk [vmem:[#allocation2 + $0x8] sm:$0xff] %vm1648_vm6, %v1595_v52  ;;  %v6178_v7 = vsel %vm5258_vm8, 4294967295, %v6177_v7 }
  0x99   : > { %6179 = vst [vmem:[#allocation15_spill] sm:$0xff] %v6178_v7 }
  0x9a   : > { %v1597_v41 = vpop.permute.xlu1 %1596 }
  0x9b   : > { %1650 = vst.msk [vmem:[#allocation2 + $0x10] sm:$0xff] %vm1648_vm6, %v1597_v41 }
  0x9e   : > { %v1358_v38 = vpop.permute.xlu1 %1357 }
  0x9f   : > { %v5180_v27 = vld [vmem:[#allocation2 + $0x8] sm:$0xff]  ;;  %1403 = vst.msk [vmem:[#allocation2 + $0x20] sm:$0xff] %vm1399_vm5, %v1358_v38  ;;  %v1599_v37 = vpop.permute.xlu0 %1598 }
  0xa0   : > { %4188 = vmatprep.mubr.msk.bf16.mxu0 %vm943_vm15, %v5180_v27  ;;  %1651 = vst.msk [vmem:[#allocation2 + $0x18] sm:$0xff] %vm1648_vm6, %v1599_v37 }
  0xa2   : > { %v5193_v45 = vld [vmem:[#allocation2 + $0x10] sm:$0xff] }
  0xa3   : > { %v1360_v23 = vpop.permute.xlu0 %1359  ;;  %4189 = vmatmul.mubr.msk.bf16.vlgmr.msra.gmra.mrb[0].mxu0 %vm943_vm15, %v5193_v45 }
  0xa4   : > { %v1601_v15 = vpop.permute.xlu1 %1600  ;;  %1404 = vst.msk [vmem:[#allocation2 + $0x28] sm:$0xff] %vm1399_vm5, %v1360_v23  ;;  %4221 = vmatpush3.bf16.msra.mxu0 %v1918_v0  ;;  %v6180_v23 = vmov 0 }
  0xa5   : > { %1652 = vst.msk [vmem:[#allocation2 + $0x20] sm:$0xff] %vm1648_vm6, %v1601_v15  ;;  %4520 = vmatprep.subr.msk.bf16.mxu0 %vm1744_vm3, %v5191_v33  ;;  %v6181_v23 = vsel %vm5267_vm11, 4294967295, %v6180_v23  ;;  %v1645_v15 = vld [vmem:[#allocation2] sm:$0x80] }
  0xa6   : > { %6182 = vst [vmem:[#allocation16_spill] sm:$0xff] %v6181_v23 }
  0xa7   : > { %v5201_v9 = vld [vmem:[#allocation2 + $0x18] sm:$0xff] }
  0xa8   : > { %v1362_v43 = vpop.permute.xlu1 %1361  ;;  %4192 = vmatprep.mubr.msk.bf16.mxu0 %vm943_vm15, %v5201_v9 }
  0xa9   : > { %1405 = vst.msk [vmem:[#allocation2 + $0x30] sm:$0xff] %vm1399_vm5, %v1362_v43  ;;  %v1603_v47 = vpop.permute.xlu0 %1602 }
  0xaa   : > { %1653 = vst.msk [vmem:[#allocation2 + $0x28] sm:$0xff] %vm1648_vm6, %v1603_v47 }
  0xac   : > { %v5207_v6 = vld [vmem:[#allocation2 + $0x20] sm:$0xff] }
  0xad   : > { %v1364_v46 = vpop.permute.xlu0 %1363  ;;  %4193 = vmatmul.mubr.msk.bf16.gmra.mrb[4].mxu0 %vm943_vm15, %v5207_v6 }
  0xae   : > { %v1605_v63 = vpop.permute.xlu1 %1604  ;;  %1406 = vst.msk [vmem:[#allocation2 + $0x38] sm:$0xff] %vm1399_vm5, %v1364_v46 }
  0xaf   : > { %1654 = vst.msk [vmem:[#allocation2 + $0x30] sm:$0xff] %vm1648_vm6, %v1605_v63 }
  0xb1   : > { %v5213_v50 = vld [vmem:[#allocation2 + $0x28] sm:$0xff] }
  0xb2   : > { %v1366_v62 = vpop.permute.xlu1 %1365  ;;  %4196 = vmatprep.mubr.msk.bf16.mxu0 %vm943_vm15, %v5213_v50 }
  0xb3   : > { %1407 = vst.msk [vmem:[#allocation2 + $0x40] sm:$0xff] %vm1399_vm5, %v1366_v62 }
  0xb4   : > { %v1607_v39 = vpop.permute.xlu0 %1606 }
  0xb5   : > { %1655 = vst.msk [vmem:[#allocation2 + $0x38] sm:$0xff] %vm1648_vm6, %v1607_v39  ;;  %v2154_v39 = vsel %vm1744_vm3, %v5191_v33, 0  ;;  %v5332_v33 = vld [vmem:[%s6131_s5] ss:$0 sm:$0xff] }
  0xb6   : > { %v5219_v61 = vld [vmem:[#allocation2 + $0x30] sm:$0xff] }
  0xb7   : > { %v1609_v2 = vpop.permute.xlu1 %1608  ;;  %4197 = vmatmul.mubr.msk.bf16.gmra.mrb[8].mxu0 %vm943_vm15, %v5219_v61 }
  0xb8   : > { %1656 = vst.msk [vmem:[#allocation2 + $0x40] sm:$0xff] %vm1648_vm6, %v1609_v2  ;;  %v1368_v58 = vpop.permute.xlu0 %1367 }
  0xb9   : > { %1408 = vst.msk [vmem:[#allocation2 + $0x48] sm:$0xff] %vm1399_vm5, %v1368_v58 }
  0xbb   : > { %v1370_v13 = vpop.permute.xlu1 %1369 }
  0xbc   : > { %1409 = vst.msk [vmem:[#allocation2 + $0x50] sm:$0xff] %vm1399_vm5, %v1370_v13  ;;  %v5226_v54 = vld [vmem:[#allocation2 + $0x38] sm:$0xff] }
  0xbd   : > { %4200 = vmatprep.mubr.msk.bf16.mxu0 %vm943_vm15, %v5226_v54 }
  0xbe   : > { %v1611_v42 = vpop.permute.xlu0 %1610 }
  0xbf   : > { %1657 = vst.msk [vmem:[#allocation2 + $0x48] sm:$0xff] %vm1648_vm6, %v1611_v42  ;;  %v5231_v51 = vld [vmem:[#allocation2 + $0x40] sm:$0xff] }
  0xc0   : > { %4201 = vmatmul.mubr.msk.bf16.gmra.mrb[12].mxu0 %vm943_vm15, %v5231_v51 }
  0xc2   : > { %v1613_v40 = vpop.permute.xlu1 %1612  ;;  %v1372_v53 = vpop.permute.xlu0 %1371 }
  0xc3   : > { %1658 = vst.msk [vmem:[#allocation2 + $0x50] sm:$0xff] %vm1648_vm6, %v1613_v40 }
  0xc4   : > { %1410 = vst.msk [vmem:[#allocation2 + $0x58] sm:$0xff] %vm1399_vm5, %v1372_v53 }
  0xc6   : > { %v1374_v60 = vpop.permute.xlu1 %1373  ;;  %v5237_v18 = vld [vmem:[#allocation2 + $0x48] sm:$0xff] }
  0xc7   : > { %1411 = vst.msk [vmem:[#allocation2 + $0x60] sm:$0xff] %vm1399_vm5, %v1374_v60  ;;  %4204 = vmatprep.mubr.msk.bf16.mxu0 %vm943_vm15, %v5237_v18 }
  0xc9   : > { %v1615_v31 = vpop.permute.xlu0 %1614 }
  0xca   : > { %1659 = vst.msk [vmem:[#allocation2 + $0x58] sm:$0xff] %vm1648_vm6, %v1615_v31  ;;  %v5243_v5 = vld [vmem:[#allocation2 + $0x50] sm:$0xff] }
  0xcb   : > { %4205 = vmatmul.mubr.msk.bf16.gmra.mrb[16].mxu0 %vm943_vm15, %v5243_v5 }
  0xcd   : > { %v1376_v55 = vpop.permute.xlu0 %1375 }
  0xce   : > { %1412 = vst.msk [vmem:[#allocation2 + $0x68] sm:$0xff] %vm1399_vm5, %v1376_v55 }
  0xcf   : > { %v1617_v56 = vpop.permute.xlu1 %1616 }
  0xd0   : > { %1660 = vst.msk [vmem:[#allocation2 + $0x60] sm:$0xff] %vm1648_vm6, %v1617_v56 }
  0xd1   : > { %v1382_v12 = vpop.permute.xlu0 %1381  ;;  %v1680_v14 = vld [vmem:[#allocation2 + $0x58] sm:$0xff] }
  0xd2   : > { %1415 = vst.msk [vmem:[#allocation2 + $0x80] sm:$0xff] %vm1399_vm5, %v1382_v12  ;;  %4208 = vmatprep.mubr.msk.bf16.mxu0 %vm943_vm15, %v1680_v14 }
  0xd3   : > { %v1378_v19 = vpop.permute.xlu1 %1377 }
  0xd4   : > { %1413 = vst.msk [vmem:[#allocation2 + $0x70] sm:$0xff] %vm1399_vm5, %v1378_v19 }
  0xd7   : > { %v1681_v32 = vld [vmem:[#allocation2 + $0x60] sm:$0xff] }
  0xd8   : > { %4209 = vmatmul.mubr.msk.bf16.gmra.mrb[20].mxu0 %vm943_vm15, %v1681_v32 }
  0xd9   : > { %v1666_v38 = vld [vmem:[#allocation2 + $0x80] sm:$0xff] }
  0xda   : > { %v1619_v29 = vpop.permute.xlu1 %1618 }
  0xdb   : > { %1661 = vst.msk [vmem:[#allocation2 + $0x68] sm:$0xff] %vm1648_vm6, %v1619_v29 }
  0xdd   : > { %v1621_v36 = vpop.permute.xlu0 %1620 }
  0xde   : > { %1662 = vst.msk [vmem:[#allocation2 + $0x70] sm:$0xff] %vm1648_vm6, %v1621_v36  ;;  %v1380_v1 = vpop.permute.xlu1 %1379 }
  0xdf   : > { %1414 = vst.msk [vmem:[#allocation2 + $0x78] sm:$0xff] %vm1399_vm5, %v1380_v1 }
  0xe1   : > { %v1623_v52 = vpop.permute.xlu0 %1622 }
  0xe2   : > { %v1625_v41 = vpop.permute.xlu1 %1624  ;;  %1663 = vst.msk [vmem:[#allocation2 + $0x78] sm:$0xff] %vm1648_vm6, %v1623_v52  ;;  %v1682_v37 = vld [vmem:[#allocation2 + $0x68] sm:$0xff] }
  0xe3   : > { %v1667_v0 = vsel %vm5258_vm8, %v1625_v41, %v1666_v38  ;;  %4212 = vmatprep.mubr.msk.bf16.mxu0 %vm943_vm15, %v1682_v37 }
  0xe4   : > { %1668 = vst [vmem:[#allocation2 + $0x80] sm:$0xff] %v1667_v0 }
  0xe5   : > { %v1683_v43 = vld [vmem:[#allocation2 + $0x70] sm:$0xff]  ;;  %v1593_v47 = vpop.permute.xlu0 %1592 }
  0xe6   : > { %4213 = vmatmul.mubr.msk.bf16.gmra.mrb[24].mxu0 %vm943_vm15, %v1683_v43  ;;  %v1646_v46 = vsel %vm5267_vm11, %v1593_v47, %v1645_v15 }
  0xe7   : > { %1647 = vst [vmem:[#allocation2] sm:$0x80] %v1646_v46 }
  0xe9   : > { %v1684_v63 = vld [vmem:[#allocation2 + $0x78] sm:$0xff] }
  0xea   : > { %4216 = vmatprep.mubr.msk.bf16.mxu0 %vm943_vm15, %v1684_v63 }
  0xee   : > { %4217 = vmatmul.mubr.msk.bf16.gmra.mrb[28].mxu0 %vm943_vm15, %v1667_v0  ;;  %v1669_v62 = vld [vmem:[#allocation2] sm:$0xff] }
  0xef   : > { %4222 = vmatprep.mubr.msk.bf16.mxu0 %vm943_vm15, %v1669_v62 }
  0xf6   : > { %4223 = vmatmul.mubr.msk.bf16.vlgmr.msra.gmra.mrb[0].mxu0 %vm943_vm15, %v5180_v27  ;;  %v2096_v27 = vld [vmem:[#allocation2 + $0x88] sm:$0xff] }
  0xf7   : > { %4255 = vmatpush3.bf16.msra.mxu0 %v2154_v39  ;;  %4226 = vmatprep.mubr.msk.bf16.mxu0 %vm943_vm15, %v5193_v45 }
  0xfe   : > { %4227 = vmatmul.mubr.msk.bf16.gmra.mrb[4].mxu0 %vm943_vm15, %v5201_v9 }
  0xff   : > { %4230 = vmatprep.mubr.msk.bf16.mxu0 %vm943_vm15, %v5207_v6 }
 0x106   : > { %4231 = vmatmul.mubr.msk.bf16.gmra.mrb[8].mxu0 %vm943_vm15, %v5213_v50 }
 0x107   : > { %4234 = vmatprep.mubr.msk.bf16.mxu0 %vm943_vm15, %v5219_v61 }
 0x10e   : > { %4235 = vmatmul.mubr.msk.bf16.gmra.mrb[12].mxu0 %vm943_vm15, %v5226_v54 }
 0x10f   : > { %4238 = vmatprep.mubr.msk.bf16.mxu0 %vm943_vm15, %v5231_v51 }
 0x116   : > { %4239 = vmatmul.mubr.msk.bf16.gmra.mrb[16].mxu0 %vm943_vm15, %v5237_v18 }
 0x117   : > { %4242 = vmatprep.mubr.msk.bf16.mxu0 %vm943_vm15, %v5243_v5 }
 0x11e   : > { %4243 = vmatmul.mubr.msk.bf16.gmra.mrb[20].mxu0 %vm943_vm15, %v1680_v14 }
 0x11f   : > { %4246 = vmatprep.mubr.msk.bf16.mxu0 %vm943_vm15, %v1681_v32 }
 0x126   : > { %4247 = vmatmul.mubr.msk.bf16.gmra.mrb[24].mxu0 %vm943_vm15, %v1682_v37 }
 0x127   : > { %4250 = vmatprep.mubr.msk.bf16.mxu0 %vm943_vm15, %v1683_v43 }
 0x12e   : > { %4251 = vmatmul.mubr.msk.bf16.gmra.mrb[28].mxu0 %vm943_vm15, %v1684_v63 }
 0x12f   : > { %4256 = vmatprep.mubr.msk.bf16.mxu0 %vm943_vm15, %v5193_v45 }
 0x136   : > { %4257 = vmatmul.mubr.msk.bf16.vlgmr.msra.gmra.mrb[0].mxu0 %vm943_vm15, %v5201_v9  ;;  %v5337_v9 = vld [vmem:[%s6132_s6] ss:$0 sm:$0xff] }
 0x137   : > { %4260 = vmatprep.mubr.msk.bf16.mxu0 %vm943_vm15, %v5207_v6 }
 0x13e   : > { %4261 = vmatmul.mubr.msk.bf16.gmra.mrb[4].mxu0 %vm943_vm15, %v5213_v50 }
 0x13f   : > { %4264 = vmatprep.mubr.msk.bf16.mxu0 %vm943_vm15, %v5219_v61 }
 0x146   : > { %4265 = vmatmul.mubr.msk.bf16.gmra.mrb[8].mxu0 %vm943_vm15, %v5226_v54 }
 0x147   : > { %4268 = vmatprep.mubr.msk.bf16.mxu0 %vm943_vm15, %v5231_v51 }
 0x14e   : > { %4269 = vmatmul.mubr.msk.bf16.gmra.mrb[12].mxu0 %vm943_vm15, %v5237_v18 }
 0x14f   : > { %4272 = vmatprep.mubr.msk.bf16.mxu0 %vm943_vm15, %v5243_v5 }
 0x156   : > { %4273 = vmatmul.mubr.msk.bf16.gmra.mrb[16].mxu0 %vm943_vm15, %v1680_v14 }
 0x157   : > { %4276 = vmatprep.mubr.msk.bf16.mxu0 %vm943_vm15, %v1681_v32 }
 0x15e   : > { %4277 = vmatmul.mubr.msk.bf16.gmra.mrb[20].mxu0 %vm943_vm15, %v1682_v37 }
 0x15f   : > { %4280 = vmatprep.mubr.msk.bf16.mxu0 %vm943_vm15, %v1683_v43 }
 0x166   : > { %4281 = vmatmul.mubr.msk.bf16.gmra.mrb[24].mxu0 %vm943_vm15, %v1684_v63 }
 0x167   : > { %4284 = vmatprep.mubr.msk.bf16.mxu0 %vm943_vm15, %v1667_v0 }
 0x16e   : > { %4285 = vmatmul.mubr.msk.bf16.gmra.mrb[28].mxu0 %vm943_vm15, %v2096_v27 }
 0x209   : > { %v4258_v45 = vpop.f32.mrb[0].mxu0 }
 0x20a   : > { %v2358_v6 = vmul.f32 %v4258_v45, %v5332_v33  ;;  %v2190_v50 = vpop.f32.mrb[1].mxu0 }
 0x20b   : > { %v2356_v61 = vmul.f32 %v5332_v33, %v2190_v50  ;;  %v4259_v2 = vpop.f32.mrb[2].mxu0 }
 0x20c   : > { %v2397_v58 = vadd.f32 %v5337_v9, %v2358_v6  ;;  %v2359_v13 = vmul.f32 %v4259_v2, %v5332_v33  ;;  %v2193_v54 = vpop.f32.mrb[3].mxu0 }
 0x20d   : > { %v2395_v42 = vadd.f32 %v5337_v9, %v2356_v61  ;;  %v2357_v51 = vmul.f32 %v5332_v33, %v2193_v54 }
 0x20e   : > { %v2429_v40 = vmax.f32 %v2397_v58, 0.0  ;;  %v2398_v53 = vadd.f32 %v5337_v9, %v2359_v13 }
 0x20f   : > { %v2427_v60 = vmax.f32 %v2395_v42, 0.0  ;;  %v2396_v18 = vadd.f32 %v5337_v9, %v2357_v51 }
 0x210   : > { %v2770_v31 = vmul.f32 %v4661_v28, %v2429_v40  ;;  %v2430_v5 = vmax.f32 %v2398_v53, 0.0 }
 0x211   : > { %v2768_v55 = vmul.f32 %v4646_v16, %v2427_v60  ;;  %v2428_v56 = vmax.f32 %v2396_v18, 0.0  ;;  %v4262_v12 = vpop.f32.mrb[4].mxu0 }
 0x212   : > { %v2462_v14 = vmul.f32 %v5025_v3, %v2430_v5  ;;  %v5350_v19 = vpack.c.bf16 %v2430_v5, %v2770_v31  ;;  %v2362_v32 = vmul.f32 %v4262_v12, %v5332_v33  ;;  %v2206_v29 = vpop.f32.mrb[5].mxu0  ;;  %v2673_v36 = vpack.c.bf16 %v2430_v5, %v2429_v40 }
 0x213   : > { %v2460_v1 = vmul.f32 %v4656_v25, %v2428_v56  ;;  %v2800_v52 = vpack.c.bf16 %v2428_v56, %v2768_v55  ;;  %v2360_v41 = vmul.f32 %v5332_v33, %v2206_v29  ;;  %v4263_v38 = vpop.f32.mrb[6].mxu0  ;;  %v2672_v28 = vpack.c.bf16 %v2428_v56, %v2427_v60 }
 0x214   : > { %v2492_v37 = vpack.c.bf16 %v2462_v14, %v2429_v40  ;;  %v2401_v16 = vadd.f32 %v5337_v9, %v2362_v32  ;;  %v2363_v0 = vmul.f32 %v4263_v38, %v5332_v33  ;;  %2706 = vrot.lane.b32.xlu0 %v2673_v36, %s4551_s19  ;;  %v2209_v3 = vpop.f32.mrb[7].mxu0  ;;  %v2824_v6 = vshll.u32 %v5350_v19, 16 }
 0x215   : > { %v5358_v15 = vpack.c.bf16 %v2460_v1, %v2427_v60  ;;  %v2399_v43 = vadd.f32 %v5337_v9, %v2360_v41  ;;  %v2361_v47 = vmul.f32 %v5332_v33, %v2209_v3  ;;  %2704 = vrot.lane.b32.xlu1 %v2672_v28, %s4551_s19  ;;  %v2817_v25 = vshll.u32 %v2800_v52, 16 }
 0x216   : > { %v2515_v46 = vshrl.u32 %v2492_v37, 16  ;;  %v5363_v63 = vmax.f32 %v2401_v16, 0.0  ;;  %v2402_v62 = vadd.f32 %v5337_v9, %v2363_v0  ;;  %v2518_v39 = vshll.u32 %v2492_v37, 16 }
 0x217   : > { %v5366_v27 = vmax.f32 %v2399_v43, 0.0  ;;  %v2400_v45 = vadd.f32 %v5337_v9, %v2361_v47  ;;  %v2508_v50 = vshrl.u32 %v5358_v15, 16  ;;  %v5375_v58 = vrot.slane %v2817_v25, 1  ;;  %v5412_v25 = vld [vmem:[%s6128_s2 + $0x8] sm:$0x3f]  }
 0x218   : > { %v2774_v61 = vmul.f32 %v4718_v26, %v5363_v63  ;;  %v5373_v2 = vmax.f32 %v2402_v62, 0.0  ;;  %v2820_v40 = vshrl.u32 %v2800_v52, 16  ;;  %v5380_v53 = vrot.slane %v2515_v46, 7  ;;  %4521 = vmatprep.subr.msk.bf16.mxu1 %vm1744_vm3, %v5412_v25 }
 0x219   : > { %6183 = vst [vmem:[#allocation17_spill] sm:$0xff] %v5375_v58  ;;  %v2772_v54 = vmul.f32 %v4667_v34, %v5366_v27  ;;  %v2432_v42 = vmax.f32 %v2400_v45, 0.0  ;;  %v4266_v51 = vpop.f32.mrb[8].mxu0  ;;  %v2826_v29 = vrot.slane %v2824_v6, 1  ;;  %v5398_v38 = vrot.slane %v2508_v50, 7 }
 0x21a   : > { %v2466_v60 = vmul.f32 %v4698_v59, %v5373_v2  ;;  %v5385_v18 = vpack.c.bf16 %v5373_v2, %v2774_v61  ;;  %v2366_v26 = vmul.f32 %v4266_v51, %v5332_v33  ;;  %v2222_v31 = vpop.f32.mrb[9].mxu0  ;;  %v2822_v12 = vor.u32 %v2820_v40, %v5375_v58 }
 0x21b   : > { %v2464_v5 = vmul.f32 %v5030_v4, %v2432_v42  ;;  %v2802_v55 = vpack.c.bf16 %v2432_v42, %v2772_v54  ;;  %v2364_v56 = vmul.f32 %v5332_v33, %v2222_v31  ;;  %v4267_v34 = vpop.f32.mrb[10].mxu0  ;;  %v2674_v41 = vpack.c.bf16 %v2432_v42, %v5366_v27 }
 0x21c   : > { %v2494_v14 = vpack.c.bf16 %v2466_v60, %v5363_v63  ;;  %v2405_v32 = vadd.f32 %v5337_v9, %v2366_v26  ;;  %v2367_v59 = vmul.f32 %v4267_v34, %v5332_v33  ;;  %v2225_v36 = vpop.f32.mrb[11].mxu0  ;;  %v5404_v0 = vor.u32 %v2518_v39, %v5380_v53 }
 0x21d   : > { %v2493_v1 = vpack.c.bf16 %v2464_v5, %v5366_v27  ;;  %v2403_v52 = vadd.f32 %v5337_v9, %v2364_v56  ;;  %v2365_v4 = vmul.f32 %v5332_v33, %v2225_v36  ;;  %v2827_v47 = vsel %vm1464_vm4, %v2822_v12, %v2826_v29 }
 0x21e   : > { %v2531_v28 = vshrl.u32 %v2494_v14, 16  ;;  %v5400_v37 = vmax.f32 %v2405_v32, 0.0  ;;  %v2406_v16 = vadd.f32 %v5337_v9, %v2367_v59  ;;  %v2534_v46 = vshll.u32 %v2494_v14, 16  ;;  %2945 = vrot.lane.b32.xlu1 %v2827_v47, %s4552_s20 }
 0x21f   : > { %v2523_v3 = vshrl.u32 %v2493_v1, 16  ;;  %v5406_v43 = vmax.f32 %v2403_v52, 0.0  ;;  %v2404_v39 = vadd.f32 %v5337_v9, %v2365_v4  ;;  %v2526_v45 = vshll.u32 %v2493_v1, 16 }
 0x220   : > { %v2778_v62 = vmul.f32 %v4760_v17, %v5400_v37  ;;  %v5416_v27 = vmax.f32 %v2406_v16, 0.0  ;;  %v2828_v61 = vshrl.u32 %v5350_v19, 16  ;;  %v2832_v54 = vshll.u32 %v2802_v55, 16 }
 0x221   : > { %v2776_v6 = vmul.f32 %v4728_v35, %v5406_v43  ;;  %v4270_v50 = vpop.f32.mrb[12].mxu0  ;;  %v5425_v42 = vrot.slane %v2531_v28, 7  ;;  %v5432_v40 = vmax.f32 %v2404_v39, 0.0  ;;  %v5434_v26 = vrot.slane %v2523_v3, 7 }
 0x222   : > { %v2470_v17 = vmul.f32 %v4747_v57, %v5416_v27  ;;  %v5430_v51 = vpack.c.bf16 %v5416_v27, %v2778_v62  ;;  %v2238_v60 = vpop.f32.mrb[13].mxu0  ;;  %v2370_v35 = vmul.f32 %v4270_v50, %v5332_v33  ;;  %v2830_v19 = vor.u32 %v2828_v61, %v2826_v29  ;;  %2708 = vrot.lane.b32.xlu1 %v2674_v41, %s4551_s19 }
 0x223   : > { %v2834_v31 = vrot.slane %v2832_v54, 1  ;;  %v4271_v5 = vpop.f32.mrb[14].mxu0  ;;  %v2468_v34 = vmul.f32 %v5072_v24, %v5432_v40  ;;  %v5441_v57 = vpack.c.bf16 %v5432_v40, %v2776_v6  ;;  %v2368_v12 = vmul.f32 %v5332_v33, %v2238_v60 }
 0x224   : > { %v2496_v56 = vpack.c.bf16 %v2470_v17, %v5400_v37  ;;  %v2241_v14 = vpop.f32.mrb[15].mxu0  ;;  %v2409_v32 = vadd.f32 %v5337_v9, %v2370_v35  ;;  %v2371_v29 = vmul.f32 %v4271_v5, %v5332_v33  ;;  %v2836_v36 = vshrl.u32 %v2802_v55, 16 }
 0x225   : > { %v2835_v59 = vsel %vm1464_vm4, %v2830_v19, %v2834_v31  ;;  %v5449_v1 = vor.u32 %v2534_v46, %v5425_v42  ;;  %v2495_v24 = vpack.c.bf16 %v2468_v34, %v5406_v43  ;;  %v2407_v4 = vadd.f32 %v5337_v9, %v2368_v12 }
 0x226   : > { %v2547_v52 = vshrl.u32 %v2496_v56, 16  ;;  %2947 = vrot.lane.b32.xlu0 %v2835_v59, %s4552_s20  ;;  %v5454_v41 = vmax.f32 %v2409_v32, 0.0  ;;  %v2410_v28 = vadd.f32 %v5337_v9, %v2371_v29  ;;  %v2838_v16 = vor.u32 %v2836_v36, %v2834_v31 }
 0x227   : > { %v2840_v3 = vshll.u32 %v5385_v18, 16  ;;  %v5459_v47 = vor.u32 %v2526_v45, %v5434_v26  ;;  %v2550_v55 = vshll.u32 %v2496_v56, 16  ;;  %v2539_v46 = vshrl.u32 %v2495_v24, 16 }
 0x228   : > { %v5461_v62 = vmax.f32 %v2407_v4, 0.0  ;;  %v2782_v39 = vmul.f32 %v4808_v20, %v5454_v41  ;;  %v5465_v6 = vmax.f32 %v2410_v28, 0.0  ;;  %v2369_v61 = vmul.f32 %v5332_v33, %v2241_v14 }
 0x229   : > { %v2842_v50 = vrot.slane %v2840_v3, 1  ;;  %v4274_v54 = vpop.f32.mrb[16].mxu0  ;;  %v5468_v17 = vrot.slane %v2547_v52, 7  ;;  %v5470_v60 = vrot.slane %v2539_v46, 7  ;;  %v2675_v35 = vpack.c.bf16 %v5373_v2, %v5363_v63 }
 0x22a   : > { %v2780_v45 = vmul.f32 %v4766_v22, %v5461_v62  ;;  %v2254_v19 = vpop.f32.mrb[17].mxu0  ;;  %v2474_v20 = vmul.f32 %v4801_v8, %v5465_v6  ;;  %v5479_v31 = vpack.c.bf16 %v5465_v6, %v2782_v39  ;;  %v2408_v56 = vadd.f32 %v5337_v9, %v2369_v61 }
 0x22b   : > { %v2843_v5 = vsel %vm1464_vm4, %v2838_v16, %v2842_v50  ;;  %v4275_v34 = vpop.f32.mrb[18].mxu0  ;;  %v2542_v12 = vshll.u32 %v2495_v24, 16  ;;  %2710 = vrot.lane.b32.xlu0 %v2675_v35, %s4551_s19  ;;  %v2676_v22 = vpack.c.bf16 %v5432_v40, %v5406_v43  ;;  %v2374_v63 = vmul.f32 %v4274_v54, %v5332_v33 }
 0x22c   : > { %2949 = vrot.lane.b32.xlu1 %v2843_v5, %s4552_s20  ;;  %v2844_v8 = vshrl.u32 %v5385_v18, 16  ;;  %v2257_v2 = vpop.f32.mrb[19].mxu0  ;;  %v5490_v14 = vpack.c.bf16 %v2474_v20, %v5454_v41  ;;  %v5492_v32 = vmax.f32 %v2408_v56, 0.0  ;;  %v2848_v59 = vshll.u32 %v5441_v57, 16 }
 0x22d   : > { %v2372_v29 = vmul.f32 %v5332_v33, %v2254_v19  ;;  %v5497_v36 = vor.u32 %v2550_v55, %v5468_v17  ;;  %v5500_v52 = vor.u32 %v2542_v12, %v5470_v60  ;;  %v2413_v43 = vadd.f32 %v5337_v9, %v2374_v63 }
 0x22e   : > { %v2375_v18 = vmul.f32 %v4275_v34, %v5332_v33  ;;  %v2563_v40 = vshrl.u32 %v5490_v14, 16  ;;  %v2472_v24 = vmul.f32 %v5086_v30, %v5492_v32  ;;  %v5508_v4 = vpack.c.bf16 %v5492_v32, %v2780_v45 }
 0x22f   : > { %v2846_v28 = vor.u32 %v2844_v8, %v2842_v50  ;;  %v5511_v16 = vmax.f32 %v2413_v43, 0.0  ;;  %v2850_v3 = vrot.slane %v2848_v59, 1  ;;  %v2411_v55 = vadd.f32 %v5337_v9, %v2372_v29  ;;  %v6184_v50 = vld [vmem:[#allocation5_spill] sm:$0xff] }
 0x230   : > { %2712 = vrot.lane.b32.xlu1 %v2676_v22, %s4551_s19  ;;  %v2414_v46 = vadd.f32 %v5337_v9, %v2375_v18  ;;  %v2497_v39 = vpack.c.bf16 %v2472_v24, %v5461_v62  ;;  %v2852_v61 = vshrl.u32 %v5441_v57, 16  ;;  %v2856_v54 = vshll.u32 %v5430_v51, 16  ;;  %v6186_v24 = vld [vmem:[#allocation3_spill] sm:$0xff] }
 0x231   : > { %v2373_v30 = vmul.f32 %v5332_v33, %v2257_v2  ;;  %v4278_v45 = vpop.f32.mrb[20].mxu0  ;;  %v2786_v35 = vmul.f32 %v6184_v50, %v5511_v16  ;;  %v2851_v19 = vsel %vm1464_vm4, %v2846_v28, %v2850_v3  ;;  %v5522_v20 = vmax.f32 %v2411_v55, 0.0  ;;  %v6185_v2 = vld [vmem:[#allocation4_spill] sm:$0xff] }
 0x232   : > { %v5524_v5 = vmax.f32 %v2414_v46, 0.0  ;;  %v2270_v56 = vpop.f32.mrb[21].mxu0  ;;  %v5526_v34 = vrot.slane %v2563_v40, 7  ;;  %v2566_v12 = vshll.u32 %v5490_v14, 16  ;;  %v2555_v57 = vshrl.u32 %v2497_v39, 16  ;;  %2951 = vrot.lane.b32.xlu0 %v2851_v19, %s4552_s20 }
 0x233   : > { %v2854_v22 = vor.u32 %v2852_v61, %v2850_v3  ;;  %v4279_v63 = vpop.f32.mrb[22].mxu0  ;;  %v2558_v8 = vshll.u32 %v2497_v39, 16  ;;  %v2858_v43 = vrot.slane %v2856_v54, 1  ;;  %v2784_v40 = vmul.f32 %v6186_v24, %v5522_v20 }
 0x234   : > { %v2478_v59 = vmul.f32 %v6185_v2, %v5524_v5  ;;  %v5533_v29 = vpack.c.bf16 %v5524_v5, %v2786_v35  ;;  %v2273_v18 = vpop.f32.mrb[23].mxu0  ;;  %v2412_v28 = vadd.f32 %v5337_v9, %v2373_v30  ;;  %v2677_v14 = vpack.c.bf16 %v5416_v27, %v5400_v37 }
 0x235   : > { %v2678_v3 = vpack.c.bf16 %v5492_v32, %v5461_v62  ;;  %v2859_v46 = vsel %vm1464_vm4, %v2854_v22, %v2858_v43  ;;  %v2378_v39 = vmul.f32 %v4278_v45, %v5332_v33  ;;  %v2860_v61 = vshrl.u32 %v5430_v51, 16 }
 0x236   : > { %v2500_v55 = vpack.c.bf16 %v2478_v59, %v5511_v16  ;;  %v5546_v54 = vrot.slane %v2555_v57, 7  ;;  %2953 = vrot.lane.b32.xlu1 %v2859_v46, %s4552_s20  ;;  %v5549_v50 = vmax.f32 %v2412_v28, 0.0  ;;  %2714 = vrot.lane.b32.xlu0 %v2677_v14, %s4551_s19  ;;  %v2864_v37 = vshll.u32 %v5508_v4, 16 }
 0x237   : > { %v2376_v27 = vmul.f32 %v5332_v33, %v2270_v56  ;;  %v2417_v30 = vadd.f32 %v5337_v9, %v2378_v39  ;;  %v2862_v35 = vor.u32 %v2860_v61, %v2858_v43  ;;  %v2379_v56 = vmul.f32 %v4279_v63, %v5332_v33  ;;  %v6187_v39 = vld [vmem:[#allocation8_spill] sm:$0xff] }
 0x238   : > { %v2579_v62 = vshrl.u32 %v2500_v55, 16  ;;  %v2582_v32 = vshll.u32 %v2500_v55, 16  ;;  %v2476_v51 = vmul.f32 %v5101_v44, %v5549_v50  ;;  %v5558_v45 = vpack.c.bf16 %v5549_v50, %v2784_v40 }
 0x239   : > { %v2866_v19 = vrot.slane %v2864_v37, 1  ;;  %v2415_v57 = vadd.f32 %v5337_v9, %v2376_v27  ;;  %v4282_v22 = vpop.f32.mrb[24].mxu0  ;;  %v5563_v59 = vmax.f32 %v2417_v30, 0.0  ;;  %v2868_v24 = vshrl.u32 %v5508_v4, 16 }
 0x23a   : > { %v5561_v2 = vrot.slane %v2579_v62, 7  ;;  %v2286_v28 = vpop.f32.mrb[25].mxu0  ;;  %v2499_v43 = vpack.c.bf16 %v2476_v51, %v5522_v20  ;;  %2716 = vrot.lane.b32.xlu1 %v2678_v3, %s4551_s19  ;;  %v2872_v14 = vshll.u32 %v5479_v31, 16  ;;  %v5574_v46 = vor.u32 %v2566_v12, %v5526_v34 }
 0x23b   : > { %v2867_v44 = vsel %vm1464_vm4, %v2862_v35, %v2866_v19  ;;  %v5570_v40 = vmax.f32 %v2415_v57, 0.0  ;;  %v4283_v55 = vpop.f32.mrb[26].mxu0  ;;  %v2790_v63 = vmul.f32 %v6187_v39, %v5563_v59  ;;  %v2418_v4 = vadd.f32 %v5337_v9, %v2379_v56  ;;  %v6188_v56 = vld [vmem:[#allocation6_spill] sm:$0xff] }
 0x23c   : > { %2955 = vrot.lane.b32.xlu0 %v2867_v44, %s4552_s20  ;;  %v2870_v61 = vor.u32 %v2868_v24, %v2866_v19  ;;  %v2289_v37 = vpop.f32.mrb[27].mxu0  ;;  %v5581_v3 = vor.u32 %v2558_v8, %v5546_v54  ;;  %v5584_v27 = vor.u32 %v2582_v32, %v5561_v2  ;;  %v2571_v62 = vshrl.u32 %v2499_v43, 16  ;;  %v6189_v44 = vld [vmem:[#allocation7_spill] sm:$0xff] }
 0x23d   : > { %v2874_v30 = vrot.slane %v2872_v14, 1  ;;  %v5586_v35 = vmax.f32 %v2418_v4, 0.0  ;;  %v2377_v12 = vmul.f32 %v5332_v33, %v2273_v18  ;;  %v2679_v51 = vpack.c.bf16 %v5465_v6, %v5454_v41 }
 0x23e   : > { %v2680_v57 = vpack.c.bf16 %v5549_v50, %v5522_v20  ;;  %v2574_v19 = vshll.u32 %v2499_v43, 16  ;;  %v2788_v8 = vmul.f32 %v6188_v56, %v5570_v40  ;;  %v2382_v32 = vmul.f32 %v4282_v22, %v5332_v33 }
 0x23f   : > { %v2875_v24 = vsel %vm1464_vm4, %v2870_v61, %v2874_v30  ;;  %v2482_v14 = vmul.f32 %v6189_v44, %v5586_v35  ;;  %v5600_v39 = vpack.c.bf16 %v5586_v35, %v2790_v63  ;;  %v2416_v41 = vadd.f32 %v5337_v9, %v2377_v12 }
 0x240   : > { %2957 = vrot.lane.b32.xlu1 %v2875_v24, %s4552_s20  ;;  %2718 = vrot.lane.b32.xlu0 %v2679_v51, %s4551_s19  ;;  %v2880_v6 = vshll.u32 %v5558_v45, 16  ;;  %v5606_v20 = vrot.slane %v2571_v62, 7  ;;  %v2421_v18 = vadd.f32 %v5337_v9, %v2382_v32  ;;  %v2876_v50 = vshrl.u32 %v5479_v31, 16 }
 0x241   : > { %v2380_v22 = vmul.f32 %v5332_v33, %v2286_v28  ;;  %v4286_v43 = vpop.f32.mrb[28].mxu0  ;;  %v2502_v63 = vpack.c.bf16 %v2482_v14, %v5563_v59  ;;  %v2448_v4 = vmax.f32 %v2416_v41, 0.0  ;;  %v2383_v56 = vmul.f32 %v4283_v55, %v5332_v33  ;;  %v6190_v55 = vld [vmem:[#allocation12_spill] sm:$0xff] }
 0x242   : > { %v2882_v61 = vrot.slane %v2880_v6, 1  ;;  %v2302_v12 = vpop.f32.mrb[29].mxu0  ;;  %v5613_v24 = vmax.f32 %v2421_v18, 0.0  ;;  %v2878_v51 = vor.u32 %v2876_v50, %v2874_v30  ;;  %v2888_v44 = vshll.u32 %v5533_v29, 16 }
 0x243   : > { %v2419_v62 = vadd.f32 %v5337_v9, %v2380_v22  ;;  %v4287_v32 = vpop.f32.mrb[30].mxu0  ;;  %v2595_v13 = vshrl.u32 %v2502_v63, 16  ;;  %v2480_v31 = vmul.f32 %v5118_v48, %v2448_v4  ;;  %v2810_v28 = vpack.c.bf16 %v2448_v4, %v2788_v8 }
 0x244   : > { %2720 = vrot.lane.b32.xlu1 %v2680_v57, %s4551_s19  ;;  %v2884_v14 = vshrl.u32 %v5558_v45, 16  ;;  %v2305_v41 = vpop.f32.mrb[31].mxu0  ;;  %v2794_v6 = vmul.f32 %v6190_v55, %v5613_v24  ;;  %v2883_v18 = vsel %vm1464_vm4, %v2878_v51, %v2882_v61  ;;  %v2422_v50 = vadd.f32 %v5337_v9, %v2383_v56 }
 0x245   : > { %v5623_v30 = vmax.f32 %v2419_v62, 0.0  ;;  %v5627_v22 = vor.u32 %v2574_v19, %v5606_v20  ;;  %v2501_v48 = vpack.c.bf16 %v2480_v31, %v5570_v40  ;;  %2959 = vrot.lane.b32.xlu0 %v2883_v18, %s4552_s20  ;;  %v2890_v8 = vrot.slane %v2888_v44, 1  ;;  %v6192_v19 = vld [vmem:[#allocation9_spill] sm:$0xff]  ;;  %v6193_v18 = vld [vmem:[#allocation10_spill] sm:$0xff] }
 0x246   : > { %v2886_v57 = vor.u32 %v2884_v14, %v2882_v61  ;;  %v2598_v45 = vshll.u32 %v2502_v63, 16  ;;  %v5631_v7 = vmax.f32 %v2422_v50, 0.0  ;;  %v2381_v55 = vmul.f32 %v5332_v33, %v2289_v37 }
 0x247   : > { %v2681_v51 = vpack.c.bf16 %v5524_v5, %v5511_v16  ;;  %v5636_v62 = vrot.slane %v2595_v13, 7  ;;  %v2587_v56 = vshrl.u32 %v2501_v48, 16  ;;  %v2792_v23 = vmul.f32 %v6192_v19, %v5623_v30 }
 0x248   : > { %v2891_v31 = vsel %vm1464_vm4, %v2886_v57, %v2890_v8  ;;  %v2486_v61 = vmul.f32 %v6193_v18, %v5631_v7  ;;  %v5644_v63 = vpack.c.bf16 %v5631_v7, %v2794_v6  ;;  %v2420_v37 = vadd.f32 %v5337_v9, %v2381_v55 }
 0x249   : > { %6191 = vst [vmem:[#allocation5_spill] sm:$0xff] %v5636_v62  ;;  %2961 = vrot.lane.b32.xlu1 %v2891_v31, %s4552_s20  ;;  %v2682_v16 = vpack.c.bf16 %v2448_v4, %v5570_v40  ;;  %v5649_v13 = vrot.slane %v2587_v56, 7  ;;  %2722 = vrot.lane.b32.xlu0 %v2681_v51, %s4551_s19  ;;  %v2386_v5 = vmul.f32 %v4286_v43, %v5332_v33  ;;  %v2892_v44 = vshrl.u32 %v5533_v29, 16 }
 0x24a   : > { %v2896_v14 = vshll.u32 %v2810_v28, 16  ;;  %v2504_v50 = vpack.c.bf16 %v2486_v61, %v5613_v24  ;;  %v2452_v57 = vmax.f32 %v2420_v37, 0.0  ;;  %v2384_v6 = vmul.f32 %v5332_v33, %v2302_v12 }
 0x24b   : > { %v2387_v19 = vmul.f32 %v4287_v32, %v5332_v33  ;;  %v5658_v55 = vor.u32 %v2598_v45, %v5636_v62  ;;  %v2425_v40 = vadd.f32 %v5337_v9, %v2386_v5  ;;  %v2894_v4 = vor.u32 %v2892_v44, %v2890_v8 }
 0x24c   : > { %v2898_v56 = vrot.slane %v2896_v14, 1  ;;  %v2590_v51 = vshll.u32 %v2501_v48, 16  ;;  %v2611_v31 = vshrl.u32 %v2504_v50, 16  ;;  %v2484_v43 = vmul.f32 %v5137_v11, %v2452_v57 }
 0x24d   : > { %v2812_v29 = vpack.c.bf16 %v2452_v57, %v2792_v23  ;;  %2724 = vrot.lane.b32.xlu1 %v2682_v16, %s4551_s19  ;;  %v5663_v18 = vmax.f32 %v2425_v40, 0.0  ;;  %v2423_v32 = vadd.f32 %v5337_v9, %v2384_v6  ;;  %v2426_v45 = vadd.f32 %v5337_v9, %v2387_v19  ;;  %v6194_v23 = vld [vmem:[#allocation14_spill] sm:$0xff] }
 0x24e   : > { %v2899_v12 = vsel %vm1464_vm4, %v2894_v4, %v2898_v56  ;;  %v5669_v61 = vor.u32 %v2590_v51, %v5649_v13  ;;  %v2503_v8 = vpack.c.bf16 %v2484_v43, %v5623_v30  ;;  %v2900_v48 = vshrl.u32 %v2810_v28, 16  ;;  %v6195_v4 = vld [vmem:[#allocation13_spill] sm:$0xff]  ;;  %v6196_v43 = vld [vmem:[#allocation11_spill] sm:$0xff] }
 0x24f   : > { %2963 = vrot.lane.b32.xlu0 %v2899_v12, %s4552_s20  ;;  %v2904_v11 = vshll.u32 %v5600_v39, 16  ;;  %v2798_v37 = vmul.f32 %v6194_v23, %v5663_v18  ;;  %v5676_v16 = vmax.f32 %v2423_v32, 0.0  ;;  %v2458_v5 = vmax.f32 %v2426_v45, 0.0 }
 0x250   : > { %v2385_v44 = vmul.f32 %v5332_v33, %v2305_v41  ;;  %v5679_v14 = vrot.slane %v2611_v31, 7  ;;  %v2614_v6 = vshll.u32 %v2504_v50, 16  ;;  %v2603_v19 = vshrl.u32 %v2503_v8, 16 }
 0x251   : > { %v2902_v40 = vor.u32 %v2900_v48, %v2898_v56  ;;  %v2796_v51 = vmul.f32 %v6195_v4, %v5676_v16  ;;  %v2490_v28 = vmul.f32 %v6196_v43, %v2458_v5  ;;  %v5684_v12 = vpack.c.bf16 %v2458_v5, %v2798_v37 }
 0x252   : > { %v2906_v58 = vrot.slane %v2904_v11, 1  ;;  %v5686_v62 = vrot.slane %v2603_v19, 7  ;;  %v2424_v32 = vadd.f32 %v5337_v9, %v2385_v44  ;;  %v2683_v33 = vpack.c.bf16 %v5586_v35, %v5563_v59 }
 0x253   : > { %v2684_v41 = vpack.c.bf16 %v2452_v57, %v5623_v30  ;;  %v2506_v50 = vpack.c.bf16 %v2490_v28, %v5663_v18  ;;  %v2908_v31 = vshrl.u32 %v5600_v39, 16  ;;  %v2912_v45 = vshll.u32 %v2812_v29, 16  ;;  %v2669_v39 = vld [vmem:[#allocation2 + $0x88] sm:$0x1] }
 0x254   : > { %v2907_v56 = vsel %vm1464_vm4, %v2902_v40, %v2906_v58  ;;  %v5696_v48 = vor.u32 %v2614_v6, %v5679_v14  ;;  %v5699_v11 = vmax.f32 %v2424_v32, 0.0  ;;  %2726 = vrot.lane.b32.xlu0 %v2683_v33, %s4551_s19  ;;  %v2687_v9 = vpack.c.bf16 %v2458_v5, %v5663_v18 }
 0x255   : > { %2965 = vrot.lane.b32.xlu1 %v2907_v56, %s4552_s20  ;;  %v2685_v59 = vpack.c.bf16 %v5631_v7, %v5613_v24  ;;  %v2606_v35 = vshll.u32 %v2503_v8, 16  ;;  %v2627_v30 = vshrl.u32 %v2506_v50, 16  ;;  %v2910_v57 = vor.u32 %v2908_v31, %v2906_v58 }
 0x256   : > { %v2914_v23 = vrot.slane %v2912_v45, 1  ;;  %v2488_v37 = vmul.f32 %v5048_v21, %v5699_v11  ;;  %v2814_v44 = vpack.c.bf16 %v5699_v11, %v2796_v51  ;;  %v2916_v6 = vshrl.u32 %v2812_v29, 16 }
 0x257   : > { %v2920_v19 = vshll.u32 %v5644_v63, 16  ;;  %v2608_v40 = vor.u32 %v2606_v35, %v5686_v62  ;;  %v2629_v4 = vrot.slane %v2627_v30, 7  ;;  %v2630_v18 = vshll.u32 %v2506_v50, 16 }
 0x258   : > { %v2915_v5 = vsel %vm1464_vm4, %v2910_v57, %v2914_v23  ;;  %v2505_v7 = vpack.c.bf16 %v2488_v37, %v5676_v16  ;;  %v2918_v58 = vor.u32 %v2916_v6, %v2914_v23  ;;  %v2928_v21 = vshll.u32 %v2814_v44, 16  ;;  %v2651_v23 = vld [vmem:[#allocation2 + $0x8] sm:$0xff] }
 0x259   : > { %2728 = vrot.lane.b32.xlu1 %v2684_v41, %s4551_s19  ;;  %2967 = vrot.lane.b32.xlu0 %v2915_v5, %s4552_s20  ;;  %v2922_v24 = vrot.slane %v2920_v19, 1  ;;  %v2632_v8 = vor.u32 %v2630_v18, %v2629_v4  ;;  %v2670_v29 = vsel %vm5164_vm2, %v2629_v4, %v2669_v39  ;;  %v2924_v51 = vshrl.u32 %v5644_v63, 16  ;;  %v5727_v63 = vld [vmem:[%s6128_s2] sm:$0x3f]   ;;  %v5819_v39 = vld [vmem:[%s6128_s2 + $0x10] sm:$0x3f]  }
 0x25a   : > { %v2936_v43 = vshll.u32 %v5684_v12, 16  ;;  %2671 = vst [vmem:[#allocation2 + $0x88] sm:$0x1] %v2670_v29  ;;  %v2619_v28 = vshrl.u32 %v2505_v7, 16  ;;  %v2622_v32 = vshll.u32 %v2505_v7, 16  ;;  %v2932_v50 = vshrl.u32 %v2814_v44, 16 }
 0x25b   : > { %v2923_v33 = vsel %vm1464_vm4, %v2918_v58, %v2922_v24  ;;  %v2926_v41 = vor.u32 %v2924_v51, %v2922_v24  ;;  %v2930_v56 = vrot.slane %v2928_v21, 1  ;;  %v2686_v31 = vpack.c.bf16 %v5699_v11, %v5676_v16 }
 0x25c   : > { %v2521_v10 = vsel %vm946_vm7, %v5398_v38, %v5404_v0  ;;  %v2621_v45 = vrot.slane %v2619_v28, 7  ;;  %v6197_v35 = vshll.u32 %v5358_v15, 16  ;;  %v2529_v0 = vsel %vm946_vm7, %v5380_v53, %v5459_v47 }
 0x25d   : > { %2734 = vrot.lane.b32.xlu1 %v2687_v9, %s4551_s19  ;;  %2730 = vrot.lane.b32.xlu0 %v2685_v59, %s4551_s19  ;;  %2654 = vst.msk [vmem:[#allocation2 + $0x10] sm:$0xff] %vm1292_vm9, %v2521_v10  ;;  %v2537_v11 = vsel %vm946_vm7, %v5434_v26, %v5449_v1  ;;  %v2931_v30 = vsel %vm1464_vm4, %v2926_v41, %v2930_v56  ;;  %v2938_v9 = vrot.slane %v2936_v43, 1  ;;  %2655 = vst.msk [vmem:[#allocation2 + $0x18] sm:$0xff] %vm1292_vm9, %v2529_v0 }
 0x25e   : > { %v2513_v16 = vor.u32 %v6197_v35, %v5398_v38  ;;  %v2934_v57 = vor.u32 %v2932_v50, %v2930_v56  ;;  %2656 = vst.msk [vmem:[#allocation2 + $0x20] sm:$0xff] %vm1292_vm9, %v2537_v11  ;;  %v3091_v15 = vsel %vm1744_vm3, %v5412_v25, 0  ;;  %v2624_v38 = vor.u32 %v2622_v32, %v2621_v45 }
 0x25f   : > { %4289 = vmatpush3.bf16.msra.mxu1 %v3091_v15  ;;  %v2545_v26 = vsel %vm946_vm7, %v5425_v42, %v5500_v52  ;;  %v2553_v25 = vsel %vm946_vm7, %v5470_v60, %v5497_v36  ;;  %v2561_v49 = vsel %vm946_vm7, %v5468_v17, %v5581_v3  ;;  %v2569_v42 = vsel %vm946_vm7, %v5546_v54, %v5574_v46  ;;  %v6198_v52 = vld [vmem:[#allocation5_spill] sm:$0xff] }
 0x260   : > { %v2652_v53 = vsel %vm5019_vm0, %v2513_v16, %v2651_v23  ;;  %v2939_v1 = vsel %vm1464_vm4, %v2934_v57, %v2938_v9  ;;  %2657 = vst.msk [vmem:[#allocation2 + $0x28] sm:$0xff] %vm1292_vm9, %v2545_v26  ;;  %4522 = vmatprep.subr.msk.bf16.mxu1 %vm1744_vm3, %v5727_v63  ;;  %2658 = vst.msk [vmem:[#allocation2 + $0x30] sm:$0xff] %vm1292_vm9, %v2553_v25  ;;  %v2577_v47 = vsel %vm946_vm7, %v5526_v34, %v5627_v22 }
 0x261   : > { %2653 = vst [vmem:[#allocation2 + $0x8] sm:$0xff] %v2652_v53  ;;  %2969 = vrot.lane.b32.xlu0 %v2923_v33, %s4552_s20  ;;  %2971 = vrot.lane.b32.xlu1 %v2931_v30, %s4552_s20  ;;  %2659 = vst.msk [vmem:[#allocation2 + $0x38] sm:$0xff] %vm1292_vm9, %v2561_v49  ;;  %v2585_v17 = vsel %vm946_vm7, %v5606_v20, %v5584_v27  ;;  %v2593_v60 = vsel %vm946_vm7, %v5561_v2, %v5669_v61  ;;  %v2940_v3 = vshrl.u32 %v5684_v12, 16  ;;  %v6199_v20 = vld [vmem:[#allocation17_spill] sm:$0xff] }
 0x262   : > { %2660 = vst.msk [vmem:[#allocation2 + $0x40] sm:$0xff] %vm1292_vm9, %v2569_v42  ;;  %2661 = vst.msk [vmem:[#allocation2 + $0x48] sm:$0xff] %vm1292_vm9, %v2577_v47  ;;  %v2601_v36 = vsel %vm946_vm7, %v5649_v13, %v5658_v55  ;;  %v2609_v34 = vsel %vm946_vm7, %v6198_v52, %v2608_v40  ;;  %v2633_v54 = vsel %vm946_vm7, %v2621_v45, %v2632_v8  ;;  %v3263_v59 = vsel %vm1744_vm3, %v5727_v63, 0 }
 0x263   : > { %2662 = vst.msk [vmem:[#allocation2 + $0x50] sm:$0xff] %vm1292_vm9, %v2585_v17  ;;  %2663 = vst.msk [vmem:[#allocation2 + $0x58] sm:$0xff] %vm1292_vm9, %v2593_v60  ;;  %v2617_v46 = vsel %vm946_vm7, %v5686_v62, %v5696_v48  ;;  %v2625_v2 = vsel %vm946_vm7, %v5679_v14, %v2624_v38  ;;  %v2942_v27 = vor.u32 %v2940_v3, %v2938_v9  ;;  %v2994_v38 = vld [vmem:[#allocation2] sm:$0x80]  ;;  %v5954_v3 = vld [vmem:[%s6134_s8] ss:$0 sm:$0xff] }
 0x264   : > { %2664 = vst.msk [vmem:[#allocation2 + $0x60] sm:$0xff] %vm1292_vm9, %v2601_v36  ;;  %2665 = vst.msk [vmem:[#allocation2 + $0x68] sm:$0xff] %vm1292_vm9, %v2609_v34  ;;  %v3499_v34 = vsel %vm1744_vm3, %v5819_v39, 0 }
 0x265   : > { %2668 = vst.msk [vmem:[#allocation2 + $0x80] sm:$0xff] %vm1292_vm9, %v2633_v54  ;;  %2666 = vst.msk [vmem:[#allocation2 + $0x70] sm:$0xff] %vm1292_vm9, %v2617_v46  ;;  %2973 = vrot.lane.b32.xlu1 %v2939_v1, %s4552_s20  ;;  %2732 = vrot.lane.b32.xlu0 %v2686_v31, %s4551_s19  ;;  %v3441_v54 = vld [vmem:[#allocation2 + $0x88] sm:$0xff]  ;;  %v5949_v46 = vld [vmem:[%s6133_s7] ss:$0 sm:$0xff] }
 0x266   : > { %2667 = vst.msk [vmem:[#allocation2 + $0x78] sm:$0xff] %vm1292_vm9, %v2625_v2 }
 0x269   : > { %2943 = vrot.lane.b32.xlu1 %v6199_v20, %s4552_s20  ;;  %2975 = vrot.lane.b32.xlu0 %v2942_v27, %s4552_s20 }
 0x286   : > { %v2707_v22 = vpop.permute.xlu0 %2706 }
 0x287   : > { %2753 = vst.msk [vmem:[#allocation2 + $0x10] sm:$0xff] %vm1399_vm5, %v2707_v22  ;;  %v2705_v62 = vpop.permute.xlu1 %2704  ;;  %v3774_v22 = vld [vmem:[%s4631_s16 + $0x10] sm:$0xff] }
 0x288   : > { %2752 = vst.msk [vmem:[#allocation2 + $0x8] sm:$0xff] %vm1399_vm5, %v2705_v62 }
 0x290   : > { %v2946_v13 = vpop.permute.xlu1 %2945 }
 0x291   : > { %2997 = vst.msk [vmem:[#allocation2 + $0x8] sm:$0xff] %vm1648_vm6, %v2946_v13 }
 0x294   : > { %v2709_v55 = vpop.permute.xlu1 %2708 }
 0x295   : > { %2754 = vst.msk [vmem:[#allocation2 + $0x18] sm:$0xff] %vm1399_vm5, %v2709_v55 }
 0x298   : > { %v2948_v61 = vpop.permute.xlu0 %2947  ;;  %v5808_v14 = vld [vmem:[#allocation2 + $0x8] sm:$0xff] }
 0x299   : > { %2998 = vst.msk [vmem:[#allocation2 + $0x10] sm:$0xff] %vm1648_vm6, %v2948_v61  ;;  %4290 = vmatprep.mubr.msk.bf16.mxu1 %vm943_vm15, %v5808_v14  ;;  %v3772_v61 = vld [vmem:[%s4631_s16] sm:$0xff] }
 0x29d   : > { %v2711_v48 = vpop.permute.xlu0 %2710 }
 0x29e   : > { %v2950_v12 = vpop.permute.xlu1 %2949  ;;  %2755 = vst.msk [vmem:[#allocation2 + $0x20] sm:$0xff] %vm1399_vm5, %v2711_v48 }
 0x29f   : > { %2999 = vst.msk [vmem:[#allocation2 + $0x18] sm:$0xff] %vm1648_vm6, %v2950_v12 }
 0x2a0   : > { %v5821_v37 = vld [vmem:[#allocation2 + $0x10] sm:$0xff] }
 0x2a1   : > { %4291 = vmatmul.mubr.msk.bf16.vlgmr.msra.gmra.mrb[0].mxu1 %vm943_vm15, %v5821_v37 }
 0x2a2   : > { %v2713_v44 = vpop.permute.xlu1 %2712  ;;  %4323 = vmatpush3.bf16.msra.mxu1 %v3263_v59  ;;  %v3775_v59 = vld [vmem:[%s4631_s16 + $0x18] sm:$0xff] }
 0x2a3   : > { %2756 = vst.msk [vmem:[#allocation2 + $0x28] sm:$0xff] %vm1399_vm5, %v2713_v44  ;;  %4523 = vmatprep.subr.msk.bf16.mxu1 %vm1744_vm3, %v5819_v39 }
 0x2a4   : > { %v2952_v6 = vpop.permute.xlu0 %2951 }
 0x2a5   : > { %3000 = vst.msk [vmem:[#allocation2 + $0x20] sm:$0xff] %vm1648_vm6, %v2952_v6  ;;  %v3773_v6 = vld [vmem:[%s4631_s16 + $0x8] sm:$0xff] }
 0x2a6   : > { %v5829_v19 = vld [vmem:[#allocation2 + $0x18] sm:$0xff] }
 0x2a7   : > { %4294 = vmatprep.mubr.msk.bf16.mxu1 %vm943_vm15, %v5829_v19 }
 0x2a8   : > { %v2954_v40 = vpop.permute.xlu1 %2953  ;;  %v2715_v4 = vpop.permute.xlu0 %2714 }
 0x2a9   : > { %3001 = vst.msk [vmem:[#allocation2 + $0x28] sm:$0xff] %vm1648_vm6, %v2954_v40 }
 0x2aa   : > { %2757 = vst.msk [vmem:[#allocation2 + $0x30] sm:$0xff] %vm1399_vm5, %v2715_v4 }
 0x2ac   : > { %v2717_v18 = vpop.permute.xlu1 %2716  ;;  %v5835_v5 = vld [vmem:[#allocation2 + $0x20] sm:$0xff] }
 0x2ad   : > { %2758 = vst.msk [vmem:[#allocation2 + $0x38] sm:$0xff] %vm1399_vm5, %v2717_v18  ;;  %4295 = vmatmul.mubr.msk.bf16.gmra.mrb[4].mxu1 %vm943_vm15, %v5835_v5 }
 0x2ae   : > { %v2956_v7 = vpop.permute.xlu0 %2955 }
 0x2af   : > { %3002 = vst.msk [vmem:[#allocation2 + $0x30] sm:$0xff] %vm1648_vm6, %v2956_v7 }
 0x2b0   : > { %v5841_v58 = vld [vmem:[#allocation2 + $0x28] sm:$0xff] }
 0x2b1   : > { %4298 = vmatprep.mubr.msk.bf16.mxu1 %vm943_vm15, %v5841_v58 }
 0x2b2   : > { %v2958_v24 = vpop.permute.xlu1 %2957  ;;  %v2719_v21 = vpop.permute.xlu0 %2718 }
 0x2b3   : > { %3003 = vst.msk [vmem:[#allocation2 + $0x38] sm:$0xff] %vm1648_vm6, %v2958_v24  ;;  %v3778_v24 = vld [vmem:[%s4631_s16 + $0x30] sm:$0xff] }
 0x2b4   : > { %2759 = vst.msk [vmem:[#allocation2 + $0x40] sm:$0xff] %vm1399_vm5, %v2719_v21 }
 0x2b6   : > { %v2721_v8 = vpop.permute.xlu1 %2720  ;;  %v5847_v29 = vld [vmem:[#allocation2 + $0x30] sm:$0xff] }
 0x2b7   : > { %2760 = vst.msk [vmem:[#allocation2 + $0x48] sm:$0xff] %vm1399_vm5, %v2721_v8  ;;  %4299 = vmatmul.mubr.msk.bf16.gmra.mrb[8].mxu1 %vm943_vm15, %v5847_v29  ;;  %v2960_v51 = vpop.permute.xlu0 %2959 }
 0x2b8   : > { %3004 = vst.msk [vmem:[#allocation2 + $0x40] sm:$0xff] %vm1648_vm6, %v2960_v51  ;;  %v3776_v51 = vld [vmem:[%s4631_s16 + $0x20] sm:$0xff] }
 0x2ba   : > { %v5853_v43 = vld [vmem:[#allocation2 + $0x38] sm:$0xff] }
 0x2bb   : > { %v2962_v28 = vpop.permute.xlu1 %2961  ;;  %4302 = vmatprep.mubr.msk.bf16.mxu1 %vm943_vm15, %v5853_v43  ;;  %v2723_v32 = vpop.permute.xlu0 %2722 }
 0x2bc   : > { %3005 = vst.msk [vmem:[#allocation2 + $0x48] sm:$0xff] %vm1648_vm6, %v2962_v28 }
 0x2bd   : > { %2761 = vst.msk [vmem:[#allocation2 + $0x50] sm:$0xff] %vm1399_vm5, %v2723_v32 }
 0x2bf   : > { %v2725_v33 = vpop.permute.xlu1 %2724  ;;  %v5860_v50 = vld [vmem:[#allocation2 + $0x40] sm:$0xff] }
 0x2c0   : > { %2762 = vst.msk [vmem:[#allocation2 + $0x58] sm:$0xff] %vm1399_vm5, %v2725_v33  ;;  %4303 = vmatmul.mubr.msk.bf16.gmra.mrb[12].mxu1 %vm943_vm15, %v5860_v50  ;;  %v3779_v33 = vld [vmem:[%s4631_s16 + $0x38] sm:$0xff] }
 0x2c1   : > { %v2964_v41 = vpop.permute.xlu0 %2963 }
 0x2c2   : > { %3006 = vst.msk [vmem:[#allocation2 + $0x50] sm:$0xff] %vm1648_vm6, %v2964_v41 }
 0x2c3   : > { %v5865_v56 = vld [vmem:[#allocation2 + $0x48] sm:$0xff] }
 0x2c4   : > { %4306 = vmatprep.mubr.msk.bf16.mxu1 %vm943_vm15, %v5865_v56 }
 0x2c6   : > { %v2727_v10 = vpop.permute.xlu0 %2726 }
 0x2c7   : > { %v2966_v31 = vpop.permute.xlu1 %2965  ;;  %2763 = vst.msk [vmem:[#allocation2 + $0x60] sm:$0xff] %vm1399_vm5, %v2727_v10 }
 0x2c8   : > { %3007 = vst.msk [vmem:[#allocation2 + $0x58] sm:$0xff] %vm1648_vm6, %v2966_v31  ;;  %v3777_v31 = vld [vmem:[%s4631_s16 + $0x28] sm:$0xff] }
 0x2c9   : > { %v5871_v63 = vld [vmem:[#allocation2 + $0x50] sm:$0xff] }
 0x2ca   : > { %4307 = vmatmul.mubr.msk.bf16.gmra.mrb[16].mxu1 %vm943_vm15, %v5871_v63 }
 0x2cb   : > { %v2729_v45 = vpop.permute.xlu1 %2728  ;;  %v2968_v35 = vpop.permute.xlu0 %2967 }
 0x2cc   : > { %2764 = vst.msk [vmem:[#allocation2 + $0x68] sm:$0xff] %vm1399_vm5, %v2729_v45 }
 0x2cd   : > { %3008 = vst.msk [vmem:[#allocation2 + $0x60] sm:$0xff] %vm1648_vm6, %v2968_v35 }
 0x2cf   : > { %v2735_v16 = vpop.permute.xlu1 %2734  ;;  %v3026_v0 = vld [vmem:[#allocation2 + $0x58] sm:$0xff]  ;;  %v2731_v11 = vpop.permute.xlu0 %2730 }
 0x2d0   : > { %2767 = vst.msk [vmem:[#allocation2 + $0x80] sm:$0xff] %vm1399_vm5, %v2735_v16  ;;  %4310 = vmatprep.mubr.msk.bf16.mxu1 %vm943_vm15, %v3026_v0  ;;  %2765 = vst.msk [vmem:[#allocation2 + $0x70] sm:$0xff] %vm1399_vm5, %v2731_v11 }
 0x2d3   : > { %v2970_v30 = vpop.permute.xlu0 %2969  ;;  %v2972_v57 = vpop.permute.xlu1 %2971 }
 0x2d4   : > { %v3027_v9 = vld [vmem:[#allocation2 + $0x60] sm:$0xff]  ;;  %3009 = vst.msk [vmem:[#allocation2 + $0x68] sm:$0xff] %vm1648_vm6, %v2970_v30  ;;  %3010 = vst.msk [vmem:[#allocation2 + $0x70] sm:$0xff] %vm1648_vm6, %v2972_v57  ;;  %v3782_v30 = vld [vmem:[%s4631_s16 + $0x50] sm:$0xff] }
 0x2d5   : > { %4311 = vmatmul.mubr.msk.bf16.gmra.mrb[20].mxu1 %vm943_vm15, %v3027_v9 }
 0x2d7   : > { %v2974_v23 = vpop.permute.xlu1 %2973  ;;  %v2733_v15 = vpop.permute.xlu0 %2732  ;;  %v3012_v1 = vld [vmem:[#allocation2 + $0x80] sm:$0xff] }
 0x2d8   : > { %2766 = vst.msk [vmem:[#allocation2 + $0x78] sm:$0xff] %vm1399_vm5, %v2733_v15  ;;  %v3780_v15 = vld [vmem:[%s4631_s16 + $0x40] sm:$0xff] }
 0x2d9   : > { %3011 = vst.msk [vmem:[#allocation2 + $0x78] sm:$0xff] %vm1648_vm6, %v2974_v23 }
 0x2db   : > { %v2944_v53 = vpop.permute.xlu1 %2943  ;;  %v2976_v26 = vpop.permute.xlu0 %2975  ;;  %v3028_v25 = vld [vmem:[#allocation2 + $0x68] sm:$0xff]  ;;  %v3029_v49 = vld [vmem:[#allocation2 + $0x70] sm:$0xff] }
 0x2dc   : > { %v2995_v47 = vsel %vm5267_vm11, %v2944_v53, %v2994_v38  ;;  %v3013_v60 = vsel %vm5258_vm8, %v2976_v26, %v3012_v1  ;;  %4314 = vmatprep.mubr.msk.bf16.mxu1 %vm943_vm15, %v3028_v25  ;;  %v3783_v1 = vld [vmem:[%s4631_s16 + $0x58] sm:$0xff] }
 0x2dd   : > { %2996 = vst [vmem:[#allocation2] sm:$0x80] %v2995_v47  ;;  %3014 = vst [vmem:[#allocation2 + $0x80] sm:$0xff] %v3013_v60  ;;  %4315 = vmatmul.mubr.msk.bf16.gmra.mrb[24].mxu1 %vm943_vm15, %v3029_v49  ;;  %v3781_v47 = vld [vmem:[%s4631_s16 + $0x48] sm:$0xff] }
 0x2e0   : > { %v3030_v36 = vld [vmem:[#allocation2 + $0x78] sm:$0xff] }
 0x2e1   : > { %4318 = vmatprep.mubr.msk.bf16.mxu1 %vm943_vm15, %v3030_v36 }
 0x2e4   : > { %v3015_v52 = vld [vmem:[#allocation2] sm:$0xff] }
 0x2e5   : > { %4319 = vmatmul.mubr.msk.bf16.gmra.mrb[28].mxu1 %vm943_vm15, %v3013_v60 }
 0x2e6   : > { %4324 = vmatprep.mubr.msk.bf16.mxu1 %vm943_vm15, %v3015_v52 }
 0x2ed   : > { %4325 = vmatmul.mubr.msk.bf16.vlgmr.msra.gmra.mrb[0].mxu1 %vm943_vm15, %v5808_v14 }
 0x2ee   : > { %4357 = vmatpush3.bf16.msra.mxu1 %v3499_v34  ;;  %4328 = vmatprep.mubr.msk.bf16.mxu1 %vm943_vm15, %v5821_v37 }
 0x2f5   : > { %4329 = vmatmul.mubr.msk.bf16.gmra.mrb[4].mxu1 %vm943_vm15, %v5829_v19 }
 0x2f6   : > { %4332 = vmatprep.mubr.msk.bf16.mxu1 %vm943_vm15, %v5835_v5 }
 0x2fd   : > { %4333 = vmatmul.mubr.msk.bf16.gmra.mrb[8].mxu1 %vm943_vm15, %v5841_v58 }
 0x2fe   : > { %4336 = vmatprep.mubr.msk.bf16.mxu1 %vm943_vm15, %v5847_v29 }
 0x305   : > { %4337 = vmatmul.mubr.msk.bf16.gmra.mrb[12].mxu1 %vm943_vm15, %v5853_v43 }
 0x306   : > { %4340 = vmatprep.mubr.msk.bf16.mxu1 %vm943_vm15, %v5860_v50 }
 0x30d   : > { %4341 = vmatmul.mubr.msk.bf16.gmra.mrb[16].mxu1 %vm943_vm15, %v5865_v56 }
 0x30e   : > { %4344 = vmatprep.mubr.msk.bf16.mxu1 %vm943_vm15, %v5871_v63 }
 0x315   : > { %4345 = vmatmul.mubr.msk.bf16.gmra.mrb[20].mxu1 %vm943_vm15, %v3026_v0 }
 0x316   : > { %4348 = vmatprep.mubr.msk.bf16.mxu1 %vm943_vm15, %v3027_v9 }
 0x31d   : > { %4349 = vmatmul.mubr.msk.bf16.gmra.mrb[24].mxu1 %vm943_vm15, %v3028_v25 }
 0x31e   : > { %4352 = vmatprep.mubr.msk.bf16.mxu1 %vm943_vm15, %v3029_v49 }
 0x325   : > { %4353 = vmatmul.mubr.msk.bf16.gmra.mrb[28].mxu1 %vm943_vm15, %v3030_v36 }
 0x326   : > { %4358 = vmatprep.mubr.msk.bf16.mxu1 %vm943_vm15, %v5821_v37 }
 0x32d   : > { %4359 = vmatmul.mubr.msk.bf16.vlgmr.msra.gmra.mrb[0].mxu1 %vm943_vm15, %v5829_v19 }
 0x32e   : > { %4362 = vmatprep.mubr.msk.bf16.mxu1 %vm943_vm15, %v5835_v5 }
 0x335   : > { %4363 = vmatmul.mubr.msk.bf16.gmra.mrb[4].mxu1 %vm943_vm15, %v5841_v58 }
 0x336   : > { %4366 = vmatprep.mubr.msk.bf16.mxu1 %vm943_vm15, %v5847_v29 }
 0x33d   : > { %4367 = vmatmul.mubr.msk.bf16.gmra.mrb[8].mxu1 %vm943_vm15, %v5853_v43 }
 0x33e   : > { %4370 = vmatprep.mubr.msk.bf16.mxu1 %vm943_vm15, %v5860_v50 }
 0x345   : > { %4371 = vmatmul.mubr.msk.bf16.gmra.mrb[12].mxu1 %vm943_vm15, %v5865_v56 }
 0x346   : > { %4374 = vmatprep.mubr.msk.bf16.mxu1 %vm943_vm15, %v5871_v63 }
 0x34d   : > { %4375 = vmatmul.mubr.msk.bf16.gmra.mrb[16].mxu1 %vm943_vm15, %v3026_v0 }
 0x34e   : > { %4378 = vmatprep.mubr.msk.bf16.mxu1 %vm943_vm15, %v3027_v9 }
 0x355   : > { %4379 = vmatmul.mubr.msk.bf16.gmra.mrb[20].mxu1 %vm943_vm15, %v3028_v25 }
 0x356   : > { %4382 = vmatprep.mubr.msk.bf16.mxu1 %vm943_vm15, %v3029_v49 }
 0x35d   : > { %4383 = vmatmul.mubr.msk.bf16.gmra.mrb[24].mxu1 %vm943_vm15, %v3030_v36 }
 0x35e   : > { %4386 = vmatprep.mubr.msk.bf16.mxu1 %vm943_vm15, %v3013_v60 }
 0x365   : > { %4387 = vmatmul.mubr.msk.bf16.gmra.mrb[28].mxu1 %vm943_vm15, %v3441_v54 }
 0x400   : > { %v4360_v2 = vpop.f32.mrb[0].mxu1 }
 0x401   : > { %v3703_v27 = vmul.f32 %v4360_v2, %v5949_v46  ;;  %v3535_v20 = vpop.f32.mrb[1].mxu1 }
 0x402   : > { %v3701_v62 = vmul.f32 %v5949_v46, %v3535_v20  ;;  %v4361_v13 = vpop.f32.mrb[2].mxu1 }
 0x403   : > { %v3742_v55 = vadd.f32 %v5954_v3, %v3703_v27  ;;  %v3704_v14 = vmul.f32 %v4361_v13, %v5949_v46  ;;  %v3538_v12 = vpop.f32.mrb[3].mxu1  ;;  %v3786_v27 = vld [vmem:[%s4631_s16 + $0x70] sm:$0xff]  ;;  %v3784_v13 = vld [vmem:[%s4631_s16 + $0x60] sm:$0xff] }
 0x404   : > { %v3740_v48 = vadd.f32 %v5954_v3, %v3701_v62  ;;  %v3702_v39 = vmul.f32 %v5949_v46, %v3538_v12  ;;  %v3787_v12 = vld [vmem:[%s4631_s16 + $0x78] sm:$0xff] }
 0x405   : > { %v3806_v37 = vadd.f32 %v3774_v22, %v3742_v55  ;;  %v3743_v44 = vadd.f32 %v5954_v3, %v3704_v14 }
 0x406   : > { %v3804_v19 = vadd.f32 %v3772_v61, %v3740_v48  ;;  %v3741_v40 = vadd.f32 %v5954_v3, %v3702_v39 }
 0x407   : > { %3838 = vst.msk [vmem:[%s5967_s26 + $0x10] sm:$0xff] %vm1292_vm9, %v3806_v37  ;;  %v3807_v4 = vadd.f32 %v3775_v59, %v3743_v44  ;;  %v3785_v37 = vld [vmem:[%s4631_s16 + $0x68] sm:$0xff] }
 0x408   : > { %3836 = vst.msk [vmem:[%s5967_s26] sm:$0xff] %vm1292_vm9, %v3804_v19  ;;  %v3805_v18 = vadd.f32 %v3773_v6, %v3741_v40  ;;  %v4364_v5 = vpop.f32.mrb[4].mxu1 }
 0x409   : > { %3839 = vst.msk [vmem:[%s5967_s26 + $0x18] sm:$0xff] %vm1292_vm9, %v3807_v4  ;;  %v3707_v7 = vmul.f32 %v4364_v5, %v5949_v46  ;;  %v3551_v58 = vpop.f32.mrb[5].mxu1 }
 0x40a   : > { %3837 = vst.msk [vmem:[%s5967_s26 + $0x8] sm:$0xff] %vm1292_vm9, %v3805_v18  ;;  %v3705_v21 = vmul.f32 %v5949_v46, %v3551_v58  ;;  %v4365_v8 = vpop.f32.mrb[6].mxu1 }
 0x40b   : > { %v3746_v29 = vadd.f32 %v5954_v3, %v3707_v7  ;;  %v3708_v43 = vmul.f32 %v4365_v8, %v5949_v46  ;;  %v3554_v28 = vpop.f32.mrb[7].mxu1  ;;  %v3790_v7 = vld [vmem:[%s4631_s16 + $0x90] sm:$0xff]  ;;  %v3788_v8 = vld [vmem:[%s4631_s16 + $0x80] sm:$0xff] }
 0x40c   : > { %v3744_v32 = vadd.f32 %v5954_v3, %v3705_v21  ;;  %v3706_v50 = vmul.f32 %v5949_v46, %v3554_v28  ;;  %v3791_v28 = vld [vmem:[%s4631_s16 + $0x98] sm:$0xff] }
 0x40d   : > { %v3810_v41 = vadd.f32 %v3778_v24, %v3746_v29  ;;  %v3747_v56 = vadd.f32 %v5954_v3, %v3708_v43 }
 0x40e   : > { %v3808_v10 = vadd.f32 %v3776_v51, %v3744_v32  ;;  %v3745_v63 = vadd.f32 %v5954_v3, %v3706_v50 }
 0x40f   : > { %3842 = vst.msk [vmem:[%s5967_s26 + $0x30] sm:$0xff] %vm1292_vm9, %v3810_v41  ;;  %v3811_v45 = vadd.f32 %v3779_v33, %v3747_v56  ;;  %v3789_v41 = vld [vmem:[%s4631_s16 + $0x88] sm:$0xff] }
 0x410   : > { %3840 = vst.msk [vmem:[%s5967_s26 + $0x20] sm:$0xff] %vm1292_vm9, %v3808_v10  ;;  %v3809_v35 = vadd.f32 %v3777_v31, %v3745_v63  ;;  %v4368_v16 = vpop.f32.mrb[8].mxu1 }
 0x411   : > { %3843 = vst.msk [vmem:[%s5967_s26 + $0x38] sm:$0xff] %vm1292_vm9, %v3811_v45  ;;  %v3711_v0 = vmul.f32 %v4368_v16, %v5949_v46  ;;  %v3567_v11 = vpop.f32.mrb[9].mxu1 }
 0x412   : > { %3841 = vst.msk [vmem:[%s5967_s26 + $0x28] sm:$0xff] %vm1292_vm9, %v3809_v35  ;;  %v3709_v57 = vmul.f32 %v5949_v46, %v3567_v11  ;;  %v4369_v9 = vpop.f32.mrb[10].mxu1 }
 0x413   : > { %v3750_v23 = vadd.f32 %v5954_v3, %v3711_v0  ;;  %v3712_v38 = vmul.f32 %v4369_v9, %v5949_v46  ;;  %v3570_v53 = vpop.f32.mrb[11].mxu1  ;;  %v3794_v0 = vld [vmem:[%s4631_s16 + $0xb0] sm:$0xff]  ;;  %v3792_v9 = vld [vmem:[%s4631_s16 + $0xa0] sm:$0xff] }
 0x414   : > { %v3748_v26 = vadd.f32 %v5954_v3, %v3709_v57  ;;  %v3710_v25 = vmul.f32 %v5949_v46, %v3570_v53  ;;  %v3795_v53 = vld [vmem:[%s4631_s16 + $0xb8] sm:$0xff] }
 0x415   : > { %v3814_v49 = vadd.f32 %v3782_v30, %v3750_v23  ;;  %v3751_v42 = vadd.f32 %v5954_v3, %v3712_v38 }
 0x416   : > { %v3812_v17 = vadd.f32 %v3780_v15, %v3748_v26  ;;  %v3749_v60 = vadd.f32 %v5954_v3, %v3710_v25 }
 0x417   : > { %3846 = vst.msk [vmem:[%s5967_s26 + $0x50] sm:$0xff] %vm1292_vm9, %v3814_v49  ;;  %v3815_v36 = vadd.f32 %v3783_v1, %v3751_v42  ;;  %v3793_v49 = vld [vmem:[%s4631_s16 + $0xa8] sm:$0xff] }
 0x418   : > { %3844 = vst.msk [vmem:[%s5967_s26 + $0x40] sm:$0xff] %vm1292_vm9, %v3812_v17  ;;  %v3813_v52 = vadd.f32 %v3781_v47, %v3749_v60  ;;  %v4372_v34 = vpop.f32.mrb[12].mxu1 }
 0x419   : > { %3847 = vst.msk [vmem:[%s5967_s26 + $0x58] sm:$0xff] %vm1292_vm9, %v3815_v36  ;;  %v3715_v54 = vmul.f32 %v4372_v34, %v5949_v46  ;;  %v3583_v2 = vpop.f32.mrb[13].mxu1 }
 0x41a   : > { %3845 = vst.msk [vmem:[%s5967_s26 + $0x48] sm:$0xff] %vm1292_vm9, %v3813_v52  ;;  %v3713_v20 = vmul.f32 %v5949_v46, %v3583_v2  ;;  %v4373_v22 = vpop.f32.mrb[14].mxu1 }
 0x41b   : > { %v3754_v62 = vadd.f32 %v5954_v3, %v3715_v54  ;;  %v3716_v55 = vmul.f32 %v4373_v22, %v5949_v46  ;;  %v3586_v61 = vpop.f32.mrb[15].mxu1  ;;  %v3798_v54 = vld [vmem:[%s4631_s16 + $0xd0] sm:$0xff]  ;;  %v3796_v22 = vld [vmem:[%s4631_s16 + $0xc0] sm:$0xff] }
 0x41c   : > { %v3752_v14 = vadd.f32 %v5954_v3, %v3713_v20  ;;  %v3714_v48 = vmul.f32 %v5949_v46, %v3586_v61  ;;  %v3799_v61 = vld [vmem:[%s4631_s16 + $0xd8] sm:$0xff] }
 0x41d   : > { %v3818_v59 = vadd.f32 %v3786_v27, %v3754_v62  ;;  %v3755_v39 = vadd.f32 %v5954_v3, %v3716_v55 }
 0x41e   : > { %v3816_v44 = vadd.f32 %v3784_v13, %v3752_v14  ;;  %v3753_v6 = vadd.f32 %v5954_v3, %v3714_v48 }
 0x41f   : > { %3850 = vst.msk [vmem:[%s5967_s26 + $0x70] sm:$0xff] %vm1292_vm9, %v3818_v59  ;;  %v3819_v19 = vadd.f32 %v3787_v12, %v3755_v39  ;;  %v3797_v59 = vld [vmem:[%s4631_s16 + $0xc8] sm:$0xff] }
 0x420   : > { %3848 = vst.msk [vmem:[%s5967_s26 + $0x60] sm:$0xff] %vm1292_vm9, %v3816_v44  ;;  %v3817_v40 = vadd.f32 %v3785_v37, %v3753_v6  ;;  %v4376_v4 = vpop.f32.mrb[16].mxu1 }
 0x421   : > { %3851 = vst.msk [vmem:[%s5967_s26 + $0x78] sm:$0xff] %vm1292_vm9, %v3819_v19  ;;  %v3719_v18 = vmul.f32 %v4376_v4, %v5949_v46  ;;  %v3599_v5 = vpop.f32.mrb[17].mxu1 }
 0x422   : > { %3849 = vst.msk [vmem:[%s5967_s26 + $0x68] sm:$0xff] %vm1292_vm9, %v3817_v40  ;;  %v3717_v58 = vmul.f32 %v5949_v46, %v3599_v5  ;;  %v4377_v24 = vpop.f32.mrb[18].mxu1 }
 0x423   : > { %v3758_v21 = vadd.f32 %v5954_v3, %v3719_v18  ;;  %v3720_v29 = vmul.f32 %v4377_v24, %v5949_v46  ;;  %v3602_v51 = vpop.f32.mrb[19].mxu1  ;;  %v3802_v18 = vld [vmem:[%s4631_s16 + $0xf0] sm:$0xff]  ;;  %v3800_v24 = vld [vmem:[%s4631_s16 + $0xe0] sm:$0xff] }
 0x424   : > { %v3756_v43 = vadd.f32 %v5954_v3, %v3717_v58  ;;  %v3718_v32 = vmul.f32 %v5949_v46, %v3602_v51  ;;  %v3803_v51 = vld [vmem:[%s4631_s16 + $0xf8] sm:$0xff] }
 0x425   : > { %v3822_v33 = vadd.f32 %v3790_v7, %v3758_v21  ;;  %v3759_v50 = vadd.f32 %v5954_v3, %v3720_v29 }
 0x426   : > { %v3820_v56 = vadd.f32 %v3788_v8, %v3756_v43  ;;  %v3757_v31 = vadd.f32 %v5954_v3, %v3718_v32 }
 0x427   : > { %3854 = vst.msk [vmem:[%s5967_s26 + $0x90] sm:$0xff] %vm1292_vm9, %v3822_v33  ;;  %v3823_v10 = vadd.f32 %v3791_v28, %v3759_v50  ;;  %v3801_v33 = vld [vmem:[%s4631_s16 + $0xe8] sm:$0xff] }
 0x428   : > { %3852 = vst.msk [vmem:[%s5967_s26 + $0x80] sm:$0xff] %vm1292_vm9, %v3820_v56  ;;  %v3821_v63 = vadd.f32 %v3789_v41, %v3757_v31  ;;  %v4380_v45 = vpop.f32.mrb[20].mxu1 }
 0x429   : > { %3855 = vst.msk [vmem:[%s5967_s26 + $0x98] sm:$0xff] %vm1292_vm9, %v3823_v10  ;;  %v3723_v35 = vmul.f32 %v4380_v45, %v5949_v46  ;;  %v3615_v16 = vpop.f32.mrb[21].mxu1 }
 0x42a   : > { %3853 = vst.msk [vmem:[%s5967_s26 + $0x88] sm:$0xff] %vm1292_vm9, %v3821_v63  ;;  %v3721_v11 = vmul.f32 %v5949_v46, %v3615_v16  ;;  %v4381_v30 = vpop.f32.mrb[22].mxu1 }
 0x42b   : > { %v3762_v57 = vadd.f32 %v5954_v3, %v3723_v35  ;;  %v3724_v23 = vmul.f32 %v4381_v30, %v5949_v46  ;;  %v3618_v15 = vpop.f32.mrb[23].mxu1 }
 0x42c   : > { %v3760_v38 = vadd.f32 %v5954_v3, %v3721_v11  ;;  %v3722_v26 = vmul.f32 %v5949_v46, %v3618_v15 }
 0x42d   : > { %v3826_v1 = vadd.f32 %v3794_v0, %v3762_v57  ;;  %v3763_v25 = vadd.f32 %v5954_v3, %v3724_v23 }
 0x42e   : > { %v3824_v42 = vadd.f32 %v3792_v9, %v3760_v38  ;;  %v3761_v47 = vadd.f32 %v5954_v3, %v3722_v26 }
 0x42f   : > { %3858 = vst.msk [vmem:[%s5967_s26 + $0xb0] sm:$0xff] %vm1292_vm9, %v3826_v1  ;;  %v3827_v17 = vadd.f32 %v3795_v53, %v3763_v25 }
 0x430   : > { %3856 = vst.msk [vmem:[%s5967_s26 + $0xa0] sm:$0xff] %vm1292_vm9, %v3824_v42  ;;  %v3825_v60 = vadd.f32 %v3793_v49, %v3761_v47  ;;  %v4384_v36 = vpop.f32.mrb[24].mxu1 }
 0x431   : > { %3859 = vst.msk [vmem:[%s5967_s26 + $0xb8] sm:$0xff] %vm1292_vm9, %v3827_v17  ;;  %v3727_v52 = vmul.f32 %v4384_v36, %v5949_v46  ;;  %v3631_v34 = vpop.f32.mrb[25].mxu1 }
 0x432   : > { %3857 = vst.msk [vmem:[%s5967_s26 + $0xa8] sm:$0xff] %vm1292_vm9, %v3825_v60  ;;  %v3725_v2 = vmul.f32 %v5949_v46, %v3631_v34  ;;  %v4385_v27 = vpop.f32.mrb[26].mxu1 }
 0x433   : > { %v3766_v20 = vadd.f32 %v5954_v3, %v3727_v52  ;;  %v3728_v62 = vmul.f32 %v4385_v27, %v5949_v46  ;;  %v3634_v13 = vpop.f32.mrb[27].mxu1 }
 0x434   : > { %v3764_v55 = vadd.f32 %v5954_v3, %v3725_v2  ;;  %v3726_v14 = vmul.f32 %v5949_v46, %v3634_v13 }
 0x435   : > { %v3830_v12 = vadd.f32 %v3798_v54, %v3766_v20  ;;  %v3767_v48 = vadd.f32 %v5954_v3, %v3728_v62 }
 0x436   : > { %v3828_v39 = vadd.f32 %v3796_v22, %v3764_v55  ;;  %v3765_v37 = vadd.f32 %v5954_v3, %v3726_v14 }
 0x437   : > { %3862 = vst.msk [vmem:[%s5967_s26 + $0xd0] sm:$0xff] %vm1292_vm9, %v3830_v12  ;;  %v3831_v44 = vadd.f32 %v3799_v61, %v3767_v48 }
 0x438   : > { %3860 = vst.msk [vmem:[%s5967_s26 + $0xc0] sm:$0xff] %vm1292_vm9, %v3828_v39  ;;  %v3829_v6 = vadd.f32 %v3797_v59, %v3765_v37  ;;  %v4388_v19 = vpop.f32.mrb[28].mxu1 }
 0x439   : > { %3863 = vst.msk [vmem:[%s5967_s26 + $0xd8] sm:$0xff] %vm1292_vm9, %v3831_v44  ;;  %v3731_v40 = vmul.f32 %v4388_v19, %v5949_v46  ;;  %v3647_v4 = vpop.f32.mrb[29].mxu1 }
 0x43a   : > { %3861 = vst.msk [vmem:[%s5967_s26 + $0xc8] sm:$0xff] %vm1292_vm9, %v3829_v6  ;;  %v3729_v5 = vmul.f32 %v5949_v46, %v3647_v4  ;;  %v4389_v7 = vpop.f32.mrb[30].mxu1 }
 0x43b   : > { %v3770_v58 = vadd.f32 %v5954_v3, %v3731_v40  ;;  %v3732_v21 = vmul.f32 %v4389_v7, %v5949_v46  ;;  %v3650_v8 = vpop.f32.mrb[31].mxu1 }
 0x43c   : > { %v3768_v29 = vadd.f32 %v5954_v3, %v3729_v5  ;;  %v3730_v43 = vmul.f32 %v5949_v46, %v3650_v8 }
 0x43d   : > { %v3834_v28 = vadd.f32 %v3802_v18, %v3770_v58  ;;  %v3771_v32 = vadd.f32 %v5954_v3, %v3732_v21 }
 0x43e   : > { %v3832_v50 = vadd.f32 %v3800_v24, %v3768_v29  ;;  %v3769_v41 = vadd.f32 %v5954_v3, %v3730_v43 }
 0x43f   : > { %3866 = vst.msk [vmem:[%s5967_s26 + $0xf0] sm:$0xff] %vm1292_vm9, %v3834_v28  ;;  %v3835_v56 = vadd.f32 %v3803_v51, %v3771_v32 }
 0x440   : > { %3864 = vst.msk [vmem:[%s5967_s26 + $0xe0] sm:$0xff] %vm1292_vm9, %v3832_v50  ;;  %v3833_v31 = vadd.f32 %v3801_v33, %v3769_v41 }
 0x441   : > { %3867 = vst.msk [vmem:[%s5967_s26 + $0xf8] sm:$0xff] %vm1292_vm9, %v3835_v56 }
 0x442   : > { %3865 = vst.msk [vmem:[%s5967_s26 + $0xe8] sm:$0xff] %vm1292_vm9, %v3833_v31 }
 0x443 PF: > { %s19_s30 = sadd.s32 1, %s4548_s30  }
 0x444   : > { %p16_p4 = scmp.ge.s32.totalorder %s19_s30, 4  }
 0x446   :  { %18 = sbr.rel (!%p16_p4) target bundleno = 1 (0x1), region = 90 }

// kernel: preact_block_forward.1
= control target key start
LH: loop header
LB: loop body
LE: loop exit
PB: predicated region body
PF: predicated region fallthrough
CT: control target
= control target key end

     0   :  { %s4604_s30 = smov 0   ;;  %s6126_s0 = inlined_call_operand.vmem [shape: f32[2,256,4], index: 0, kind: input, shape index: {}]   ;;  %s6127_s1 = inlined_call_operand.vmem [shape: bf16[3,12,4], index: 1, kind: input, shape index: {}]   ;;  %s6128_s2 = inlined_call_operand.vmem [shape: bf16[3,12,4], index: 2, kind: input, shape index: {}]   ;;  %s6129_s3 = inlined_call_operand.vmem [shape: f32[1,4], index: 3, kind: input, shape index: {}]   ;;  %s6130_s4 = inlined_call_operand.vmem [shape: f32[1,4], index: 4, kind: input, shape index: {}]   ;;  %s6131_s5 = inlined_call_operand.vmem [shape: f32[1,4], index: 5, kind: input, shape index: {}]   ;;  %s6132_s6 = inlined_call_operand.vmem [shape: f32[1,4], index: 6, kind: input, shape index: {}]   ;;  %s6133_s7 = inlined_call_operand.vmem [shape: f32[1,4], index: 7, kind: input, shape index: {}]   ;;  %s6134_s8 = inlined_call_operand.vmem [shape: f32[1,4], index: 8, kind: input, shape index: {}]   ;;  %s6135_s9 = inlined_call_operand.vmem [shape: f32[2,256,4], index: 9, kind: output, shape index: {}]  }
   0x1 LB: > { %s3923_s10 = sadd.s32 4294967295, %s4548_s30   ;;  %p3927_p0 = scmp.ge.s32.totalorder %s4548_s30, 1  ;;  %s4548_s30 = sphi %s4604_s30, %s19_s30  }
   0x2   : > { %p287_p1 = scmp.lt.s32.totalorder %s4548_s30, 3 }
   0x4   : > { %p288_p2 = pnand %p3927_p0, %p287_p1 }
   0x6   : > { %291 = sbr.rel (%p288_p2) target bundleno = 1091 (0x443), region = 56 }
   0xd   : > { %p323_p3 = scmp.lt.s32.totalorder %s3923_s10, 1  ;;  %v334_v0 = vlaneseq  ;;  %v4619_v2 = vld [vmem:[%s6129_s3] ss:$0 sm:$0xff]  ;;  %v6136_v15 = vmov 0.0   ;;  %vm1464_vm4 = vsmask.f32 7424 }
   0xe   : > { %v4636_v7 = vld [vmem:[%s6130_s4] ss:$0 sm:$0xff]  ;;  %s4551_s19 = smov 4   ;;  %s4552_s20 = smov 8  }
   0xf   : > { %s6203_s10 = smov (!%p323_p3, %s3923_s10), 1  ;;  %v4614_v1 = vshrl.u32 %v334_v0, 7 }
  0x10   : > { %s4082_s13 = sshll.u32 %s6203_s10, 8 }
  0x11   : > { %v336_v3 = vadd.s32 8, %v4614_v1  ;;  %v371_v4 = vand.u32 15, %v4614_v1  ;;  %v337_v5 = vadd.s32 16, %v4614_v1  ;;  %v339_v6 = vadd.s32 32, %v4614_v1  ;;  %s4631_s16 = scalar_lea.vmem %s6126_s0, %s4082_s13  ;;  %s5967_s26 = scalar_lea.vmem %s6135_s9, %s4082_s13 }
  0x12   : > { %v342_v8 = vadd.s32 56, %v4614_v1  ;;  %v4640_v9 = vadd.s32 48, %v4614_v1  ;;  %v958_v11 = vld [vmem:[%s4631_s16] sm:$0xff]  ;;  %v959_v12 = vld [vmem:[%s4631_s16 + $0x8] sm:$0xff]  ;;  %v960_v14 = vld [vmem:[%s4631_s16 + $0x10] sm:$0xff]  ;;  %v343_v48 = vadd.s32 64, %v4614_v1 }
  0x13   : > { %v378_v10 = vand.u32 15, %v336_v3  ;;  %vm751_vm0 = vcmp.ge.s32.totalorder %v371_v4, 1  ;;  %v385_v13 = vand.u32 15, %v337_v5  ;;  %v997_v17 = vmul.f32 %v4619_v2, %v958_v11  ;;  %v961_v19 = vld [vmem:[%s4631_s16 + $0x18] sm:$0xff]  ;;  %v962_v21 = vld [vmem:[%s4631_s16 + $0x20] sm:$0xff]  ;;  %v963_v24 = vld [vmem:[%s4631_s16 + $0x28] sm:$0xff] }
  0x14   : > { %v4646_v16 = vsel %vm751_vm0, 1.0, %v6136_v15  ;;  %v998_v18 = vmul.f32 %v4619_v2, %v959_v12  ;;  %v999_v20 = vmul.f32 %v4619_v2, %v960_v14  ;;  %v1000_v22 = vmul.f32 %v4619_v2, %v961_v19  ;;  %v964_v44 = vld [vmem:[%s4631_s16 + $0x30] sm:$0xff]  ;;  %v965_v45 = vld [vmem:[%s4631_s16 + $0x38] sm:$0xff]  ;;  %v967_v19 = vld [vmem:[%s4631_s16 + $0x48] sm:$0xff] }
  0x15   : > { %vm848_vm1 = vcmp.lt.s32.totalorder %v378_v10, 15  ;;  %vm753_vm2 = vcmp.ge.s32.totalorder %v385_v13, 1  ;;  %v399_v23 = vand.u32 15, %v339_v6  ;;  %v1036_v26 = vadd.f32 %v4636_v7, %v997_v17  ;;  %v966_v6 = vld [vmem:[%s4631_s16 + $0x40] sm:$0xff] }
  0x16   : > { %v4656_v25 = vsel %vm848_vm1, 1.0, %v6136_v15  ;;  %v1037_v27 = vadd.f32 %v4636_v7, %v998_v18  ;;  %v4661_v28 = vsel %vm753_vm2, 1.0, %v6136_v15  ;;  %v1038_v29 = vadd.f32 %v4636_v7, %v999_v20 }
  0x17   : > { %v1039_v30 = vadd.f32 %v4636_v7, %v1000_v22  ;;  %vm755_vm3 = vcmp.ge.s32.totalorder %v399_v23, 1  ;;  %v1001_v31 = vmul.f32 %v4619_v2, %v962_v21  ;;  %v1068_v32 = vmax.f32 %v1036_v26, 0.0 }
  0x18   : > { %v1069_v33 = vmax.f32 %v1037_v27, 0.0  ;;  %v4667_v34 = vsel %vm755_vm3, 1.0, %v6136_v15  ;;  %v1002_v35 = vmul.f32 %v4619_v2, %v963_v24  ;;  %v4670_v36 = vmax.f32 %v1038_v29, 0.0  ;;  %v968_v27 = vld [vmem:[%s4631_s16 + $0x50] sm:$0xff]  ;;  %v969_v29 = vld [vmem:[%s4631_s16 + $0x58] sm:$0xff] }
  0x19   : > { %v4672_v37 = vmax.f32 %v1039_v30, 0.0  ;;  %v1040_v38 = vadd.f32 %v4636_v7, %v1001_v31  ;;  %v420_v39 = vand.u32 15, %v342_v8  ;;  %v1416_v42 = vmul.f32 %v4646_v16, %v1068_v32 }
  0x1a   : > { %v1101_v40 = vmul.f32 %v4656_v25, %v1069_v33  ;;  %v1319_v41 = vpack.c.bf16 %v1069_v33, %v1068_v32  ;;  %v1041_v43 = vadd.f32 %v4636_v7, %v1002_v35  ;;  %v1418_v46 = vmul.f32 %v4661_v28, %v4670_v36 }
  0x1b   : > { %v4682_v47 = vmax.f32 %v1040_v38, 0.0  ;;  %vm854_vm5 = vcmp.lt.s32.totalorder %v420_v39, 15  ;;  %v1448_v50 = vpack.c.bf16 %v1069_v33, %v1416_v42  ;;  %v1320_v51 = vpack.c.bf16 %v4672_v37, %v4670_v36 }
  0x1c   : > { %1351 = vrot.lane.b32.xlu0 %v1319_v41, %s4551_s19  ;;  %v4686_v49 = vpack.c.bf16 %v1101_v40, %v1068_v32  ;;  %v4690_v52 = vmax.f32 %v1041_v43, 0.0  ;;  %v1449_v53 = vpack.c.bf16 %v4672_v37, %v1418_v46  ;;  %v1003_v55 = vmul.f32 %v4619_v2, %v964_v44 }
  0x1d   : > { %v1420_v54 = vmul.f32 %v4667_v34, %v4682_v47  ;;  %v1004_v56 = vmul.f32 %v4619_v2, %v965_v45  ;;  %v1466_v57 = vshll.u32 %v1448_v50, 16  ;;  %v1469_v58 = vshrl.u32 %v1448_v50, 16 }
  0x1e   : > { %v4698_v59 = vsel %vm854_vm5, 1.0, %v6136_v15  ;;  %v346_v60 = vadd.s32 88, %v4614_v1  ;;  %v1473_v61 = vshll.u32 %v1449_v53, 16  ;;  %v1477_v63 = vshrl.u32 %v1449_v53, 16 }
  0x1f   : > { %v1450_v62 = vpack.c.bf16 %v4690_v52, %v1420_v54  ;;  %v4702_v0 = vrot.slane %v1466_v57, 1  ;;  %v1321_v3 = vpack.c.bf16 %v4690_v52, %v4682_v47  ;;  %v1042_v4 = vadd.f32 %v4636_v7, %v1003_v55  ;;  %v970_v54 = vld [vmem:[%s4631_s16 + $0x60] sm:$0xff] }
  0x20   : > { %1353 = vrot.lane.b32.xlu0 %v1320_v51, %s4551_s19  ;;  %v1043_v5 = vadd.f32 %v4636_v7, %v1004_v56  ;;  %v1475_v8 = vrot.slane %v1473_v61, 1  ;;  %v413_v11 = vand.u32 15, %v4640_v9  ;;  %v427_v18 = vand.u32 15, %v343_v48 }
  0x21   : > { %v1481_v10 = vshll.u32 %v1450_v62, 16  ;;  %v1485_v12 = vshrl.u32 %v1450_v62, 16  ;;  %v1471_v13 = vor.u32 %v1469_v58, %v4702_v0  ;;  %v1074_v14 = vmax.f32 %v1042_v4, 0.0 }
  0x22   : > { %v1075_v17 = vmax.f32 %v1043_v5, 0.0  ;;  %v1479_v20 = vor.u32 %v1477_v63, %v1475_v8  ;;  %vm757_vm6 = vcmp.ge.s32.totalorder %v413_v11, 1  ;;  %v1005_v22 = vmul.f32 %v4619_v2, %v966_v6  ;;  %v971_v6 = vld [vmem:[%s4631_s16 + $0x68] sm:$0xff] }
  0x23   : > { %v1483_v21 = vrot.slane %v1481_v10, 1  ;;  %v1476_v23 = vsel %vm1464_vm4, %v1471_v13, %v1475_v8  ;;  %v4718_v26 = vsel %vm757_vm6, 1.0, %v6136_v15  ;;  %vm759_vm7 = vcmp.ge.s32.totalorder %v427_v18, 1  ;;  %v972_v18 = vld [vmem:[%s4631_s16 + $0x70] sm:$0xff] }
  0x24   : > { %1355 = vrot.lane.b32.xlu0 %v1321_v3, %s4551_s19  ;;  %v1107_v9 = vmul.f32 %v4698_v59, %v1075_v17  ;;  %v1322_v24 = vpack.c.bf16 %v1075_v17, %v1074_v14  ;;  %1594 = vrot.lane.b32.xlu1 %v1476_v23, %s4552_s20  ;;  %v1422_v31 = vmul.f32 %v4718_v26, %v1074_v14  ;;  %v4728_v35 = vsel %vm759_vm7, 1.0, %v6136_v15 }
  0x25   : > { %v1484_v30 = vsel %vm1464_vm4, %v1479_v20, %v1483_v21  ;;  %v1487_v32 = vor.u32 %v1485_v12, %v1483_v21  ;;  %v1006_v38 = vmul.f32 %v4619_v2, %v967_v19  ;;  %v1044_v39 = vadd.f32 %v4636_v7, %v1005_v22  ;;  %v973_v19 = vld [vmem:[%s4631_s16 + $0x78] sm:$0xff] }
  0x26   : > { %v4725_v33 = vpack.c.bf16 %v1107_v9, %v1074_v14  ;;  %v1451_v40 = vpack.c.bf16 %v1075_v17, %v1422_v31  ;;  %v448_v41 = vand.u32 15, %v346_v60  ;;  %v1007_v42 = vmul.f32 %v4619_v2, %v968_v27 }
  0x27   : > { %v1008_v43 = vmul.f32 %v4619_v2, %v969_v29  ;;  %v1045_v44 = vadd.f32 %v4636_v7, %v1006_v38  ;;  %v4735_v45 = vmax.f32 %v1044_v39, 0.0  ;;  %v345_v46 = vadd.s32 80, %v4614_v1 }
  0x28   : > { %v347_v48 = vadd.s32 96, %v4614_v1  ;;  %1596 = vrot.lane.b32.xlu1 %v1484_v30, %s4552_s20  ;;  %v1489_v50 = vshll.u32 %v1451_v40, 16  ;;  %v1493_v51 = vshrl.u32 %v1451_v40, 16  ;;  %vm858_vm8 = vcmp.lt.s32.totalorder %v448_v41, 15 }
  0x29   : > { %v1046_v53 = vadd.f32 %v4636_v7, %v1007_v42  ;;  %v4742_v55 = vmax.f32 %v1045_v44, 0.0  ;;  %v1424_v56 = vmul.f32 %v4728_v35, %v4735_v45  ;;  %v4747_v57 = vsel %vm858_vm8, 1.0, %v6136_v15 }
  0x2a   : > { %v1047_v58 = vadd.f32 %v4636_v7, %v1008_v43  ;;  %v1491_v60 = vrot.slane %v1489_v50, 1  ;;  %v441_v62 = vand.u32 15, %v345_v46  ;;  %v455_v63 = vand.u32 15, %v347_v48 }
  0x2b   : > { %v1078_v61 = vmax.f32 %v1046_v53, 0.0  ;;  %v1452_v3 = vpack.c.bf16 %v4742_v55, %v1424_v56  ;;  %v1323_v4 = vpack.c.bf16 %v4742_v55, %v4735_v45  ;;  %v1009_v8 = vmul.f32 %v4619_v2, %v970_v54  ;;  %v974_v54 = vld [vmem:[%s4631_s16 + $0x80] sm:$0xff]  ;;  %v975_v56 = vld [vmem:[%s4631_s16 + $0x88] sm:$0xff] }
  0x2c   : > { %v1079_v5 = vmax.f32 %v1047_v58, 0.0  ;;  %1357 = vrot.lane.b32.xlu1 %v1322_v24, %s4551_s19  ;;  %v1492_v10 = vsel %vm1464_vm4, %v1487_v32, %v1491_v60  ;;  %v1495_v11 = vor.u32 %v1493_v51, %v1491_v60  ;;  %vm761_vm9 = vcmp.ge.s32.totalorder %v441_v62, 1 }
  0x2d   : > { %vm763_vm10 = vcmp.ge.s32.totalorder %v455_v63, 1  ;;  %1598 = vrot.lane.b32.xlu0 %v1492_v10, %s4552_s20  ;;  %v1497_v12 = vshll.u32 %v1452_v3, 16  ;;  %v4760_v17 = vsel %vm761_vm9, 1.0, %v6136_v15  ;;  %v1501_v21 = vshrl.u32 %v1452_v3, 16 }
  0x2e   : > { %v1111_v13 = vmul.f32 %v4747_v57, %v1079_v5  ;;  %v1324_v14 = vpack.c.bf16 %v1079_v5, %v1078_v61  ;;  %v1426_v20 = vmul.f32 %v4760_v17, %v1078_v61  ;;  %v4766_v22 = vsel %vm763_vm10, 1.0, %v6136_v15 }
  0x2f   : > { %v1010_v23 = vmul.f32 %v4619_v2, %v971_v6  ;;  %v1499_v9 = vrot.slane %v1497_v12, 1  ;;  %v1048_v27 = vadd.f32 %v4636_v7, %v1009_v8  ;;  %v350_v29 = vadd.s32 120, %v4614_v1 }
  0x30   : > { %v4769_v24 = vpack.c.bf16 %v1111_v13, %v1078_v61  ;;  %v1453_v30 = vpack.c.bf16 %v1079_v5, %v1426_v20  ;;  %v1011_v32 = vmul.f32 %v4619_v2, %v972_v18  ;;  %v1012_v38 = vmul.f32 %v4619_v2, %v973_v19  ;;  %v976_v19 = vld [vmem:[%s4631_s16 + $0x90] sm:$0xff] }
  0x31   : > { %v1049_v31 = vadd.f32 %v4636_v7, %v1010_v23  ;;  %v1500_v39 = vsel %vm1464_vm4, %v1495_v11, %v1499_v9  ;;  %1359 = vrot.lane.b32.xlu0 %v1323_v4, %s4551_s19  ;;  %v1503_v40 = vor.u32 %v1501_v21, %v1499_v9  ;;  %v4778_v41 = vmax.f32 %v1048_v27, 0.0 }
  0x32   : > { %v476_v42 = vand.u32 15, %v350_v29  ;;  %1600 = vrot.lane.b32.xlu1 %v1500_v39, %s4552_s20  ;;  %v1505_v43 = vshll.u32 %v1453_v30, 16  ;;  %v1509_v46 = vshrl.u32 %v1453_v30, 16  ;;  %v1050_v48 = vadd.f32 %v4636_v7, %v1011_v32 }
  0x33   : > { %v4781_v44 = vmax.f32 %v1049_v31, 0.0  ;;  %v1428_v50 = vmul.f32 %v4766_v22, %v4778_v41  ;;  %v1051_v51 = vadd.f32 %v4636_v7, %v1012_v38  ;;  %v349_v53 = vadd.s32 112, %v4614_v1  ;;  %v977_v31 = vld [vmem:[%s4631_s16 + $0x98] sm:$0xff] }
  0x34   : > { %vm862_vm11 = vcmp.lt.s32.totalorder %v476_v42, 15  ;;  %v1149_v58 = vshrl.u32 %v4686_v49, 16  ;;  %v1507_v61 = vrot.slane %v1505_v43, 1  ;;  %v4795_v3 = vmax.f32 %v1050_v48, 0.0 }
  0x35   : > { %v1325_v62 = vpack.c.bf16 %v4781_v44, %v4778_v41  ;;  %v1454_v63 = vpack.c.bf16 %v4781_v44, %v1428_v50  ;;  %v469_v4 = vand.u32 15, %v349_v53  ;;  %v351_v5 = vadd.s32 128, %v4614_v1 }
  0x36   : > { %1361 = vrot.lane.b32.xlu1 %v1324_v14, %s4551_s19  ;;  %v1508_v6 = vsel %vm1464_vm4, %v1503_v40, %v1507_v61  ;;  %v4801_v8 = vsel %vm862_vm11, 1.0, %v6136_v15  ;;  %v1013_v10 = vmul.f32 %v4619_v2, %v974_v54  ;;  %v1014_v11 = vmul.f32 %v4619_v2, %v975_v56 }
  0x37   : > { %1602 = vrot.lane.b32.xlu0 %v1508_v6, %s4552_s20  ;;  %v1511_v12 = vor.u32 %v1509_v46, %v1507_v61  ;;  %v1513_v13 = vshll.u32 %v1454_v63, 16  ;;  %v1083_v18 = vmax.f32 %v1051_v51, 0.0  ;;  %vm765_vm12 = vcmp.ge.s32.totalorder %v469_v4, 1  ;;  %v978_v6 = vld [vmem:[%s4631_s16 + $0xa0] sm:$0xff] }
  0x38   : > { %v4808_v20 = vsel %vm765_vm12, 1.0, %v6136_v15  ;;  %v1517_v14 = vshrl.u32 %v1454_v63, 16  ;;  %v483_v21 = vand.u32 15, %v351_v5  ;;  %v1052_v23 = vadd.f32 %v4636_v7, %v1013_v10 }
  0x39   : > { %v1515_v9 = vrot.slane %v1513_v13, 1  ;;  %v1326_v27 = vpack.c.bf16 %v1083_v18, %v4795_v3  ;;  %v1430_v29 = vmul.f32 %v4808_v20, %v4795_v3  ;;  %v1053_v30 = vadd.f32 %v4636_v7, %v1014_v11 }
  0x3a   : > { %vm767_vm13 = vcmp.ge.s32.totalorder %v483_v21, 1  ;;  %v4816_v32 = vmax.f32 %v1052_v23, 0.0  ;;  %v354_v38 = vadd.s32 152, %v4614_v1  ;;  %v1015_v39 = vmul.f32 %v4619_v2, %v976_v19  ;;  %v979_v23 = vld [vmem:[%s4631_s16 + $0xa8] sm:$0xff] }
  0x3b   : > { %v1516_v40 = vsel %vm1464_vm4, %v1511_v12, %v1515_v9  ;;  %1363 = vrot.lane.b32.xlu0 %v1325_v62, %s4551_s19  ;;  %v1455_v42 = vpack.c.bf16 %v1083_v18, %v1430_v29  ;;  %v1519_v43 = vor.u32 %v1517_v14, %v1515_v9  ;;  %v4823_v46 = vsel %vm767_vm13, 1.0, %v6136_v15 }
  0x3c   : > { %6154 = vst [vmem:[#allocation3_spill] sm:$0xff] %v4823_v46  ;;  %1604 = vrot.lane.b32.xlu1 %v1516_v40, %s4552_s20  ;;  %v4826_v48 = vmax.f32 %v1053_v30, 0.0  ;;  %v1432_v50 = vmul.f32 %v4823_v46, %v4816_v32  ;;  %v504_v51 = vand.u32 15, %v354_v38  ;;  %v1016_v53 = vmul.f32 %v4619_v2, %v977_v31 }
  0x3d   : > { %v1521_v54 = vshll.u32 %v1455_v42, 16  ;;  %v1525_v56 = vshrl.u32 %v1455_v42, 16  ;;  %v1054_v61 = vadd.f32 %v4636_v7, %v1015_v39  ;;  %v353_v62 = vadd.s32 144, %v4614_v1 }
  0x3e   : > { %v1115_v63 = vmul.f32 %v4801_v8, %v1083_v18  ;;  %v1456_v4 = vpack.c.bf16 %v4826_v48, %v1432_v50  ;;  %vm866_vm14 = vcmp.lt.s32.totalorder %v504_v51, 15  ;;  %v1055_v5 = vadd.f32 %v4636_v7, %v1016_v53  ;;  %v980_v51 = vld [vmem:[%s4631_s16 + $0xb0] sm:$0xff]  ;;  %v981_v53 = vld [vmem:[%s4631_s16 + $0xb8] sm:$0xff] }
  0x3f   : > { %v1523_v10 = vrot.slane %v1521_v54, 1  ;;  %v4838_v11 = vsel %vm866_vm14, 1.0, %v6136_v15  ;;  %v1086_v12 = vmax.f32 %v1054_v61, 0.0  ;;  %v497_v13 = vand.u32 15, %v353_v62 }
  0x40   : > { %6155 = vst [vmem:[#allocation4_spill] sm:$0xff] %v4838_v11  ;;  %1365 = vrot.lane.b32.xlu1 %v1326_v27, %s4551_s19  ;;  %v1529_v19 = vshll.u32 %v1456_v4, 16  ;;  %v1087_v14 = vmax.f32 %v1055_v5, 0.0  ;;  %v1533_v21 = vshrl.u32 %v1456_v4, 16  ;;  %v355_v18 = vadd.s32 160, %v4614_v1 }
  0x41   : > { %v1524_v9 = vsel %vm1464_vm4, %v1519_v43, %v1523_v10  ;;  %v1527_v29 = vor.u32 %v1525_v56, %v1523_v10  ;;  %vm769_vm15 = vcmp.ge.s32.totalorder %v497_v13, 1  ;;  %v1017_v30 = vmul.f32 %v4619_v2, %v978_v6 }
  0x42   : > { %1606 = vrot.lane.b32.xlu0 %v1524_v9, %s4552_s20  ;;  %v1531_v31 = vrot.slane %v1529_v19, 1  ;;  %v1327_v27 = vpack.c.bf16 %v4826_v48, %v4816_v32  ;;  %v1119_v38 = vmul.f32 %v4838_v11, %v1087_v14  ;;  %v4850_v39 = vsel %vm769_vm15, 1.0, %v6136_v15 }
  0x43   : > { %6156 = vst [vmem:[#allocation5_spill] sm:$0xff] %v4850_v39  ;;  %v1434_v40 = vmul.f32 %v4850_v39, %v1086_v12  ;;  %v511_v42 = vand.u32 15, %v355_v18  ;;  %v1018_v43 = vmul.f32 %v4619_v2, %v979_v23  ;;  %v1056_v50 = vadd.f32 %v4636_v7, %v1017_v30 }
  0x44   : > { %v1532_v54 = vsel %vm1464_vm4, %v1527_v29, %v1531_v31  ;;  %v1328_v56 = vpack.c.bf16 %v1087_v14, %v1086_v12  ;;  %v1535_v61 = vor.u32 %v1533_v21, %v1531_v31  ;;  %v358_v62 = vadd.s32 184, %v4614_v1 }
  0x45   : > { %1608 = vrot.lane.b32.xlu1 %v1532_v54, %s4552_s20  ;;  %v1457_v4 = vpack.c.bf16 %v1087_v14, %v1434_v40  ;;  %vm771_vm0 = vcmp.ge.s32.totalorder %v511_v42, 1  ;;  %v1057_v5 = vadd.f32 %v4636_v7, %v1018_v43  ;;  %v4861_v6 = vmax.f32 %v1056_v50, 0.0  ;;  %v982_v54 = vld [vmem:[%s4631_s16 + $0xc0] sm:$0xff] }
  0x46   : > { %1367 = vrot.lane.b32.xlu0 %v1327_v27, %s4551_s19  ;;  %v4865_v10 = vsel %vm771_vm0, 1.0, %v6136_v15  ;;  %v532_v13 = vand.u32 15, %v358_v62  ;;  %v1019_v19 = vmul.f32 %v4619_v2, %v980_v51  ;;  %v1020_v21 = vmul.f32 %v4619_v2, %v981_v53  ;;  %v983_v62 = vld [vmem:[%s4631_s16 + $0xc8] sm:$0xff] }
  0x47   : > { %6157 = vst [vmem:[#allocation6_spill] sm:$0xff] %v4865_v10  ;;  %v1537_v18 = vshll.u32 %v1457_v4, 16  ;;  %v4869_v23 = vmax.f32 %v1057_v5, 0.0  ;;  %v1436_v14 = vmul.f32 %v4865_v10, %v4861_v6  ;;  %v1541_v9 = vshrl.u32 %v1457_v4, 16 }
  0x48   : > { %v4875_v29 = vrot.slane %v1149_v58, 7  ;;  %v1058_v30 = vadd.f32 %v4636_v7, %v1019_v19  ;;  %v1059_v31 = vadd.f32 %v4636_v7, %v1020_v21  ;;  %v357_v27 = vadd.s32 176, %v4614_v1 }
  0x49   : > { %v4881_v40 = vpack.c.bf16 %v1115_v63, %v4795_v3  ;;  %1369 = vrot.lane.b32.xlu1 %v1328_v56, %s4551_s19  ;;  %v1539_v42 = vrot.slane %v1537_v18, 1  ;;  %v1458_v43 = vpack.c.bf16 %v4869_v23, %v1436_v14  ;;  %vm870_vm1 = vcmp.lt.s32.totalorder %v532_v13, 15  ;;  %v984_v18 = vld [vmem:[%s4631_s16 + $0xd0] sm:$0xff] }
  0x4a   : > { %v4885_v50 = vpack.c.bf16 %v1119_v38, %v1086_v12  ;;  %v4887_v51 = vmax.f32 %v1058_v30, 0.0  ;;  %v525_v58 = vand.u32 15, %v357_v27  ;;  %v359_v53 = vadd.s32 192, %v4614_v1  ;;  %v988_v27 = vld [vmem:[%s4631_s16 + $0xf0] sm:$0xff] }
  0x4b   : > { %v1540_v4 = vsel %vm1464_vm4, %v1535_v61, %v1539_v42  ;;  %v1543_v3 = vor.u32 %v1541_v9, %v1539_v42  ;;  %v1545_v63 = vshll.u32 %v1458_v43, 16  ;;  %v1329_v56 = vpack.c.bf16 %v4869_v23, %v4861_v6 }
  0x4c   : > { %1610 = vrot.lane.b32.xlu0 %v1540_v4, %s4552_s20  ;;  %v4897_v12 = vsel %vm870_vm1, 1.0, %v6136_v15  ;;  %v1091_v38 = vmax.f32 %v1059_v31, 0.0  ;;  %vm773_vm2 = vcmp.ge.s32.totalorder %v525_v58, 1  ;;  %v539_v5 = vand.u32 15, %v359_v53  ;;  %v985_v31 = vld [vmem:[%s4631_s16 + $0xd8] sm:$0xff] }
  0x4d   : > { %6158 = vst [vmem:[#allocation7_spill] sm:$0xff] %v4897_v12  ;;  %v1547_v13 = vrot.slane %v1545_v63, 1  ;;  %v4900_v19 = vsel %vm773_vm2, 1.0, %v6136_v15  ;;  %v1021_v61 = vmul.f32 %v4619_v2, %v982_v54  ;;  %v1022_v21 = vmul.f32 %v4619_v2, %v983_v62 }
  0x4e   : > { %6159 = vst [vmem:[#allocation8_spill] sm:$0xff] %v4900_v19  ;;  %v1438_v14 = vmul.f32 %v4900_v19, %v4887_v51  ;;  %v1549_v9 = vshrl.u32 %v1458_v43, 16  ;;  %vm775_vm3 = vcmp.ge.s32.totalorder %v539_v5, 1  ;;  %v362_v30 = vadd.s32 216, %v4614_v1 }
  0x4f   : > { %v1548_v42 = vsel %vm1464_vm4, %v1543_v3, %v1547_v13  ;;  %v1330_v58 = vpack.c.bf16 %v1091_v38, %v4887_v51  ;;  %v4913_v53 = vsel %vm775_vm3, 1.0, %v6136_v15  ;;  %v1060_v54 = vadd.f32 %v4636_v7, %v1021_v61  ;;  %v989_v15 = vld [vmem:[%s4631_s16 + $0xf8] sm:$0xff] }
  0x50   : > { %6160 = vst [vmem:[#allocation9_spill] sm:$0xff] %v4913_v53  ;;  %1612 = vrot.lane.b32.xlu1 %v1548_v42, %s4552_s20  ;;  %1371 = vrot.lane.b32.xlu0 %v1329_v56, %s4551_s19  ;;  %v1459_v43 = vpack.c.bf16 %v1091_v38, %v1438_v14  ;;  %v1061_v62 = vadd.f32 %v4636_v7, %v1022_v21  ;;  %v560_v4 = vand.u32 15, %v362_v30  ;;  %v366_v60 = vadd.s32 248, %v4614_v1 }
  0x51   : > { %v1023_v63 = vmul.f32 %v4619_v2, %v984_v18  ;;  %v4920_v5 = vmax.f32 %v1060_v54, 0.0  ;;  %v1024_v3 = vmul.f32 %v4619_v2, %v985_v31  ;;  %v1027_v10 = vmul.f32 %v4619_v2, %v988_v27 }
  0x52   : > { %v1551_v61 = vor.u32 %v1549_v9, %v1547_v13  ;;  %v1553_v19 = vshll.u32 %v1459_v43, 16  ;;  %v4926_v42 = vmax.f32 %v1061_v62, 0.0  ;;  %vm874_vm5 = vcmp.lt.s32.totalorder %v560_v4, 15 }
  0x53   : > { %vm945_vm6 = vcmask 90112   ;;  %vm946_vm7 = vsmask.f32 256  ;;  %v1440_v56 = vmul.f32 %v4913_v53, %v4920_v5  ;;  %v1557_v21 = vshrl.u32 %v1459_v43, 16 }
  0x54   : > { %v1062_v18 = vadd.f32 %v4636_v7, %v1023_v63  ;;  %v1063_v14 = vadd.f32 %v4636_v7, %v1024_v3  ;;  %v1123_v30 = vmul.f32 %v4897_v12, %v1091_v38  ;;  %1373 = vrot.lane.b32.xlu1 %v1330_v58, %s4551_s19  ;;  %v1555_v31 = vrot.slane %v1553_v19, 1  ;;  %vm4972_vm13 = vmand %vm945_vm6, %vm946_vm7 }
  0x55   : > { %v588_v13 = vand.u32 15, %v366_v60  ;;  %v1028_v9 = vmul.f32 %v4619_v2, %v989_v15  ;;  %v1460_v27 = vpack.c.bf16 %v4926_v42, %v1440_v56  ;;  %v1331_v54 = vpack.c.bf16 %v4926_v42, %v4920_v5  ;;  %v986_v56 = vld [vmem:[%s4631_s16 + $0xe0] sm:$0xff] }
  0x56   : > { %v6161_v62 = vmov 0.0   ;;  %v1066_v4 = vadd.f32 %v4636_v7, %v1027_v10  ;;  %v1556_v63 = vsel %vm1464_vm4, %v1551_v61, %v1555_v31  ;;  %v1095_v38 = vmax.f32 %v1063_v14, 0.0 }
  0x57   : > { %v4939_v43 = vsel %vm874_vm5, 1.0, %v6161_v62  ;;  %vm878_vm8 = vcmp.lt.s32.totalorder %v588_v13, 15  ;;  %v1067_v19 = vadd.f32 %v4636_v7, %v1028_v9  ;;  %1614 = vrot.lane.b32.xlu0 %v1556_v63, %s4552_s20  ;;  %v1559_v15 = vor.u32 %v1557_v21, %v1555_v31  ;;  %v987_v63 = vld [vmem:[%s4631_s16 + $0xe8] sm:$0xff] }
  0x58   : > { %6162 = vst [vmem:[#allocation10_spill] sm:$0xff] %v4939_v43  ;;  %v1561_v60 = vshll.u32 %v1460_v27, 16  ;;  %v1094_v58 = vmax.f32 %v1062_v18, 0.0  ;;  %v4946_v3 = vsel %vm878_vm8, 1.0, %v6161_v62  ;;  %v1127_v53 = vmul.f32 %v4939_v43, %v1095_v38 }
  0x59   : > { %6163 = vst [vmem:[#allocation11_spill] sm:$0xff] %v4946_v3  ;;  %v1098_v12 = vmax.f32 %v1066_v4, 0.0  ;;  %v1099_v10 = vmax.f32 %v1067_v19, 0.0  ;;  %v361_v61 = vadd.s32 208, %v4614_v1  ;;  %v363_v46 = vadd.s32 224, %v4614_v1 }
  0x5a   : > { %v1563_v14 = vrot.slane %v1561_v60, 1  ;;  %v1332_v13 = vpack.c.bf16 %v1095_v38, %v1094_v58  ;;  %v364_v9 = vadd.s32 232, %v4614_v1  ;;  %v1565_v31 = vshrl.u32 %v1460_v27, 16 }
  0x5b   : > { %v1131_v21 = vmul.f32 %v4946_v3, %v1099_v10  ;;  %v553_v18 = vand.u32 15, %v361_v61  ;;  %v1025_v11 = vmul.f32 %v4619_v2, %v986_v56  ;;  %1375 = vrot.lane.b32.xlu0 %v1331_v54, %s4551_s19  ;;  %v1334_v4 = vpack.c.bf16 %v1099_v10, %v1098_v12  ;;  %v948_v54 = vld [vmem:[#allocation2 + $0x8] sm:$0x1] }
  0x5c   : > { %v1564_v39 = vsel %vm1464_vm4, %v1559_v15, %v1563_v14  ;;  %v567_v19 = vand.u32 15, %v363_v46  ;;  %v574_v43 = vand.u32 15, %v364_v9  ;;  %vm1292_vm9 = vcmask 31744  }
  0x5d   : > { %vm1293_vm10 = vsmask.f32 7938  ;;  %1616 = vrot.lane.b32.xlu1 %v1564_v39, %s4552_s20  ;;  %v4959_v60 = vpack.c.bf16 %v1131_v21, %v1098_v12  ;;  %vm777_vm11 = vcmp.ge.s32.totalorder %v553_v18, 1  ;;  %v1026_v3 = vmul.f32 %v4619_v2, %v987_v63 }
  0x5e   : > { %v1064_v27 = vadd.f32 %v4636_v7, %v1025_v11  ;;  %v4964_v56 = vpack.c.bf16 %v1123_v30, %v4887_v51  ;;  %v4967_v15 = vsel %vm777_vm11, 1.0, %v6161_v62  ;;  %vm779_vm12 = vcmp.ge.s32.totalorder %v567_v19, 1  ;;  %vm5019_vm0 = vmand %vm1292_vm9, %vm1293_vm10 }
  0x5f   : > { %6164 = vst [vmem:[#allocation12_spill] sm:$0xff] %v4967_v15  ;;  %v365_v46 = vadd.s32 240, %v4614_v1  ;;  %v4976_v61 = vpack.c.bf16 %v1127_v53, %v1094_v58  ;;  %v1442_v2 = vmul.f32 %v4967_v15, %v1094_v58  ;;  %v1567_v11 = vor.u32 %v1565_v31, %v1563_v14  ;;  %1381 = vrot.lane.b32.xlu0 %v1334_v4, %s4551_s19 }
  0x60   : > { %v4980_v51 = vsel %vm779_vm12, 1.0, %v6161_v62  ;;  %vm4983_vm14 = vcmp.lt.s32.totalorder %v574_v43, 15  ;;  %v1065_v9 = vadd.f32 %v4636_v7, %v1026_v3  ;;  %v4988_v63 = vmax.f32 %v1064_v27, 0.0 }
  0x61   : > { %6167 = vst [vmem:[#allocation13_spill] sm:$0xff] %v4980_v51  ;;  %v581_v21 = vand.u32 15, %v365_v46  ;;  %1377 = vrot.lane.b32.xlu1 %v1332_v13, %s4551_s19  ;;  %v1268_v53 = vshrl.u32 %v4959_v60, 16  ;;  %v1461_v14 = vpack.c.bf16 %v1095_v38, %v1442_v2  ;;  %v949_v18 = vsel %vm4972_vm13, 0, %v948_v54 }
  0x62   : > { %v4995_v31 = vmax.f32 %v1065_v9, 0.0  ;;  %v1444_v43 = vmul.f32 %v4980_v51, %v4988_v63  ;;  %950 = vst [vmem:[#allocation2 + $0x8] sm:$0x1] %v949_v18  ;;  %v338_v7 = vadd.s32 24, %v4614_v1  ;;  %v340_v19 = vadd.s32 40, %v4614_v1 }
  0x63   : > { %vm781_vm15 = vcmp.ge.s32.totalorder %v581_v21, 1  ;;  %v1569_v3 = vshll.u32 %v1461_v14, 16  ;;  %v1573_v4 = vshrl.u32 %v1461_v14, 16  ;;  %v6171_v39 = vshll.u32 %v4686_v49, 16 }
  0x64   : > { %v5001_v13 = vsel %vm781_vm15, 1.0, %v6161_v62  ;;  %v1462_v38 = vpack.c.bf16 %v4995_v31, %v1444_v43  ;;  %v1333_v27 = vpack.c.bf16 %v4995_v31, %v4988_v63  ;;  %v392_v9 = vand.u32 15, %v338_v7  ;;  %v4536_v43 = vld [vmem:[%s6127_s1 + $0x8] sm:$0x3f]  }
  0x65   : > { %6170 = vst [vmem:[#allocation14_spill] sm:$0xff] %v5001_v13  ;;  %v1446_v46 = vmul.f32 %v5001_v13, %v1098_v12  ;;  %v1154_v54 = vor.u32 %v6171_v39, %v4875_v29  ;;  %v1571_v2 = vrot.slane %v1569_v3, 1  ;;  %v406_v21 = vand.u32 15, %v340_v19 }
  0x66   : > { %v1172_v14 = vshrl.u32 %v4725_v33, 16  ;;  %v1577_v18 = vshll.u32 %v1462_v38, 16  ;;  %v1581_v51 = vshrl.u32 %v1462_v38, 16  ;;  %v1175_v15 = vshll.u32 %v4725_v33, 16 }
  0x67   : > { %v1463_v58 = vpack.c.bf16 %v1099_v10, %v1446_v46  ;;  %v1572_v12 = vsel %vm1464_vm4, %v1567_v11, %v1571_v2  ;;  %v1575_v13 = vor.u32 %v1573_v4, %v1571_v2  ;;  %vm850_vm1 = vcmp.lt.s32.totalorder %v392_v9, 15  ;;  %v5041_v9 = vld [vmem:[%s6127_s1] sm:$0x3f]  }
  0x68   : > { %vm852_vm2 = vcmp.lt.s32.totalorder %v406_v21, 15  ;;  %1618 = vrot.lane.b32.xlu1 %v1572_v12, %s4552_s20  ;;  %v1579_v10 = vrot.slane %v1577_v18, 1  ;;  %v5025_v3 = vsel %vm850_vm1, 1.0, %v6161_v62  ;;  %v5032_v38 = vrot.slane %v1172_v14, 7 }
  0x69   : > { %v1585_v7 = vshll.u32 %v1463_v58, 16  ;;  %v1589_v33 = vshrl.u32 %v1463_v58, 16  ;;  %v1295_v19 = vld [vmem:[#allocation2 + $0x8] sm:$0xff]  ;;  %v1103_v11 = vmul.f32 %v5025_v3, %v4672_v37  ;;  %v5030_v4 = vsel %vm852_vm2, 1.0, %v6161_v62 }
  0x6a   : > { %vm1744_vm3 = vcmask 1045504   ;;  %v1580_v46 = vsel %vm1464_vm4, %v1575_v13, %v1579_v10  ;;  %v1583_v2 = vor.u32 %v1581_v51, %v1579_v10  ;;  %v1296_v58 = vsel %vm5019_vm0, %v1154_v54, %v1295_v19 }
  0x6b   : > { %v1587_v39 = vrot.slane %v1585_v7, 1  ;;  %4518 = vmatprep.subr.msk.bf16.mxu0 %vm1744_vm3, %v4536_v43  ;;  %v5043_v37 = vrot.slane %v1268_v53, 7  ;;  %v5048_v21 = vsel %vm4983_vm14, 1.0, %v6161_v62  ;;  %1620 = vrot.lane.b32.xlu0 %v1580_v46, %s4552_s20  ;;  %1297 = vst [vmem:[#allocation2 + $0x8] sm:$0xff] %v1296_v58  ;;  %v1133_v51 = vpack.c.bf16 %v1103_v11, %v4670_v36 }
  0x6c   : > { %v1105_v13 = vmul.f32 %v5030_v4, %v4690_v52  ;;  %1379 = vrot.lane.b32.xlu1 %v1333_v27, %s4551_s19  ;;  %v1746_v53 = vsel %vm1744_vm3, %v4536_v43, 0  ;;  %v344_v18 = vadd.s32 72, %v4614_v1  ;;  %v1177_v7 = vor.u32 %v1175_v15, %v5032_v38 }
  0x6d   : > { %v1591_v54 = vor.u32 %v1589_v33, %v1587_v39  ;;  %v1588_v14 = vsel %vm1464_vm4, %v1583_v2, %v1587_v39  ;;  %v1156_v30 = vshrl.u32 %v1133_v51, 16  ;;  %v1159_v12 = vshll.u32 %v1133_v51, 16  ;;  %4187 = vmatpush3.bf16.msra.mxu0 %v1746_v53 }
  0x6e   : > { %v1134_v10 = vpack.c.bf16 %v1105_v13, %v4682_v47  ;;  %4519 = vmatprep.subr.msk.bf16.mxu0 %vm1744_vm3, %v5041_v9  ;;  %v434_v36 = vand.u32 15, %v344_v18  ;;  %v1188_v52 = vshrl.u32 %v4769_v24, 16  ;;  %v1191_v27 = vshll.u32 %v4769_v24, 16 }
  0x6f   : > { %v348_v33 = vadd.s32 104, %v4614_v1  ;;  %1622 = vrot.lane.b32.xlu0 %v1588_v14, %s4552_s20  ;;  %v1158_v43 = vrot.slane %v1156_v30, 7  ;;  %v1204_v47 = vshrl.u32 %v4881_v40, 16  ;;  %v1207_v39 = vshll.u32 %v4881_v40, 16 }
  0x70   : > { %v1164_v19 = vshrl.u32 %v1134_v10, 16  ;;  %v1167_v11 = vshll.u32 %v1134_v10, 16  ;;  %1624 = vrot.lane.b32.xlu1 %v1591_v54, %s4552_s20  ;;  %vm856_vm5 = vcmp.lt.s32.totalorder %v434_v36, 15  ;;  %v5068_v15 = vrot.slane %v1188_v52, 7 }
  0x71   : > { %v462_v46 = vand.u32 15, %v348_v33  ;;  %v1161_v2 = vor.u32 %v1159_v12, %v1158_v43  ;;  %v5072_v24 = vsel %vm856_vm5, 1.0, %v6161_v62  ;;  %v5074_v51 = vrot.slane %v1204_v47, 7 }
  0x72   : > { %v1166_v58 = vrot.slane %v1164_v19, 7  ;;  %v1109_v13 = vmul.f32 %v5072_v24, %v4742_v55  ;;  %v1193_v14 = vor.u32 %v1191_v27, %v5068_v15  ;;  %v352_v54 = vadd.s32 136, %v4614_v1 }
  0x73   : > { %vm860_vm6 = vcmp.lt.s32.totalorder %v462_v46, 15  ;;  %1592 = vrot.lane.b32.xlu0 %v4702_v0, %s4552_s20  ;;  %v1162_v40 = vsel %vm946_vm7, %v4875_v29, %v1161_v2  ;;  %v1209_v0 = vor.u32 %v1207_v39, %v5074_v51  ;;  %v1220_v36 = vshrl.u32 %v4885_v50, 16 }
  0x74   : > { %v1169_v53 = vor.u32 %v1167_v11, %v1166_v58  ;;  %v1178_v18 = vsel %vm946_vm7, %v1166_v58, %v1177_v7  ;;  %v5086_v30 = vsel %vm860_vm6, 1.0, %v6161_v62  ;;  %1299 = vst.msk [vmem:[#allocation2 + $0x10] sm:$0xff] %vm1292_vm9, %v1162_v40  ;;  %v1136_v55 = vpack.c.bf16 %v1109_v13, %v4735_v45 }
  0x75   : > { %1301 = vst.msk [vmem:[#allocation2 + $0x20] sm:$0xff] %vm1292_vm9, %v1178_v18  ;;  %v1113_v12 = vmul.f32 %v5086_v30, %v4781_v44  ;;  %v490_v10 = vand.u32 15, %v352_v54  ;;  %v1223_v7 = vshll.u32 %v4885_v50, 16  ;;  %v356_v52 = vadd.s32 168, %v4614_v1 }
  0x76   : > { %v1170_v29 = vsel %vm946_vm7, %v1158_v43, %v1169_v53  ;;  %v1180_v27 = vshrl.u32 %v1136_v55, 16  ;;  %v1183_v33 = vshll.u32 %v1136_v55, 16  ;;  %v5103_v19 = vrot.slane %v1220_v36, 7 }
  0x77   : > { %1300 = vst.msk [vmem:[#allocation2 + $0x18] sm:$0xff] %vm1292_vm9, %v1170_v29  ;;  %v1138_v45 = vpack.c.bf16 %v1113_v12, %v4778_v41  ;;  %vm864_vm8 = vcmp.lt.s32.totalorder %v490_v10, 15  ;;  %v518_v11 = vand.u32 15, %v356_v52  ;;  %v1236_v43 = vshrl.u32 %v4964_v56, 16 }
  0x78   : > { %v5101_v44 = vsel %vm864_vm8, 1.0, %v6161_v62  ;;  %v1182_v47 = vrot.slane %v1180_v27, 7  ;;  %v1129_v2 = vmul.f32 %v5048_v21, %v4995_v31  ;;  %v1239_v58 = vshll.u32 %v4964_v56, 16  ;;  %v954_v27 = vld [vmem:[#allocation2 + $0x80] sm:$0x80] }
  0x79   : > { %v1196_v46 = vshrl.u32 %v1138_v45, 16  ;;  %v1199_v50 = vshll.u32 %v1138_v45, 16  ;;  %v1117_v39 = vmul.f32 %v5101_v44, %v4826_v48  ;;  %vm868_vm10 = vcmp.lt.s32.totalorder %v518_v11, 15 }
  0x7a   : > { %v5110_v41 = vrot.slane %v1236_v43, 7  ;;  %v1185_v13 = vor.u32 %v1183_v33, %v1182_v47  ;;  %v1194_v54 = vsel %vm946_vm7, %v1182_v47, %v1193_v14  ;;  %v1225_v18 = vor.u32 %v1223_v7, %v5103_v19 }
  0x7b   : > { %v1198_v40 = vrot.slane %v1196_v46, 7  ;;  %v1140_v53 = vpack.c.bf16 %v1117_v39, %v4816_v32  ;;  %1303 = vst.msk [vmem:[#allocation2 + $0x30] sm:$0xff] %vm1292_vm9, %v1194_v54  ;;  %v5118_v48 = vsel %vm868_vm10, 1.0, %v6161_v62  ;;  %v360_v31 = vadd.s32 200, %v4614_v1 }
  0x7c   : > { %v1252_v55 = vshrl.u32 %v4976_v61, 16  ;;  %v1186_v56 = vsel %vm946_vm7, %v5032_v38, %v1185_v13  ;;  %v1121_v29 = vmul.f32 %v5118_v48, %v4869_v23  ;;  %v1241_v36 = vor.u32 %v1239_v58, %v5110_v41 }
  0x7d   : > { %v1201_v12 = vor.u32 %v1199_v50, %v1198_v40  ;;  %v1210_v14 = vsel %vm946_vm7, %v1198_v40, %v1209_v0  ;;  %v1212_v10 = vshrl.u32 %v1140_v53, 16  ;;  %1302 = vst.msk [vmem:[#allocation2 + $0x28] sm:$0xff] %vm1292_vm9, %v1186_v56  ;;  %v1215_v32 = vshll.u32 %v1140_v53, 16 }
  0x7e   : > { %1305 = vst.msk [vmem:[#allocation2 + $0x40] sm:$0xff] %vm1292_vm9, %v1210_v14  ;;  %v546_v1 = vand.u32 15, %v360_v31  ;;  %v1254_v38 = vrot.slane %v1252_v55, 7  ;;  %vm951_vm11 = vcmask 97287   ;;  %v1142_v0 = vpack.c.bf16 %v1121_v29, %v4861_v6 }
  0x7f   : > { %v1202_v7 = vsel %vm946_vm7, %v5068_v15, %v1201_v12  ;;  %v1214_v52 = vrot.slane %v1212_v10, 7  ;;  %vm952_vm13 = vsmask.f32 7966  ;;  %v1146_v33 = vpack.c.bf16 %v1129_v2, %v4988_v63 }
  0x80   : > { %1304 = vst.msk [vmem:[#allocation2 + $0x38] sm:$0xff] %vm1292_vm9, %v1202_v7  ;;  %vm872_vm12 = vcmp.lt.s32.totalorder %v546_v1, 15  ;;  %v1255_v15 = vshll.u32 %v4976_v61, 16  ;;  %vm953_vm14 = vmand %vm951_vm11, %vm952_vm13  ;;  %v1228_v43 = vshrl.u32 %v1142_v0, 16  ;;  %v1231_v47 = vshll.u32 %v1142_v0, 16 }
  0x81   : > { %v1217_v45 = vor.u32 %v1215_v32, %v1214_v52  ;;  %v1226_v23 = vsel %vm946_vm7, %v1214_v52, %v1225_v18  ;;  %v5137_v11 = vsel %vm872_vm12, 1.0, %v6161_v62  ;;  %v955_v46 = vsel %vm953_vm14, 0, %v954_v27 }
  0x82   : > { %1307 = vst.msk [vmem:[#allocation2 + $0x50] sm:$0xff] %vm1292_vm9, %v1226_v23  ;;  %v1125_v6 = vmul.f32 %v5137_v11, %v4926_v42  ;;  %956 = vst [vmem:[#allocation2 + $0x80] sm:$0x80] %v955_v46  ;;  %v1260_v50 = vshrl.u32 %v1146_v33, 16  ;;  %v6174_v62 = vshll.u32 %v4959_v60, 16  ;;  %v1263_v61 = vshll.u32 %v1146_v33, 16 }
  0x83   : > { %v1218_v63 = vsel %vm946_vm7, %v5074_v51, %v1217_v45  ;;  %vm943_vm15 = vcmask 97280   ;;  %v1230_v2 = vrot.slane %v1228_v43, 7  ;;  %v1257_v13 = vor.u32 %v1255_v15, %v1254_v38  ;;  %v5191_v33 = vld [vmem:[%s6127_s1 + $0x10] sm:$0x3f]  }
  0x84   : > { %v1273_v39 = vor.u32 %v6174_v62, %v5043_v37  ;;  %1306 = vst.msk [vmem:[#allocation2 + $0x48] sm:$0xff] %vm1292_vm9, %v1218_v63  ;;  %v1144_v58 = vpack.c.bf16 %v1125_v6, %v4920_v5  ;;  %v1262_v54 = vrot.slane %v1260_v50, 7  ;;  %v4553_v42 = vmov 0  }
  0x85   : > { %944 = vst.msk [vmem:[#allocation2] sm:$0xff] %vm943_vm15, %v4553_v42  ;;  %957 = vst.msk [vmem:[#allocation2 + $0x88] sm:$0xff] %vm943_vm15, %v4553_v42  ;;  %v1233_v51 = vor.u32 %v1231_v47, %v1230_v2  ;;  %v1242_v40 = vsel %vm946_vm7, %v1230_v2, %v1241_v36  ;;  %vm1314_vm1 = vcmask 24576   ;;  %vm1399_vm5 = vcmask 64544  }
  0x86   : > { %v1244_v53 = vshrl.u32 %v1144_v58, 16  ;;  %v1247_v60 = vshll.u32 %v1144_v58, 16  ;;  %1309 = vst.msk [vmem:[#allocation2 + $0x60] sm:$0xff] %vm1292_vm9, %v1242_v40  ;;  %v1274_v18 = vsel %vm946_vm7, %v1262_v54, %v1273_v39  ;;  %v1265_v31 = vor.u32 %v1263_v61, %v1262_v54  ;;  %vm5164_vm2 = vmand %vm1314_vm1, %vm946_vm7 }
  0x87   : > { %v1234_v5 = vsel %vm946_vm7, %v5103_v19, %v1233_v51  ;;  %1313 = vst.msk [vmem:[#allocation2 + $0x80] sm:$0xff] %vm1292_vm9, %v1274_v18  ;;  %vm1648_vm6 = vcmask 97344   ;;  %v1918_v0 = vsel %vm1744_vm3, %v5041_v9, 0  ;;  %vm1643_vm10 = vcmask 97351  }
  0x88   : > { %v1246_v55 = vrot.slane %v1244_v53, 7  ;;  %1308 = vst.msk [vmem:[#allocation2 + $0x58] sm:$0xff] %vm1292_vm9, %v1234_v5  ;;  %v1266_v56 = vsel %vm946_vm7, %v1254_v38, %v1265_v31  ;;  %vm5258_vm8 = vmand %vm1648_vm6, %vm1464_vm4 }
  0x89   : > { %1312 = vst.msk [vmem:[#allocation2 + $0x78] sm:$0xff] %vm1292_vm9, %v1266_v56  ;;  %vm5267_vm11 = vmand %vm1643_vm10, %vm952_vm13 }
  0x8a   : > { %v1249_v12 = vor.u32 %v1247_v60, %v1246_v55  ;;  %v1258_v14 = vsel %vm946_vm7, %v1246_v55, %v1257_v13 }
  0x8b   : > { %1311 = vst.msk [vmem:[#allocation2 + $0x70] sm:$0xff] %vm1292_vm9, %v1258_v14 }
  0x8c   : > { %v1250_v19 = vsel %vm946_vm7, %v5110_v41, %v1249_v12  ;;  %v1316_v32 = vld [vmem:[#allocation2 + $0x88] sm:$0x1] }
  0x8d   : > { %1310 = vst.msk [vmem:[#allocation2 + $0x68] sm:$0xff] %vm1292_vm9, %v1250_v19  ;;  %v1317_v29 = vsel %vm5164_vm2, %v5043_v37, %v1316_v32 }
  0x8e   : > { %1318 = vst [vmem:[#allocation2 + $0x88] sm:$0x1] %v1317_v29  ;;  %v1352_v36 = vpop.permute.xlu0 %1351 }
  0x8f   : > { %1400 = vst.msk [vmem:[#allocation2 + $0x8] sm:$0xff] %vm1399_vm5, %v1352_v36 }
  0x92   : > { %v1354_v1 = vpop.permute.xlu0 %1353 }
  0x93   : > { %1401 = vst.msk [vmem:[#allocation2 + $0x10] sm:$0xff] %vm1399_vm5, %v1354_v1 }
  0x96   : > { %v1356_v7 = vpop.permute.xlu0 %1355  ;;  %v1595_v52 = vpop.permute.xlu1 %1594 }
  0x97   : > { %1402 = vst.msk [vmem:[#allocation2 + $0x18] sm:$0xff] %vm1399_vm5, %v1356_v7  ;;  %v6177_v7 = vmov 0 }
  0x98   : > { %1649 = vst.msk [vmem:[#allocation2 + $0x8] sm:$0xff] %vm1648_vm6, %v1595_v52  ;;  %v6178_v7 = vsel %vm5258_vm8, 4294967295, %v6177_v7 }
  0x99   : > { %6179 = vst [vmem:[#allocation15_spill] sm:$0xff] %v6178_v7 }
  0x9a   : > { %v1597_v41 = vpop.permute.xlu1 %1596 }
  0x9b   : > { %1650 = vst.msk [vmem:[#allocation2 + $0x10] sm:$0xff] %vm1648_vm6, %v1597_v41 }
  0x9e   : > { %v1358_v38 = vpop.permute.xlu1 %1357 }
  0x9f   : > { %v5180_v27 = vld [vmem:[#allocation2 + $0x8] sm:$0xff]  ;;  %1403 = vst.msk [vmem:[#allocation2 + $0x20] sm:$0xff] %vm1399_vm5, %v1358_v38  ;;  %v1599_v37 = vpop.permute.xlu0 %1598 }
  0xa0   : > { %4188 = vmatprep.mubr.msk.bf16.mxu0 %vm943_vm15, %v5180_v27  ;;  %1651 = vst.msk [vmem:[#allocation2 + $0x18] sm:$0xff] %vm1648_vm6, %v1599_v37 }
  0xa2   : > { %v5193_v45 = vld [vmem:[#allocation2 + $0x10] sm:$0xff] }
  0xa3   : > { %v1360_v23 = vpop.permute.xlu0 %1359  ;;  %4189 = vmatmul.mubr.msk.bf16.vlgmr.msra.gmra.mrb[0].mxu0 %vm943_vm15, %v5193_v45 }
  0xa4   : > { %v1601_v15 = vpop.permute.xlu1 %1600  ;;  %1404 = vst.msk [vmem:[#allocation2 + $0x28] sm:$0xff] %vm1399_vm5, %v1360_v23  ;;  %4221 = vmatpush3.bf16.msra.mxu0 %v1918_v0  ;;  %v6180_v23 = vmov 0 }
  0xa5   : > { %1652 = vst.msk [vmem:[#allocation2 + $0x20] sm:$0xff] %vm1648_vm6, %v1601_v15  ;;  %4520 = vmatprep.subr.msk.bf16.mxu0 %vm1744_vm3, %v5191_v33  ;;  %v6181_v23 = vsel %vm5267_vm11, 4294967295, %v6180_v23  ;;  %v1645_v15 = vld [vmem:[#allocation2] sm:$0x80] }
  0xa6   : > { %6182 = vst [vmem:[#allocation16_spill] sm:$0xff] %v6181_v23 }
  0xa7   : > { %v5201_v9 = vld [vmem:[#allocation2 + $0x18] sm:$0xff] }
  0xa8   : > { %v1362_v43 = vpop.permute.xlu1 %1361  ;;  %4192 = vmatprep.mubr.msk.bf16.mxu0 %vm943_vm15, %v5201_v9 }
  0xa9   : > { %1405 = vst.msk [vmem:[#allocation2 + $0x30] sm:$0xff] %vm1399_vm5, %v1362_v43  ;;  %v1603_v47 = vpop.permute.xlu0 %1602 }
  0xaa   : > { %1653 = vst.msk [vmem:[#allocation2 + $0x28] sm:$0xff] %vm1648_vm6, %v1603_v47 }
  0xac   : > { %v5207_v6 = vld [vmem:[#allocation2 + $0x20] sm:$0xff] }
  0xad   : > { %v1364_v46 = vpop.permute.xlu0 %1363  ;;  %4193 = vmatmul.mubr.msk.bf16.gmra.mrb[4].mxu0 %vm943_vm15, %v5207_v6 }
  0xae   : > { %v1605_v63 = vpop.permute.xlu1 %1604  ;;  %1406 = vst.msk [vmem:[#allocation2 + $0x38] sm:$0xff] %vm1399_vm5, %v1364_v46 }
  0xaf   : > { %1654 = vst.msk [vmem:[#allocation2 + $0x30] sm:$0xff] %vm1648_vm6, %v1605_v63 }
  0xb1   : > { %v5213_v50 = vld [vmem:[#allocation2 + $0x28] sm:$0xff] }
  0xb2   : > { %v1366_v62 = vpop.permute.xlu1 %1365  ;;  %4196 = vmatprep.mubr.msk.bf16.mxu0 %vm943_vm15, %v5213_v50 }
  0xb3   : > { %1407 = vst.msk [vmem:[#allocation2 + $0x40] sm:$0xff] %vm1399_vm5, %v1366_v62 }
  0xb4   : > { %v1607_v39 = vpop.permute.xlu0 %1606 }
  0xb5   : > { %1655 = vst.msk [vmem:[#allocation2 + $0x38] sm:$0xff] %vm1648_vm6, %v1607_v39  ;;  %v2154_v39 = vsel %vm1744_vm3, %v5191_v33, 0  ;;  %v5332_v33 = vld [vmem:[%s6131_s5] ss:$0 sm:$0xff] }
  0xb6   : > { %v5219_v61 = vld [vmem:[#allocation2 + $0x30] sm:$0xff] }
  0xb7   : > { %v1609_v2 = vpop.permute.xlu1 %1608  ;;  %4197 = vmatmul.mubr.msk.bf16.gmra.mrb[8].mxu0 %vm943_vm15, %v5219_v61 }
  0xb8   : > { %1656 = vst.msk [vmem:[#allocation2 + $0x40] sm:$0xff] %vm1648_vm6, %v1609_v2  ;;  %v1368_v58 = vpop.permute.xlu0 %1367 }
  0xb9   : > { %1408 = vst.msk [vmem:[#allocation2 + $0x48] sm:$0xff] %vm1399_vm5, %v1368_v58 }
  0xbb   : > { %v1370_v13 = vpop.permute.xlu1 %1369 }
  0xbc   : > { %1409 = vst.msk [vmem:[#allocation2 + $0x50] sm:$0xff] %vm1399_vm5, %v1370_v13  ;;  %v5226_v54 = vld [vmem:[#allocation2 + $0x38] sm:$0xff] }
  0xbd   : > { %4200 = vmatprep.mubr.msk.bf16.mxu0 %vm943_vm15, %v5226_v54 }
  0xbe   : > { %v1611_v42 = vpop.permute.xlu0 %1610 }
  0xbf   : > { %1657 = vst.msk [vmem:[#allocation2 + $0x48] sm:$0xff] %vm1648_vm6, %v1611_v42  ;;  %v5231_v51 = vld [vmem:[#allocation2 + $0x40] sm:$0xff] }
  0xc0   : > { %4201 = vmatmul.mubr.msk.bf16.gmra.mrb[12].mxu0 %vm943_vm15, %v5231_v51 }
  0xc2   : > { %v1613_v40 = vpop.permute.xlu1 %1612  ;;  %v1372_v53 = vpop.permute.xlu0 %1371 }
  0xc3   : > { %1658 = vst.msk [vmem:[#allocation2 + $0x50] sm:$0xff] %vm1648_vm6, %v1613_v40 }
  0xc4   : > { %1410 = vst.msk [vmem:[#allocation2 + $0x58] sm:$0xff] %vm1399_vm5, %v1372_v53 }
  0xc6   : > { %v1374_v60 = vpop.permute.xlu1 %1373  ;;  %v5237_v18 = vld [vmem:[#allocation2 + $0x48] sm:$0xff] }
  0xc7   : > { %1411 = vst.msk [vmem:[#allocation2 + $0x60] sm:$0xff] %vm1399_vm5, %v1374_v60  ;;  %4204 = vmatprep.mubr.msk.bf16.mxu0 %vm943_vm15, %v5237_v18 }
  0xc9   : > { %v1615_v31 = vpop.permute.xlu0 %1614 }
  0xca   : > { %1659 = vst.msk [vmem:[#allocation2 + $0x58] sm:$0xff] %vm1648_vm6, %v1615_v31  ;;  %v5243_v5 = vld [vmem:[#allocation2 + $0x50] sm:$0xff] }
  0xcb   : > { %4205 = vmatmul.mubr.msk.bf16.gmra.mrb[16].mxu0 %vm943_vm15, %v5243_v5 }
  0xcd   : > { %v1376_v55 = vpop.permute.xlu0 %1375 }
  0xce   : > { %1412 = vst.msk [vmem:[#allocation2 + $0x68] sm:$0xff] %vm1399_vm5, %v1376_v55 }
  0xcf   : > { %v1617_v56 = vpop.permute.xlu1 %1616 }
  0xd0   : > { %1660 = vst.msk [vmem:[#allocation2 + $0x60] sm:$0xff] %vm1648_vm6, %v1617_v56 }
  0xd1   : > { %v1382_v12 = vpop.permute.xlu0 %1381  ;;  %v1680_v14 = vld [vmem:[#allocation2 + $0x58] sm:$0xff] }
  0xd2   : > { %1415 = vst.msk [vmem:[#allocation2 + $0x80] sm:$0xff] %vm1399_vm5, %v1382_v12  ;;  %4208 = vmatprep.mubr.msk.bf16.mxu0 %vm943_vm15, %v1680_v14 }
  0xd3   : > { %v1378_v19 = vpop.permute.xlu1 %1377 }
  0xd4   : > { %1413 = vst.msk [vmem:[#allocation2 + $0x70] sm:$0xff] %vm1399_vm5, %v1378_v19 }
  0xd7   : > { %v1681_v32 = vld [vmem:[#allocation2 + $0x60] sm:$0xff] }
  0xd8   : > { %4209 = vmatmul.mubr.msk.bf16.gmra.mrb[20].mxu0 %vm943_vm15, %v1681_v32 }
  0xd9   : > { %v1666_v38 = vld [vmem:[#allocation2 + $0x80] sm:$0xff] }
  0xda   : > { %v1619_v29 = vpop.permute.xlu1 %1618 }
  0xdb   : > { %1661 = vst.msk [vmem:[#allocation2 + $0x68] sm:$0xff] %vm1648_vm6, %v1619_v29 }
  0xdd   : > { %v1621_v36 = vpop.permute.xlu0 %1620 }
  0xde   : > { %1662 = vst.msk [vmem:[#allocation2 + $0x70] sm:$0xff] %vm1648_vm6, %v1621_v36  ;;  %v1380_v1 = vpop.permute.xlu1 %1379 }
  0xdf   : > { %1414 = vst.msk [vmem:[#allocation2 + $0x78] sm:$0xff] %vm1399_vm5, %v1380_v1 }
  0xe1   : > { %v1623_v52 = vpop.permute.xlu0 %1622 }
  0xe2   : > { %v1625_v41 = vpop.permute.xlu1 %1624  ;;  %1663 = vst.msk [vmem:[#allocation2 + $0x78] sm:$0xff] %vm1648_vm6, %v1623_v52  ;;  %v1682_v37 = vld [vmem:[#allocation2 + $0x68] sm:$0xff] }
  0xe3   : > { %v1667_v0 = vsel %vm5258_vm8, %v1625_v41, %v1666_v38  ;;  %4212 = vmatprep.mubr.msk.bf16.mxu0 %vm943_vm15, %v1682_v37 }
  0xe4   : > { %1668 = vst [vmem:[#allocation2 + $0x80] sm:$0xff] %v1667_v0 }
  0xe5   : > { %v1683_v43 = vld [vmem:[#allocation2 + $0x70] sm:$0xff]  ;;  %v1593_v47 = vpop.permute.xlu0 %1592 }
  0xe6   : > { %4213 = vmatmul.mubr.msk.bf16.gmra.mrb[24].mxu0 %vm943_vm15, %v1683_v43  ;;  %v1646_v46 = vsel %vm5267_vm11, %v1593_v47, %v1645_v15 }
  0xe7   : > { %1647 = vst [vmem:[#allocation2] sm:$0x80] %v1646_v46 }
  0xe9   : > { %v1684_v63 = vld [vmem:[#allocation2 + $0x78] sm:$0xff] }
  0xea   : > { %4216 = vmatprep.mubr.msk.bf16.mxu0 %vm943_vm15, %v1684_v63 }
  0xee   : > { %4217 = vmatmul.mubr.msk.bf16.gmra.mrb[28].mxu0 %vm943_vm15, %v1667_v0  ;;  %v1669_v62 = vld [vmem:[#allocation2] sm:$0xff] }
  0xef   : > { %4222 = vmatprep.mubr.msk.bf16.mxu0 %vm943_vm15, %v1669_v62 }
  0xf6   : > { %4223 = vmatmul.mubr.msk.bf16.vlgmr.msra.gmra.mrb[0].mxu0 %vm943_vm15, %v5180_v27  ;;  %v2096_v27 = vld [vmem:[#allocation2 + $0x88] sm:$0xff] }
  0xf7   : > { %4255 = vmatpush3.bf16.msra.mxu0 %v2154_v39  ;;  %4226 = vmatprep.mubr.msk.bf16.mxu0 %vm943_vm15, %v5193_v45 }
  0xfe   : > { %4227 = vmatmul.mubr.msk.bf16.gmra.mrb[4].mxu0 %vm943_vm15, %v5201_v9 }
  0xff   : > { %4230 = vmatprep.mubr.msk.bf16.mxu0 %vm943_vm15, %v5207_v6 }
 0x106   : > { %4231 = vmatmul.mubr.msk.bf16.gmra.mrb[8].mxu0 %vm943_vm15, %v5213_v50 }
 0x107   : > { %4234 = vmatprep.mubr.msk.bf16.mxu0 %vm943_vm15, %v5219_v61 }
 0x10e   : > { %4235 = vmatmul.mubr.msk.bf16.gmra.mrb[12].mxu0 %vm943_vm15, %v5226_v54 }
 0x10f   : > { %4238 = vmatprep.mubr.msk.bf16.mxu0 %vm943_vm15, %v5231_v51 }
 0x116   : > { %4239 = vmatmul.mubr.msk.bf16.gmra.mrb[16].mxu0 %vm943_vm15, %v5237_v18 }
 0x117   : > { %4242 = vmatprep.mubr.msk.bf16.mxu0 %vm943_vm15, %v5243_v5 }
 0x11e   : > { %4243 = vmatmul.mubr.msk.bf16.gmra.mrb[20].mxu0 %vm943_vm15, %v1680_v14 }
 0x11f   : > { %4246 = vmatprep.mubr.msk.bf16.mxu0 %vm943_vm15, %v1681_v32 }
 0x126   : > { %4247 = vmatmul.mubr.msk.bf16.gmra.mrb[24].mxu0 %vm943_vm15, %v1682_v37 }
 0x127   : > { %4250 = vmatprep.mubr.msk.bf16.mxu0 %vm943_vm15, %v1683_v43 }
 0x12e   : > { %4251 = vmatmul.mubr.msk.bf16.gmra.mrb[28].mxu0 %vm943_vm15, %v1684_v63 }
 0x12f   : > { %4256 = vmatprep.mubr.msk.bf16.mxu0 %vm943_vm15, %v5193_v45 }
 0x136   : > { %4257 = vmatmul.mubr.msk.bf16.vlgmr.msra.gmra.mrb[0].mxu0 %vm943_vm15, %v5201_v9  ;;  %v5337_v9 = vld [vmem:[%s6132_s6] ss:$0 sm:$0xff] }
 0x137   : > { %4260 = vmatprep.mubr.msk.bf16.mxu0 %vm943_vm15, %v5207_v6 }
 0x13e   : > { %4261 = vmatmul.mubr.msk.bf16.gmra.mrb[4].mxu0 %vm943_vm15, %v5213_v50 }
 0x13f   : > { %4264 = vmatprep.mubr.msk.bf16.mxu0 %vm943_vm15, %v5219_v61 }
 0x146   : > { %4265 = vmatmul.mubr.msk.bf16.gmra.mrb[8].mxu0 %vm943_vm15, %v5226_v54 }
 0x147   : > { %4268 = vmatprep.mubr.msk.bf16.mxu0 %vm943_vm15, %v5231_v51 }
 0x14e   : > { %4269 = vmatmul.mubr.msk.bf16.gmra.mrb[12].mxu0 %vm943_vm15, %v5237_v18 }
 0x14f   : > { %4272 = vmatprep.mubr.msk.bf16.mxu0 %vm943_vm15, %v5243_v5 }
 0x156   : > { %4273 = vmatmul.mubr.msk.bf16.gmra.mrb[16].mxu0 %vm943_vm15, %v1680_v14 }
 0x157   : > { %4276 = vmatprep.mubr.msk.bf16.mxu0 %vm943_vm15, %v1681_v32 }
 0x15e   : > { %4277 = vmatmul.mubr.msk.bf16.gmra.mrb[20].mxu0 %vm943_vm15, %v1682_v37 }
 0x15f   : > { %4280 = vmatprep.mubr.msk.bf16.mxu0 %vm943_vm15, %v1683_v43 }
 0x166   : > { %4281 = vmatmul.mubr.msk.bf16.gmra.mrb[24].mxu0 %vm943_vm15, %v1684_v63 }
 0x167   : > { %4284 = vmatprep.mubr.msk.bf16.mxu0 %vm943_vm15, %v1667_v0 }
 0x16e   : > { %4285 = vmatmul.mubr.msk.bf16.gmra.mrb[28].mxu0 %vm943_vm15, %v2096_v27 }
 0x209   : > { %v4258_v45 = vpop.f32.mrb[0].mxu0 }
 0x20a   : > { %v2358_v6 = vmul.f32 %v4258_v45, %v5332_v33  ;;  %v2190_v50 = vpop.f32.mrb[1].mxu0 }
 0x20b   : > { %v2356_v61 = vmul.f32 %v5332_v33, %v2190_v50  ;;  %v4259_v2 = vpop.f32.mrb[2].mxu0 }
 0x20c   : > { %v2397_v58 = vadd.f32 %v5337_v9, %v2358_v6  ;;  %v2359_v13 = vmul.f32 %v4259_v2, %v5332_v33  ;;  %v2193_v54 = vpop.f32.mrb[3].mxu0 }
 0x20d   : > { %v2395_v42 = vadd.f32 %v5337_v9, %v2356_v61  ;;  %v2357_v51 = vmul.f32 %v5332_v33, %v2193_v54 }
 0x20e   : > { %v2429_v40 = vmax.f32 %v2397_v58, 0.0  ;;  %v2398_v53 = vadd.f32 %v5337_v9, %v2359_v13 }
 0x20f   : > { %v2427_v60 = vmax.f32 %v2395_v42, 0.0  ;;  %v2396_v18 = vadd.f32 %v5337_v9, %v2357_v51 }
 0x210   : > { %v2770_v31 = vmul.f32 %v4661_v28, %v2429_v40  ;;  %v2430_v5 = vmax.f32 %v2398_v53, 0.0 }
 0x211   : > { %v2768_v55 = vmul.f32 %v4646_v16, %v2427_v60  ;;  %v2428_v56 = vmax.f32 %v2396_v18, 0.0  ;;  %v4262_v12 = vpop.f32.mrb[4].mxu0 }
 0x212   : > { %v2462_v14 = vmul.f32 %v5025_v3, %v2430_v5  ;;  %v5350_v19 = vpack.c.bf16 %v2430_v5, %v2770_v31  ;;  %v2362_v32 = vmul.f32 %v4262_v12, %v5332_v33  ;;  %v2206_v29 = vpop.f32.mrb[5].mxu0  ;;  %v2673_v36 = vpack.c.bf16 %v2430_v5, %v2429_v40 }
 0x213   : > { %v2460_v1 = vmul.f32 %v4656_v25, %v2428_v56  ;;  %v2800_v52 = vpack.c.bf16 %v2428_v56, %v2768_v55  ;;  %v2360_v41 = vmul.f32 %v5332_v33, %v2206_v29  ;;  %v4263_v38 = vpop.f32.mrb[6].mxu0  ;;  %v2672_v28 = vpack.c.bf16 %v2428_v56, %v2427_v60 }
 0x214   : > { %v2492_v37 = vpack.c.bf16 %v2462_v14, %v2429_v40  ;;  %v2401_v16 = vadd.f32 %v5337_v9, %v2362_v32  ;;  %v2363_v0 = vmul.f32 %v4263_v38, %v5332_v33  ;;  %2706 = vrot.lane.b32.xlu0 %v2673_v36, %s4551_s19  ;;  %v2209_v3 = vpop.f32.mrb[7].mxu0  ;;  %v2824_v6 = vshll.u32 %v5350_v19, 16 }
 0x215   : > { %v5358_v15 = vpack.c.bf16 %v2460_v1, %v2427_v60  ;;  %v2399_v43 = vadd.f32 %v5337_v9, %v2360_v41  ;;  %v2361_v47 = vmul.f32 %v5332_v33, %v2209_v3  ;;  %2704 = vrot.lane.b32.xlu1 %v2672_v28, %s4551_s19  ;;  %v2817_v25 = vshll.u32 %v2800_v52, 16 }
 0x216   : > { %v2515_v46 = vshrl.u32 %v2492_v37, 16  ;;  %v5363_v63 = vmax.f32 %v2401_v16, 0.0  ;;  %v2402_v62 = vadd.f32 %v5337_v9, %v2363_v0  ;;  %v2518_v39 = vshll.u32 %v2492_v37, 16 }
 0x217   : > { %v5366_v27 = vmax.f32 %v2399_v43, 0.0  ;;  %v2400_v45 = vadd.f32 %v5337_v9, %v2361_v47  ;;  %v2508_v50 = vshrl.u32 %v5358_v15, 16  ;;  %v5375_v58 = vrot.slane %v2817_v25, 1  ;;  %v5412_v25 = vld [vmem:[%s6128_s2 + $0x8] sm:$0x3f]  }
 0x218   : > { %v2774_v61 = vmul.f32 %v4718_v26, %v5363_v63  ;;  %v5373_v2 = vmax.f32 %v2402_v62, 0.0  ;;  %v2820_v40 = vshrl.u32 %v2800_v52, 16  ;;  %v5380_v53 = vrot.slane %v2515_v46, 7  ;;  %4521 = vmatprep.subr.msk.bf16.mxu1 %vm1744_vm3, %v5412_v25 }
 0x219   : > { %6183 = vst [vmem:[#allocation17_spill] sm:$0xff] %v5375_v58  ;;  %v2772_v54 = vmul.f32 %v4667_v34, %v5366_v27  ;;  %v2432_v42 = vmax.f32 %v2400_v45, 0.0  ;;  %v4266_v51 = vpop.f32.mrb[8].mxu0  ;;  %v2826_v29 = vrot.slane %v2824_v6, 1  ;;  %v5398_v38 = vrot.slane %v2508_v50, 7 }
 0x21a   : > { %v2466_v60 = vmul.f32 %v4698_v59, %v5373_v2  ;;  %v5385_v18 = vpack.c.bf16 %v5373_v2, %v2774_v61  ;;  %v2366_v26 = vmul.f32 %v4266_v51, %v5332_v33  ;;  %v2222_v31 = vpop.f32.mrb[9].mxu0  ;;  %v2822_v12 = vor.u32 %v2820_v40, %v5375_v58 }
 0x21b   : > { %v2464_v5 = vmul.f32 %v5030_v4, %v2432_v42  ;;  %v2802_v55 = vpack.c.bf16 %v2432_v42, %v2772_v54  ;;  %v2364_v56 = vmul.f32 %v5332_v33, %v2222_v31  ;;  %v4267_v34 = vpop.f32.mrb[10].mxu0  ;;  %v2674_v41 = vpack.c.bf16 %v2432_v42, %v5366_v27 }
 0x21c   : > { %v2494_v14 = vpack.c.bf16 %v2466_v60, %v5363_v63  ;;  %v2405_v32 = vadd.f32 %v5337_v9, %v2366_v26  ;;  %v2367_v59 = vmul.f32 %v4267_v34, %v5332_v33  ;;  %v2225_v36 = vpop.f32.mrb[11].mxu0  ;;  %v5404_v0 = vor.u32 %v2518_v39, %v5380_v53 }
 0x21d   : > { %v2493_v1 = vpack.c.bf16 %v2464_v5, %v5366_v27  ;;  %v2403_v52 = vadd.f32 %v5337_v9, %v2364_v56  ;;  %v2365_v4 = vmul.f32 %v5332_v33, %v2225_v36  ;;  %v2827_v47 = vsel %vm1464_vm4, %v2822_v12, %v2826_v29 }
 0x21e   : > { %v2531_v28 = vshrl.u32 %v2494_v14, 16  ;;  %v5400_v37 = vmax.f32 %v2405_v32, 0.0  ;;  %v2406_v16 = vadd.f32 %v5337_v9, %v2367_v59  ;;  %v2534_v46 = vshll.u32 %v2494_v14, 16  ;;  %2945 = vrot.lane.b32.xlu1 %v2827_v47, %s4552_s20 }
 0x21f   : > { %v2523_v3 = vshrl.u32 %v2493_v1, 16  ;;  %v5406_v43 = vmax.f32 %v2403_v52, 0.0  ;;  %v2404_v39 = vadd.f32 %v5337_v9, %v2365_v4  ;;  %v2526_v45 = vshll.u32 %v2493_v1, 16 }
 0x220   : > { %v2778_v62 = vmul.f32 %v4760_v17, %v5400_v37  ;;  %v5416_v27 = vmax.f32 %v2406_v16, 0.0  ;;  %v2828_v61 = vshrl.u32 %v5350_v19, 16  ;;  %v2832_v54 = vshll.u32 %v2802_v55, 16 }
 0x221   : > { %v2776_v6 = vmul.f32 %v4728_v35, %v5406_v43  ;;  %v4270_v50 = vpop.f32.mrb[12].mxu0  ;;  %v5425_v42 = vrot.slane %v2531_v28, 7  ;;  %v5432_v40 = vmax.f32 %v2404_v39, 0.0  ;;  %v5434_v26 = vrot.slane %v2523_v3, 7 }
 0x222   : > { %v2470_v17 = vmul.f32 %v4747_v57, %v5416_v27  ;;  %v5430_v51 = vpack.c.bf16 %v5416_v27, %v2778_v62  ;;  %v2238_v60 = vpop.f32.mrb[13].mxu0  ;;  %v2370_v35 = vmul.f32 %v4270_v50, %v5332_v33  ;;  %v2830_v19 = vor.u32 %v2828_v61, %v2826_v29  ;;  %2708 = vrot.lane.b32.xlu1 %v2674_v41, %s4551_s19 }
 0x223   : > { %v2834_v31 = vrot.slane %v2832_v54, 1  ;;  %v4271_v5 = vpop.f32.mrb[14].mxu0  ;;  %v2468_v34 = vmul.f32 %v5072_v24, %v5432_v40  ;;  %v5441_v57 = vpack.c.bf16 %v5432_v40, %v2776_v6  ;;  %v2368_v12 = vmul.f32 %v5332_v33, %v2238_v60 }
 0x224   : > { %v2496_v56 = vpack.c.bf16 %v2470_v17, %v5400_v37  ;;  %v2241_v14 = vpop.f32.mrb[15].mxu0  ;;  %v2409_v32 = vadd.f32 %v5337_v9, %v2370_v35  ;;  %v2371_v29 = vmul.f32 %v4271_v5, %v5332_v33  ;;  %v2836_v36 = vshrl.u32 %v2802_v55, 16 }
 0x225   : > { %v2835_v59 = vsel %vm1464_vm4, %v2830_v19, %v2834_v31  ;;  %v5449_v1 = vor.u32 %v2534_v46, %v5425_v42  ;;  %v2495_v24 = vpack.c.bf16 %v2468_v34, %v5406_v43  ;;  %v2407_v4 = vadd.f32 %v5337_v9, %v2368_v12 }
 0x226   : > { %v2547_v52 = vshrl.u32 %v2496_v56, 16  ;;  %2947 = vrot.lane.b32.xlu0 %v2835_v59, %s4552_s20  ;;  %v5454_v41 = vmax.f32 %v2409_v32, 0.0  ;;  %v2410_v28 = vadd.f32 %v5337_v9, %v2371_v29  ;;  %v2838_v16 = vor.u32 %v2836_v36, %v2834_v31 }
 0x227   : > { %v2840_v3 = vshll.u32 %v5385_v18, 16  ;;  %v5459_v47 = vor.u32 %v2526_v45, %v5434_v26  ;;  %v2550_v55 = vshll.u32 %v2496_v56, 16  ;;  %v2539_v46 = vshrl.u32 %v2495_v24, 16 }
 0x228   : > { %v5461_v62 = vmax.f32 %v2407_v4, 0.0  ;;  %v2782_v39 = vmul.f32 %v4808_v20, %v5454_v41  ;;  %v5465_v6 = vmax.f32 %v2410_v28, 0.0  ;;  %v2369_v61 = vmul.f32 %v5332_v33, %v2241_v14 }
 0x229   : > { %v2842_v50 = vrot.slane %v2840_v3, 1  ;;  %v4274_v54 = vpop.f32.mrb[16].mxu0  ;;  %v5468_v17 = vrot.slane %v2547_v52, 7  ;;  %v5470_v60 = vrot.slane %v2539_v46, 7  ;;  %v2675_v35 = vpack.c.bf16 %v5373_v2, %v5363_v63 }
 0x22a   : > { %v2780_v45 = vmul.f32 %v4766_v22, %v5461_v62  ;;  %v2254_v19 = vpop.f32.mrb[17].mxu0  ;;  %v2474_v20 = vmul.f32 %v4801_v8, %v5465_v6  ;;  %v5479_v31 = vpack.c.bf16 %v5465_v6, %v2782_v39  ;;  %v2408_v56 = vadd.f32 %v5337_v9, %v2369_v61 }
 0x22b   : > { %v2843_v5 = vsel %vm1464_vm4, %v2838_v16, %v2842_v50  ;;  %v4275_v34 = vpop.f32.mrb[18].mxu0  ;;  %v2542_v12 = vshll.u32 %v2495_v24, 16  ;;  %2710 = vrot.lane.b32.xlu0 %v2675_v35, %s4551_s19  ;;  %v2676_v22 = vpack.c.bf16 %v5432_v40, %v5406_v43  ;;  %v2374_v63 = vmul.f32 %v4274_v54, %v5332_v33 }
 0x22c   : > { %2949 = vrot.lane.b32.xlu1 %v2843_v5, %s4552_s20  ;;  %v2844_v8 = vshrl.u32 %v5385_v18, 16  ;;  %v2257_v2 = vpop.f32.mrb[19].mxu0  ;;  %v5490_v14 = vpack.c.bf16 %v2474_v20, %v5454_v41  ;;  %v5492_v32 = vmax.f32 %v2408_v56, 0.0  ;;  %v2848_v59 = vshll.u32 %v5441_v57, 16 }
 0x22d   : > { %v2372_v29 = vmul.f32 %v5332_v33, %v2254_v19  ;;  %v5497_v36 = vor.u32 %v2550_v55, %v5468_v17  ;;  %v5500_v52 = vor.u32 %v2542_v12, %v5470_v60  ;;  %v2413_v43 = vadd.f32 %v5337_v9, %v2374_v63 }
 0x22e   : > { %v2375_v18 = vmul.f32 %v4275_v34, %v5332_v33  ;;  %v2563_v40 = vshrl.u32 %v5490_v14, 16  ;;  %v2472_v24 = vmul.f32 %v5086_v30, %v5492_v32  ;;  %v5508_v4 = vpack.c.bf16 %v5492_v32, %v2780_v45 }
 0x22f   : > { %v2846_v28 = vor.u32 %v2844_v8, %v2842_v50  ;;  %v5511_v16 = vmax.f32 %v2413_v43, 0.0  ;;  %v2850_v3 = vrot.slane %v2848_v59, 1  ;;  %v2411_v55 = vadd.f32 %v5337_v9, %v2372_v29  ;;  %v6184_v50 = vld [vmem:[#allocation5_spill] sm:$0xff] }
 0x230   : > { %2712 = vrot.lane.b32.xlu1 %v2676_v22, %s4551_s19  ;;  %v2414_v46 = vadd.f32 %v5337_v9, %v2375_v18  ;;  %v2497_v39 = vpack.c.bf16 %v2472_v24, %v5461_v62  ;;  %v2852_v61 = vshrl.u32 %v5441_v57, 16  ;;  %v2856_v54 = vshll.u32 %v5430_v51, 16  ;;  %v6186_v24 = vld [vmem:[#allocation3_spill] sm:$0xff] }
 0x231   : > { %v2373_v30 = vmul.f32 %v5332_v33, %v2257_v2  ;;  %v4278_v45 = vpop.f32.mrb[20].mxu0  ;;  %v2786_v35 = vmul.f32 %v6184_v50, %v5511_v16  ;;  %v2851_v19 = vsel %vm1464_vm4, %v2846_v28, %v2850_v3  ;;  %v5522_v20 = vmax.f32 %v2411_v55, 0.0  ;;  %v6185_v2 = vld [vmem:[#allocation4_spill] sm:$0xff] }
 0x232   : > { %v5524_v5 = vmax.f32 %v2414_v46, 0.0  ;;  %v2270_v56 = vpop.f32.mrb[21].mxu0  ;;  %v5526_v34 = vrot.slane %v2563_v40, 7  ;;  %v2566_v12 = vshll.u32 %v5490_v14, 16  ;;  %v2555_v57 = vshrl.u32 %v2497_v39, 16  ;;  %2951 = vrot.lane.b32.xlu0 %v2851_v19, %s4552_s20 }
 0x233   : > { %v2854_v22 = vor.u32 %v2852_v61, %v2850_v3  ;;  %v4279_v63 = vpop.f32.mrb[22].mxu0  ;;  %v2558_v8 = vshll.u32 %v2497_v39, 16  ;;  %v2858_v43 = vrot.slane %v2856_v54, 1  ;;  %v2784_v40 = vmul.f32 %v6186_v24, %v5522_v20 }
 0x234   : > { %v2478_v59 = vmul.f32 %v6185_v2, %v5524_v5  ;;  %v5533_v29 = vpack.c.bf16 %v5524_v5, %v2786_v35  ;;  %v2273_v18 = vpop.f32.mrb[23].mxu0  ;;  %v2412_v28 = vadd.f32 %v5337_v9, %v2373_v30  ;;  %v2677_v14 = vpack.c.bf16 %v5416_v27, %v5400_v37 }
 0x235   : > { %v2678_v3 = vpack.c.bf16 %v5492_v32, %v5461_v62  ;;  %v2859_v46 = vsel %vm1464_vm4, %v2854_v22, %v2858_v43  ;;  %v2378_v39 = vmul.f32 %v4278_v45, %v5332_v33  ;;  %v2860_v61 = vshrl.u32 %v5430_v51, 16 }
 0x236   : > { %v2500_v55 = vpack.c.bf16 %v2478_v59, %v5511_v16  ;;  %v5546_v54 = vrot.slane %v2555_v57, 7  ;;  %2953 = vrot.lane.b32.xlu1 %v2859_v46, %s4552_s20  ;;  %v5549_v50 = vmax.f32 %v2412_v28, 0.0  ;;  %2714 = vrot.lane.b32.xlu0 %v2677_v14, %s4551_s19  ;;  %v2864_v37 = vshll.u32 %v5508_v4, 16 }
 0x237   : > { %v2376_v27 = vmul.f32 %v5332_v33, %v2270_v56  ;;  %v2417_v30 = vadd.f32 %v5337_v9, %v2378_v39  ;;  %v2862_v35 = vor.u32 %v2860_v61, %v2858_v43  ;;  %v2379_v56 = vmul.f32 %v4279_v63, %v5332_v33  ;;  %v6187_v39 = vld [vmem:[#allocation8_spill] sm:$0xff] }
 0x238   : > { %v2579_v62 = vshrl.u32 %v2500_v55, 16  ;;  %v2582_v32 = vshll.u32 %v2500_v55, 16  ;;  %v2476_v51 = vmul.f32 %v5101_v44, %v5549_v50  ;;  %v5558_v45 = vpack.c.bf16 %v5549_v50, %v2784_v40 }
 0x239   : > { %v2866_v19 = vrot.slane %v2864_v37, 1  ;;  %v2415_v57 = vadd.f32 %v5337_v9, %v2376_v27  ;;  %v4282_v22 = vpop.f32.mrb[24].mxu0  ;;  %v5563_v59 = vmax.f32 %v2417_v30, 0.0  ;;  %v2868_v24 = vshrl.u32 %v5508_v4, 16 }
 0x23a   : > { %v5561_v2 = vrot.slane %v2579_v62, 7  ;;  %v2286_v28 = vpop.f32.mrb[25].mxu0  ;;  %v2499_v43 = vpack.c.bf16 %v2476_v51, %v5522_v20  ;;  %2716 = vrot.lane.b32.xlu1 %v2678_v3, %s4551_s19  ;;  %v2872_v14 = vshll.u32 %v5479_v31, 16  ;;  %v5574_v46 = vor.u32 %v2566_v12, %v5526_v34 }
 0x23b   : > { %v2867_v44 = vsel %vm1464_vm4, %v2862_v35, %v2866_v19  ;;  %v5570_v40 = vmax.f32 %v2415_v57, 0.0  ;;  %v4283_v55 = vpop.f32.mrb[26].mxu0  ;;  %v2790_v63 = vmul.f32 %v6187_v39, %v5563_v59  ;;  %v2418_v4 = vadd.f32 %v5337_v9, %v2379_v56  ;;  %v6188_v56 = vld [vmem:[#allocation6_spill] sm:$0xff] }
 0x23c   : > { %2955 = vrot.lane.b32.xlu0 %v2867_v44, %s4552_s20  ;;  %v2870_v61 = vor.u32 %v2868_v24, %v2866_v19  ;;  %v2289_v37 = vpop.f32.mrb[27].mxu0  ;;  %v5581_v3 = vor.u32 %v2558_v8, %v5546_v54  ;;  %v5584_v27 = vor.u32 %v2582_v32, %v5561_v2  ;;  %v2571_v62 = vshrl.u32 %v2499_v43, 16  ;;  %v6189_v44 = vld [vmem:[#allocation7_spill] sm:$0xff] }
 0x23d   : > { %v2874_v30 = vrot.slane %v2872_v14, 1  ;;  %v5586_v35 = vmax.f32 %v2418_v4, 0.0  ;;  %v2377_v12 = vmul.f32 %v5332_v33, %v2273_v18  ;;  %v2679_v51 = vpack.c.bf16 %v5465_v6, %v5454_v41 }
 0x23e   : > { %v2680_v57 = vpack.c.bf16 %v5549_v50, %v5522_v20  ;;  %v2574_v19 = vshll.u32 %v2499_v43, 16  ;;  %v2788_v8 = vmul.f32 %v6188_v56, %v5570_v40  ;;  %v2382_v32 = vmul.f32 %v4282_v22, %v5332_v33 }
 0x23f   : > { %v2875_v24 = vsel %vm1464_vm4, %v2870_v61, %v2874_v30  ;;  %v2482_v14 = vmul.f32 %v6189_v44, %v5586_v35  ;;  %v5600_v39 = vpack.c.bf16 %v5586_v35, %v2790_v63  ;;  %v2416_v41 = vadd.f32 %v5337_v9, %v2377_v12 }
 0x240   : > { %2957 = vrot.lane.b32.xlu1 %v2875_v24, %s4552_s20  ;;  %2718 = vrot.lane.b32.xlu0 %v2679_v51, %s4551_s19  ;;  %v2880_v6 = vshll.u32 %v5558_v45, 16  ;;  %v5606_v20 = vrot.slane %v2571_v62, 7  ;;  %v2421_v18 = vadd.f32 %v5337_v9, %v2382_v32  ;;  %v2876_v50 = vshrl.u32 %v5479_v31, 16 }
 0x241   : > { %v2380_v22 = vmul.f32 %v5332_v33, %v2286_v28  ;;  %v4286_v43 = vpop.f32.mrb[28].mxu0  ;;  %v2502_v63 = vpack.c.bf16 %v2482_v14, %v5563_v59  ;;  %v2448_v4 = vmax.f32 %v2416_v41, 0.0  ;;  %v2383_v56 = vmul.f32 %v4283_v55, %v5332_v33  ;;  %v6190_v55 = vld [vmem:[#allocation12_spill] sm:$0xff] }
 0x242   : > { %v2882_v61 = vrot.slane %v2880_v6, 1  ;;  %v2302_v12 = vpop.f32.mrb[29].mxu0  ;;  %v5613_v24 = vmax.f32 %v2421_v18, 0.0  ;;  %v2878_v51 = vor.u32 %v2876_v50, %v2874_v30  ;;  %v2888_v44 = vshll.u32 %v5533_v29, 16 }
 0x243   : > { %v2419_v62 = vadd.f32 %v5337_v9, %v2380_v22  ;;  %v4287_v32 = vpop.f32.mrb[30].mxu0  ;;  %v2595_v13 = vshrl.u32 %v2502_v63, 16  ;;  %v2480_v31 = vmul.f32 %v5118_v48, %v2448_v4  ;;  %v2810_v28 = vpack.c.bf16 %v2448_v4, %v2788_v8 }
 0x244   : > { %2720 = vrot.lane.b32.xlu1 %v2680_v57, %s4551_s19  ;;  %v2884_v14 = vshrl.u32 %v5558_v45, 16  ;;  %v2305_v41 = vpop.f32.mrb[31].mxu0  ;;  %v2794_v6 = vmul.f32 %v6190_v55, %v5613_v24  ;;  %v2883_v18 = vsel %vm1464_vm4, %v2878_v51, %v2882_v61  ;;  %v2422_v50 = vadd.f32 %v5337_v9, %v2383_v56 }
 0x245   : > { %v5623_v30 = vmax.f32 %v2419_v62, 0.0  ;;  %v5627_v22 = vor.u32 %v2574_v19, %v5606_v20  ;;  %v2501_v48 = vpack.c.bf16 %v2480_v31, %v5570_v40  ;;  %2959 = vrot.lane.b32.xlu0 %v2883_v18, %s4552_s20  ;;  %v2890_v8 = vrot.slane %v2888_v44, 1  ;;  %v6192_v19 = vld [vmem:[#allocation9_spill] sm:$0xff]  ;;  %v6193_v18 = vld [vmem:[#allocation10_spill] sm:$0xff] }
 0x246   : > { %v2886_v57 = vor.u32 %v2884_v14, %v2882_v61  ;;  %v2598_v45 = vshll.u32 %v2502_v63, 16  ;;  %v5631_v7 = vmax.f32 %v2422_v50, 0.0  ;;  %v2381_v55 = vmul.f32 %v5332_v33, %v2289_v37 }
 0x247   : > { %v2681_v51 = vpack.c.bf16 %v5524_v5, %v5511_v16  ;;  %v5636_v62 = vrot.slane %v2595_v13, 7  ;;  %v2587_v56 = vshrl.u32 %v2501_v48, 16  ;;  %v2792_v23 = vmul.f32 %v6192_v19, %v5623_v30 }
 0x248   : > { %v2891_v31 = vsel %vm1464_vm4, %v2886_v57, %v2890_v8  ;;  %v2486_v61 = vmul.f32 %v6193_v18, %v5631_v7  ;;  %v5644_v63 = vpack.c.bf16 %v5631_v7, %v2794_v6  ;;  %v2420_v37 = vadd.f32 %v5337_v9, %v2381_v55 }
 0x249   : > { %6191 = vst [vmem:[#allocation5_spill] sm:$0xff] %v5636_v62  ;;  %2961 = vrot.lane.b32.xlu1 %v2891_v31, %s4552_s20  ;;  %v2682_v16 = vpack.c.bf16 %v2448_v4, %v5570_v40  ;;  %v5649_v13 = vrot.slane %v2587_v56, 7  ;;  %2722 = vrot.lane.b32.xlu0 %v2681_v51, %s4551_s19  ;;  %v2386_v5 = vmul.f32 %v4286_v43, %v5332_v33  ;;  %v2892_v44 = vshrl.u32 %v5533_v29, 16 }
 0x24a   : > { %v2896_v14 = vshll.u32 %v2810_v28, 16  ;;  %v2504_v50 = vpack.c.bf16 %v2486_v61, %v5613_v24  ;;  %v2452_v57 = vmax.f32 %v2420_v37, 0.0  ;;  %v2384_v6 = vmul.f32 %v5332_v33, %v2302_v12 }
 0x24b   : > { %v2387_v19 = vmul.f32 %v4287_v32, %v5332_v33  ;;  %v5658_v55 = vor.u32 %v2598_v45, %v5636_v62  ;;  %v2425_v40 = vadd.f32 %v5337_v9, %v2386_v5  ;;  %v2894_v4 = vor.u32 %v2892_v44, %v2890_v8 }
 0x24c   : > { %v2898_v56 = vrot.slane %v2896_v14, 1  ;;  %v2590_v51 = vshll.u32 %v2501_v48, 16  ;;  %v2611_v31 = vshrl.u32 %v2504_v50, 16  ;;  %v2484_v43 = vmul.f32 %v5137_v11, %v2452_v57 }
 0x24d   : > { %v2812_v29 = vpack.c.bf16 %v2452_v57, %v2792_v23  ;;  %2724 = vrot.lane.b32.xlu1 %v2682_v16, %s4551_s19  ;;  %v5663_v18 = vmax.f32 %v2425_v40, 0.0  ;;  %v2423_v32 = vadd.f32 %v5337_v9, %v2384_v6  ;;  %v2426_v45 = vadd.f32 %v5337_v9, %v2387_v19  ;;  %v6194_v23 = vld [vmem:[#allocation14_spill] sm:$0xff] }
 0x24e   : > { %v2899_v12 = vsel %vm1464_vm4, %v2894_v4, %v2898_v56  ;;  %v5669_v61 = vor.u32 %v2590_v51, %v5649_v13  ;;  %v2503_v8 = vpack.c.bf16 %v2484_v43, %v5623_v30  ;;  %v2900_v48 = vshrl.u32 %v2810_v28, 16  ;;  %v6195_v4 = vld [vmem:[#allocation13_spill] sm:$0xff]  ;;  %v6196_v43 = vld [vmem:[#allocation11_spill] sm:$0xff] }
 0x24f   : > { %2963 = vrot.lane.b32.xlu0 %v2899_v12, %s4552_s20  ;;  %v2904_v11 = vshll.u32 %v5600_v39, 16  ;;  %v2798_v37 = vmul.f32 %v6194_v23, %v5663_v18  ;;  %v5676_v16 = vmax.f32 %v2423_v32, 0.0  ;;  %v2458_v5 = vmax.f32 %v2426_v45, 0.0 }
 0x250   : > { %v2385_v44 = vmul.f32 %v5332_v33, %v2305_v41  ;;  %v5679_v14 = vrot.slane %v2611_v31, 7  ;;  %v2614_v6 = vshll.u32 %v2504_v50, 16  ;;  %v2603_v19 = vshrl.u32 %v2503_v8, 16 }
 0x251   : > { %v2902_v40 = vor.u32 %v2900_v48, %v2898_v56  ;;  %v2796_v51 = vmul.f32 %v6195_v4, %v5676_v16  ;;  %v2490_v28 = vmul.f32 %v6196_v43, %v2458_v5  ;;  %v5684_v12 = vpack.c.bf16 %v2458_v5, %v2798_v37 }
 0x252   : > { %v2906_v58 = vrot.slane %v2904_v11, 1  ;;  %v5686_v62 = vrot.slane %v2603_v19, 7  ;;  %v2424_v32 = vadd.f32 %v5337_v9, %v2385_v44  ;;  %v2683_v33 = vpack.c.bf16 %v5586_v35, %v5563_v59 }
 0x253   : > { %v2684_v41 = vpack.c.bf16 %v2452_v57, %v5623_v30  ;;  %v2506_v50 = vpack.c.bf16 %v2490_v28, %v5663_v18  ;;  %v2908_v31 = vshrl.u32 %v5600_v39, 16  ;;  %v2912_v45 = vshll.u32 %v2812_v29, 16  ;;  %v2669_v39 = vld [vmem:[#allocation2 + $0x88] sm:$0x1] }
 0x254   : > { %v2907_v56 = vsel %vm1464_vm4, %v2902_v40, %v2906_v58  ;;  %v5696_v48 = vor.u32 %v2614_v6, %v5679_v14  ;;  %v5699_v11 = vmax.f32 %v2424_v32, 0.0  ;;  %2726 = vrot.lane.b32.xlu0 %v2683_v33, %s4551_s19  ;;  %v2687_v9 = vpack.c.bf16 %v2458_v5, %v5663_v18 }
 0x255   : > { %2965 = vrot.lane.b32.xlu1 %v2907_v56, %s4552_s20  ;;  %v2685_v59 = vpack.c.bf16 %v5631_v7, %v5613_v24  ;;  %v2606_v35 = vshll.u32 %v2503_v8, 16  ;;  %v2627_v30 = vshrl.u32 %v2506_v50, 16  ;;  %v2910_v57 = vor.u32 %v2908_v31, %v2906_v58 }
 0x256   : > { %v2914_v23 = vrot.slane %v2912_v45, 1  ;;  %v2488_v37 = vmul.f32 %v5048_v21, %v5699_v11  ;;  %v2814_v44 = vpack.c.bf16 %v5699_v11, %v2796_v51  ;;  %v2916_v6 = vshrl.u32 %v2812_v29, 16 }
 0x257   : > { %v2920_v19 = vshll.u32 %v5644_v63, 16  ;;  %v2608_v40 = vor.u32 %v2606_v35, %v5686_v62  ;;  %v2629_v4 = vrot.slane %v2627_v30, 7  ;;  %v2630_v18 = vshll.u32 %v2506_v50, 16 }
 0x258   : > { %v2915_v5 = vsel %vm1464_vm4, %v2910_v57, %v2914_v23  ;;  %v2505_v7 = vpack.c.bf16 %v2488_v37, %v5676_v16  ;;  %v2918_v58 = vor.u32 %v2916_v6, %v2914_v23  ;;  %v2928_v21 = vshll.u32 %v2814_v44, 16  ;;  %v2651_v23 = vld [vmem:[#allocation2 + $0x8] sm:$0xff] }
 0x259   : > { %2728 = vrot.lane.b32.xlu1 %v2684_v41, %s4551_s19  ;;  %2967 = vrot.lane.b32.xlu0 %v2915_v5, %s4552_s20  ;;  %v2922_v24 = vrot.slane %v2920_v19, 1  ;;  %v2632_v8 = vor.u32 %v2630_v18, %v2629_v4  ;;  %v2670_v29 = vsel %vm5164_vm2, %v2629_v4, %v2669_v39  ;;  %v2924_v51 = vshrl.u32 %v5644_v63, 16  ;;  %v5727_v63 = vld [vmem:[%s6128_s2] sm:$0x3f]   ;;  %v5819_v39 = vld [vmem:[%s6128_s2 + $0x10] sm:$0x3f]  }
 0x25a   : > { %v2936_v43 = vshll.u32 %v5684_v12, 16  ;;  %2671 = vst [vmem:[#allocation2 + $0x88] sm:$0x1] %v2670_v29  ;;  %v2619_v28 = vshrl.u32 %v2505_v7, 16  ;;  %v2622_v32 = vshll.u32 %v2505_v7, 16  ;;  %v2932_v50 = vshrl.u32 %v2814_v44, 16 }
 0x25b   : > { %v2923_v33 = vsel %vm1464_vm4, %v2918_v58, %v2922_v24  ;;  %v2926_v41 = vor.u32 %v2924_v51, %v2922_v24  ;;  %v2930_v56 = vrot.slane %v2928_v21, 1  ;;  %v2686_v31 = vpack.c.bf16 %v5699_v11, %v5676_v16 }
 0x25c   : > { %v2521_v10 = vsel %vm946_vm7, %v5398_v38, %v5404_v0  ;;  %v2621_v45 = vrot.slane %v2619_v28, 7  ;;  %v6197_v35 = vshll.u32 %v5358_v15, 16  ;;  %v2529_v0 = vsel %vm946_vm7, %v5380_v53, %v5459_v47 }
 0x25d   : > { %2734 = vrot.lane.b32.xlu1 %v2687_v9, %s4551_s19  ;;  %2730 = vrot.lane.b32.xlu0 %v2685_v59, %s4551_s19  ;;  %2654 = vst.msk [vmem:[#allocation2 + $0x10] sm:$0xff] %vm1292_vm9, %v2521_v10  ;;  %v2537_v11 = vsel %vm946_vm7, %v5434_v26, %v5449_v1  ;;  %v2931_v30 = vsel %vm1464_vm4, %v2926_v41, %v2930_v56  ;;  %v2938_v9 = vrot.slane %v2936_v43, 1  ;;  %2655 = vst.msk [vmem:[#allocation2 + $0x18] sm:$0xff] %vm1292_vm9, %v2529_v0 }
 0x25e   : > { %v2513_v16 = vor.u32 %v6197_v35, %v5398_v38  ;;  %v2934_v57 = vor.u32 %v2932_v50, %v2930_v56  ;;  %2656 = vst.msk [vmem:[#allocation2 + $0x20] sm:$0xff] %vm1292_vm9, %v2537_v11  ;;  %v3091_v15 = vsel %vm1744_vm3, %v5412_v25, 0  ;;  %v2624_v38 = vor.u32 %v2622_v32, %v2621_v45 }
 0x25f   : > { %4289 = vmatpush3.bf16.msra.mxu1 %v3091_v15  ;;  %v2545_v26 = vsel %vm946_vm7, %v5425_v42, %v5500_v52  ;;  %v2553_v25 = vsel %vm946_vm7, %v5470_v60, %v5497_v36  ;;  %v2561_v49 = vsel %vm946_vm7, %v5468_v17, %v5581_v3  ;;  %v2569_v42 = vsel %vm946_vm7, %v5546_v54, %v5574_v46  ;;  %v6198_v52 = vld [vmem:[#allocation5_spill] sm:$0xff] }
 0x260   : > { %v2652_v53 = vsel %vm5019_vm0, %v2513_v16, %v2651_v23  ;;  %v2939_v1 = vsel %vm1464_vm4, %v2934_v57, %v2938_v9  ;;  %2657 = vst.msk [vmem:[#allocation2 + $0x28] sm:$0xff] %vm1292_vm9, %v2545_v26  ;;  %4522 = vmatprep.subr.msk.bf16.mxu1 %vm1744_vm3, %v5727_v63  ;;  %2658 = vst.msk [vmem:[#allocation2 + $0x30] sm:$0xff] %vm1292_vm9, %v2553_v25  ;;  %v2577_v47 = vsel %vm946_vm7, %v5526_v34, %v5627_v22 }
 0x261   : > { %2653 = vst [vmem:[#allocation2 + $0x8] sm:$0xff] %v2652_v53  ;;  %2969 = vrot.lane.b32.xlu0 %v2923_v33, %s4552_s20  ;;  %2971 = vrot.lane.b32.xlu1 %v2931_v30, %s4552_s20  ;;  %2659 = vst.msk [vmem:[#allocation2 + $0x38] sm:$0xff] %vm1292_vm9, %v2561_v49  ;;  %v2585_v17 = vsel %vm946_vm7, %v5606_v20, %v5584_v27  ;;  %v2593_v60 = vsel %vm946_vm7, %v5561_v2, %v5669_v61  ;;  %v2940_v3 = vshrl.u32 %v5684_v12, 16  ;;  %v6199_v20 = vld [vmem:[#allocation17_spill] sm:$0xff] }
 0x262   : > { %2660 = vst.msk [vmem:[#allocation2 + $0x40] sm:$0xff] %vm1292_vm9, %v2569_v42  ;;  %2661 = vst.msk [vmem:[#allocation2 + $0x48] sm:$0xff] %vm1292_vm9, %v2577_v47  ;;  %v2601_v36 = vsel %vm946_vm7, %v5649_v13, %v5658_v55  ;;  %v2609_v34 = vsel %vm946_vm7, %v6198_v52, %v2608_v40  ;;  %v2633_v54 = vsel %vm946_vm7, %v2621_v45, %v2632_v8  ;;  %v3263_v59 = vsel %vm1744_vm3, %v5727_v63, 0 }
 0x263   : > { %2662 = vst.msk [vmem:[#allocation2 + $0x50] sm:$0xff] %vm1292_vm9, %v2585_v17  ;;  %2663 = vst.msk [vmem:[#allocation2 + $0x58] sm:$0xff] %vm1292_vm9, %v2593_v60  ;;  %v2617_v46 = vsel %vm946_vm7, %v5686_v62, %v5696_v48  ;;  %v2625_v2 = vsel %vm946_vm7, %v5679_v14, %v2624_v38  ;;  %v2942_v27 = vor.u32 %v2940_v3, %v2938_v9  ;;  %v2994_v38 = vld [vmem:[#allocation2] sm:$0x80]  ;;  %v5954_v3 = vld [vmem:[%s6134_s8] ss:$0 sm:$0xff] }
 0x264   : > { %2664 = vst.msk [vmem:[#allocation2 + $0x60] sm:$0xff] %vm1292_vm9, %v2601_v36  ;;  %2665 = vst.msk [vmem:[#allocation2 + $0x68] sm:$0xff] %vm1292_vm9, %v2609_v34  ;;  %v3499_v34 = vsel %vm1744_vm3, %v5819_v39, 0 }
 0x265   : > { %2668 = vst.msk [vmem:[#allocation2 + $0x80] sm:$0xff] %vm1292_vm9, %v2633_v54  ;;  %2666 = vst.msk [vmem:[#allocation2 + $0x70] sm:$0xff] %vm1292_vm9, %v2617_v46  ;;  %2973 = vrot.lane.b32.xlu1 %v2939_v1, %s4552_s20  ;;  %2732 = vrot.lane.b32.xlu0 %v2686_v31, %s4551_s19  ;;  %v3441_v54 = vld [vmem:[#allocation2 + $0x88] sm:$0xff]  ;;  %v5949_v46 = vld [vmem:[%s6133_s7] ss:$0 sm:$0xff] }
 0x266   : > { %2667 = vst.msk [vmem:[#allocation2 + $0x78] sm:$0xff] %vm1292_vm9, %v2625_v2 }
 0x269   : > { %2943 = vrot.lane.b32.xlu1 %v6199_v20, %s4552_s20  ;;  %2975 = vrot.lane.b32.xlu0 %v2942_v27, %s4552_s20 }
 0x286   : > { %v2707_v22 = vpop.permute.xlu0 %2706 }
 0x287   : > { %2753 = vst.msk [vmem:[#allocation2 + $0x10] sm:$0xff] %vm1399_vm5, %v2707_v22  ;;  %v2705_v62 = vpop.permute.xlu1 %2704  ;;  %v3774_v22 = vld [vmem:[%s4631_s16 + $0x10] sm:$0xff] }
 0x288   : > { %2752 = vst.msk [vmem:[#allocation2 + $0x8] sm:$0xff] %vm1399_vm5, %v2705_v62 }
 0x290   : > { %v2946_v13 = vpop.permute.xlu1 %2945 }
 0x291   : > { %2997 = vst.msk [vmem:[#allocation2 + $0x8] sm:$0xff] %vm1648_vm6, %v2946_v13 }
 0x294   : > { %v2709_v55 = vpop.permute.xlu1 %2708 }
 0x295   : > { %2754 = vst.msk [vmem:[#allocation2 + $0x18] sm:$0xff] %vm1399_vm5, %v2709_v55 }
 0x298   : > { %v2948_v61 = vpop.permute.xlu0 %2947  ;;  %v5808_v14 = vld [vmem:[#allocation2 + $0x8] sm:$0xff] }
 0x299   : > { %2998 = vst.msk [vmem:[#allocation2 + $0x10] sm:$0xff] %vm1648_vm6, %v2948_v61  ;;  %4290 = vmatprep.mubr.msk.bf16.mxu1 %vm943_vm15, %v5808_v14  ;;  %v3772_v61 = vld [vmem:[%s4631_s16] sm:$0xff] }
 0x29d   : > { %v2711_v48 = vpop.permute.xlu0 %2710 }
 0x29e   : > { %v2950_v12 = vpop.permute.xlu1 %2949  ;;  %2755 = vst.msk [vmem:[#allocation2 + $0x20] sm:$0xff] %vm1399_vm5, %v2711_v48 }
 0x29f   : > { %2999 = vst.msk [vmem:[#allocation2 + $0x18] sm:$0xff] %vm1648_vm6, %v2950_v12 }
 0x2a0   : > { %v5821_v37 = vld [vmem:[#allocation2 + $0x10] sm:$0xff] }
 0x2a1   : > { %4291 = vmatmul.mubr.msk.bf16.vlgmr.msra.gmra.mrb[0].mxu1 %vm943_vm15, %v5821_v37 }
 0x2a2   : > { %v2713_v44 = vpop.permute.xlu1 %2712  ;;  %4323 = vmatpush3.bf16.msra.mxu1 %v3263_v59  ;;  %v3775_v59 = vld [vmem:[%s4631_s16 + $0x18] sm:$0xff] }
 0x2a3   : > { %2756 = vst.msk [vmem:[#allocation2 + $0x28] sm:$0xff] %vm1399_vm5, %v2713_v44  ;;  %4523 = vmatprep.subr.msk.bf16.mxu1 %vm1744_vm3, %v5819_v39 }
 0x2a4   : > { %v2952_v6 = vpop.permute.xlu0 %2951 }
 0x2a5   : > { %3000 = vst.msk [vmem:[#allocation2 + $0x20] sm:$0xff] %vm1648_vm6, %v2952_v6  ;;  %v3773_v6 = vld [vmem:[%s4631_s16 + $0x8] sm:$0xff] }
 0x2a6   : > { %v5829_v19 = vld [vmem:[#allocation2 + $0x18] sm:$0xff] }
 0x2a7   : > { %4294 = vmatprep.mubr.msk.bf16.mxu1 %vm943_vm15, %v5829_v19 }
 0x2a8   : > { %v2954_v40 = vpop.permute.xlu1 %2953  ;;  %v2715_v4 = vpop.permute.xlu0 %2714 }
 0x2a9   : > { %3001 = vst.msk [vmem:[#allocation2 + $0x28] sm:$0xff] %vm1648_vm6, %v2954_v40 }
 0x2aa   : > { %2757 = vst.msk [vmem:[#allocation2 + $0x30] sm:$0xff] %vm1399_vm5, %v2715_v4 }
 0x2ac   : > { %v2717_v18 = vpop.permute.xlu1 %2716  ;;  %v5835_v5 = vld [vmem:[#allocation2 + $0x20] sm:$0xff] }
 0x2ad   : > { %2758 = vst.msk [vmem:[#allocation2 + $0x38] sm:$0xff] %vm1399_vm5, %v2717_v18  ;;  %4295 = vmatmul.mubr.msk.bf16.gmra.mrb[4].mxu1 %vm943_vm15, %v5835_v5 }
 0x2ae   : > { %v2956_v7 = vpop.permute.xlu0 %2955 }
 0x2af   : > { %3002 = vst.msk [vmem:[#allocation2 + $0x30] sm:$0xff] %vm1648_vm6, %v2956_v7 }
 0x2b0   : > { %v5841_v58 = vld [vmem:[#allocation2 + $0x28] sm:$0xff] }
 0x2b1   : > { %4298 = vmatprep.mubr.msk.bf16.mxu1 %vm943_vm15, %v5841_v58 }
 0x2b2   : > { %v2958_v24 = vpop.permute.xlu1 %2957  ;;  %v2719_v21 = vpop.permute.xlu0 %2718 }
 0x2b3   : > { %3003 = vst.msk [vmem:[#allocation2 + $0x38] sm:$0xff] %vm1648_vm6, %v2958_v24  ;;  %v3778_v24 = vld [vmem:[%s4631_s16 + $0x30] sm:$0xff] }
 0x2b4   : > { %2759 = vst.msk [vmem:[#allocation2 + $0x40] sm:$0xff] %vm1399_vm5, %v2719_v21 }
 0x2b6   : > { %v2721_v8 = vpop.permute.xlu1 %2720  ;;  %v5847_v29 = vld [vmem:[#allocation2 + $0x30] sm:$0xff] }
 0x2b7   : > { %2760 = vst.msk [vmem:[#allocation2 + $0x48] sm:$0xff] %vm1399_vm5, %v2721_v8  ;;  %4299 = vmatmul.mubr.msk.bf16.gmra.mrb[8].mxu1 %vm943_vm15, %v5847_v29  ;;  %v2960_v51 = vpop.permute.xlu0 %2959 }
 0x2b8   : > { %3004 = vst.msk [vmem:[#allocation2 + $0x40] sm:$0xff] %vm1648_vm6, %v2960_v51  ;;  %v3776_v51 = vld [vmem:[%s4631_s16 + $0x20] sm:$0xff] }
 0x2ba   : > { %v5853_v43 = vld [vmem:[#allocation2 + $0x38] sm:$0xff] }
 0x2bb   : > { %v2962_v28 = vpop.permute.xlu1 %2961  ;;  %4302 = vmatprep.mubr.msk.bf16.mxu1 %vm943_vm15, %v5853_v43  ;;  %v2723_v32 = vpop.permute.xlu0 %2722 }
 0x2bc   : > { %3005 = vst.msk [vmem:[#allocation2 + $0x48] sm:$0xff] %vm1648_vm6, %v2962_v28 }
 0x2bd   : > { %2761 = vst.msk [vmem:[#allocation2 + $0x50] sm:$0xff] %vm1399_vm5, %v2723_v32 }
 0x2bf   : > { %v2725_v33 = vpop.permute.xlu1 %2724  ;;  %v5860_v50 = vld [vmem:[#allocation2 + $0x40] sm:$0xff] }
 0x2c0   : > { %2762 = vst.msk [vmem:[#allocation2 + $0x58] sm:$0xff] %vm1399_vm5, %v2725_v33  ;;  %4303 = vmatmul.mubr.msk.bf16.gmra.mrb[12].mxu1 %vm943_vm15, %v5860_v50  ;;  %v3779_v33 = vld [vmem:[%s4631_s16 + $0x38] sm:$0xff] }
 0x2c1   : > { %v2964_v41 = vpop.permute.xlu0 %2963 }
 0x2c2   : > { %3006 = vst.msk [vmem:[#allocation2 + $0x50] sm:$0xff] %vm1648_vm6, %v2964_v41 }
 0x2c3   : > { %v5865_v56 = vld [vmem:[#allocation2 + $0x48] sm:$0xff] }
 0x2c4   : > { %4306 = vmatprep.mubr.msk.bf16.mxu1 %vm943_vm15, %v5865_v56 }
 0x2c6   : > { %v2727_v10 = vpop.permute.xlu0 %2726 }
 0x2c7   : > { %v2966_v31 = vpop.permute.xlu1 %2965  ;;  %2763 = vst.msk [vmem:[#allocation2 + $0x60] sm:$0xff] %vm1399_vm5, %v2727_v10 }
 0x2c8   : > { %3007 = vst.msk [vmem:[#allocation2 + $0x58] sm:$0xff] %vm1648_vm6, %v2966_v31  ;;  %v3777_v31 = vld [vmem:[%s4631_s16 + $0x28] sm:$0xff] }
 0x2c9   : > { %v5871_v63 = vld [vmem:[#allocation2 + $0x50] sm:$0xff] }
 0x2ca   : > { %4307 = vmatmul.mubr.msk.bf16.gmra.mrb[16].mxu1 %vm943_vm15, %v5871_v63 }
 0x2cb   : > { %v2729_v45 = vpop.permute.xlu1 %2728  ;;  %v2968_v35 = vpop.permute.xlu0 %2967 }
 0x2cc   : > { %2764 = vst.msk [vmem:[#allocation2 + $0x68] sm:$0xff] %vm1399_vm5, %v2729_v45 }
 0x2cd   : > { %3008 = vst.msk [vmem:[#allocation2 + $0x60] sm:$0xff] %vm1648_vm6, %v2968_v35 }
 0x2cf   : > { %v2735_v16 = vpop.permute.xlu1 %2734  ;;  %v3026_v0 = vld [vmem:[#allocation2 + $0x58] sm:$0xff]  ;;  %v2731_v11 = vpop.permute.xlu0 %2730 }
 0x2d0   : > { %2767 = vst.msk [vmem:[#allocation2 + $0x80] sm:$0xff] %vm1399_vm5, %v2735_v16  ;;  %4310 = vmatprep.mubr.msk.bf16.mxu1 %vm943_vm15, %v3026_v0  ;;  %2765 = vst.msk [vmem:[#allocation2 + $0x70] sm:$0xff] %vm1399_vm5, %v2731_v11 }
 0x2d3   : > { %v2970_v30 = vpop.permute.xlu0 %2969  ;;  %v2972_v57 = vpop.permute.xlu1 %2971 }
 0x2d4   : > { %v3027_v9 = vld [vmem:[#allocation2 + $0x60] sm:$0xff]  ;;  %3009 = vst.msk [vmem:[#allocation2 + $0x68] sm:$0xff] %vm1648_vm6, %v2970_v30  ;;  %3010 = vst.msk [vmem:[#allocation2 + $0x70] sm:$0xff] %vm1648_vm6, %v2972_v57  ;;  %v3782_v30 = vld [vmem:[%s4631_s16 + $0x50] sm:$0xff] }
 0x2d5   : > { %4311 = vmatmul.mubr.msk.bf16.gmra.mrb[20].mxu1 %vm943_vm15, %v3027_v9 }
 0x2d7   : > { %v2974_v23 = vpop.permute.xlu1 %2973  ;;  %v2733_v15 = vpop.permute.xlu0 %2732  ;;  %v3012_v1 = vld [vmem:[#allocation2 + $0x80] sm:$0xff] }
 0x2d8   : > { %2766 = vst.msk [vmem:[#allocation2 + $0x78] sm:$0xff] %vm1399_vm5, %v2733_v15  ;;  %v3780_v15 = vld [vmem:[%s4631_s16 + $0x40] sm:$0xff] }
 0x2d9   : > { %3011 = vst.msk [vmem:[#allocation2 + $0x78] sm:$0xff] %vm1648_vm6, %v2974_v23 }
 0x2db   : > { %v2944_v53 = vpop.permute.xlu1 %2943  ;;  %v2976_v26 = vpop.permute.xlu0 %2975  ;;  %v3028_v25 = vld [vmem:[#allocation2 + $0x68] sm:$0xff]  ;;  %v3029_v49 = vld [vmem:[#allocation2 + $0x70] sm:$0xff] }
 0x2dc   : > { %v2995_v47 = vsel %vm5267_vm11, %v2944_v53, %v2994_v38  ;;  %v3013_v60 = vsel %vm5258_vm8, %v2976_v26, %v3012_v1  ;;  %4314 = vmatprep.mubr.msk.bf16.mxu1 %vm943_vm15, %v3028_v25  ;;  %v3783_v1 = vld [vmem:[%s4631_s16 + $0x58] sm:$0xff] }
 0x2dd   : > { %2996 = vst [vmem:[#allocation2] sm:$0x80] %v2995_v47  ;;  %3014 = vst [vmem:[#allocation2 + $0x80] sm:$0xff] %v3013_v60  ;;  %4315 = vmatmul.mubr.msk.bf16.gmra.mrb[24].mxu1 %vm943_vm15, %v3029_v49  ;;  %v3781_v47 = vld [vmem:[%s4631_s16 + $0x48] sm:$0xff] }
 0x2e0   : > { %v3030_v36 = vld [vmem:[#allocation2 + $0x78] sm:$0xff] }
 0x2e1   : > { %4318 = vmatprep.mubr.msk.bf16.mxu1 %vm943_vm15, %v3030_v36 }
 0x2e4   : > { %v3015_v52 = vld [vmem:[#allocation2] sm:$0xff] }
 0x2e5   : > { %4319 = vmatmul.mubr.msk.bf16.gmra.mrb[28].mxu1 %vm943_vm15, %v3013_v60 }
 0x2e6   : > { %4324 = vmatprep.mubr.msk.bf16.mxu1 %vm943_vm15, %v3015_v52 }
 0x2ed   : > { %4325 = vmatmul.mubr.msk.bf16.vlgmr.msra.gmra.mrb[0].mxu1 %vm943_vm15, %v5808_v14 }
 0x2ee   : > { %4357 = vmatpush3.bf16.msra.mxu1 %v3499_v34  ;;  %4328 = vmatprep.mubr.msk.bf16.mxu1 %vm943_vm15, %v5821_v37 }
 0x2f5   : > { %4329 = vmatmul.mubr.msk.bf16.gmra.mrb[4].mxu1 %vm943_vm15, %v5829_v19 }
 0x2f6   : > { %4332 = vmatprep.mubr.msk.bf16.mxu1 %vm943_vm15, %v5835_v5 }
 0x2fd   : > { %4333 = vmatmul.mubr.msk.bf16.gmra.mrb[8].mxu1 %vm943_vm15, %v5841_v58 }
 0x2fe   : > { %4336 = vmatprep.mubr.msk.bf16.mxu1 %vm943_vm15, %v5847_v29 }
 0x305   : > { %4337 = vmatmul.mubr.msk.bf16.gmra.mrb[12].mxu1 %vm943_vm15, %v5853_v43 }
 0x306   : > { %4340 = vmatprep.mubr.msk.bf16.mxu1 %vm943_vm15, %v5860_v50 }
 0x30d   : > { %4341 = vmatmul.mubr.msk.bf16.gmra.mrb[16].mxu1 %vm943_vm15, %v5865_v56 }
 0x30e   : > { %4344 = vmatprep.mubr.msk.bf16.mxu1 %vm943_vm15, %v5871_v63 }
 0x315   : > { %4345 = vmatmul.mubr.msk.bf16.gmra.mrb[20].mxu1 %vm943_vm15, %v3026_v0 }
 0x316   : > { %4348 = vmatprep.mubr.msk.bf16.mxu1 %vm943_vm15, %v3027_v9 }
 0x31d   : > { %4349 = vmatmul.mubr.msk.bf16.gmra.mrb[24].mxu1 %vm943_vm15, %v3028_v25 }
 0x31e   : > { %4352 = vmatprep.mubr.msk.bf16.mxu1 %vm943_vm15, %v3029_v49 }
 0x325   : > { %4353 = vmatmul.mubr.msk.bf16.gmra.mrb[28].mxu1 %vm943_vm15, %v3030_v36 }
 0x326   : > { %4358 = vmatprep.mubr.msk.bf16.mxu1 %vm943_vm15, %v5821_v37 }
 0x32d   : > { %4359 = vmatmul.mubr.msk.bf16.vlgmr.msra.gmra.mrb[0].mxu1 %vm943_vm15, %v5829_v19 }
 0x32e   : > { %4362 = vmatprep.mubr.msk.bf16.mxu1 %vm943_vm15, %v5835_v5 }
 0x335   : > { %4363 = vmatmul.mubr.msk.bf16.gmra.mrb[4].mxu1 %vm943_vm15, %v5841_v58 }
 0x336   : > { %4366 = vmatprep.mubr.msk.bf16.mxu1 %vm943_vm15, %v5847_v29 }
 0x33d   : > { %4367 = vmatmul.mubr.msk.bf16.gmra.mrb[8].mxu1 %vm943_vm15, %v5853_v43 }
 0x33e   : > { %4370 = vmatprep.mubr.msk.bf16.mxu1 %vm943_vm15, %v5860_v50 }
 0x345   : > { %4371 = vmatmul.mubr.msk.bf16.gmra.mrb[12].mxu1 %vm943_vm15, %v5865_v56 }
 0x346   : > { %4374 = vmatprep.mubr.msk.bf16.mxu1 %vm943_vm15, %v5871_v63 }
 0x34d   : > { %4375 = vmatmul.mubr.msk.bf16.gmra.mrb[16].mxu1 %vm943_vm15, %v3026_v0 }
 0x34e   : > { %4378 = vmatprep.mubr.msk.bf16.mxu1 %vm943_vm15, %v3027_v9 }
 0x355   : > { %4379 = vmatmul.mubr.msk.bf16.gmra.mrb[20].mxu1 %vm943_vm15, %v3028_v25 }
 0x356   : > { %4382 = vmatprep.mubr.msk.bf16.mxu1 %vm943_vm15, %v3029_v49 }
 0x35d   : > { %4383 = vmatmul.mubr.msk.bf16.gmra.mrb[24].mxu1 %vm943_vm15, %v3030_v36 }
 0x35e   : > { %4386 = vmatprep.mubr.msk.bf16.mxu1 %vm943_vm15, %v3013_v60 }
 0x365   : > { %4387 = vmatmul.mubr.msk.bf16.gmra.mrb[28].mxu1 %vm943_vm15, %v3441_v54 }
 0x400   : > { %v4360_v2 = vpop.f32.mrb[0].mxu1 }
 0x401   : > { %v3703_v27 = vmul.f32 %v4360_v2, %v5949_v46  ;;  %v3535_v20 = vpop.f32.mrb[1].mxu1 }
 0x402   : > { %v3701_v62 = vmul.f32 %v5949_v46, %v3535_v20  ;;  %v4361_v13 = vpop.f32.mrb[2].mxu1 }
 0x403   : > { %v3742_v55 = vadd.f32 %v5954_v3, %v3703_v27  ;;  %v3704_v14 = vmul.f32 %v4361_v13, %v5949_v46  ;;  %v3538_v12 = vpop.f32.mrb[3].mxu1  ;;  %v3786_v27 = vld [vmem:[%s4631_s16 + $0x70] sm:$0xff]  ;;  %v3784_v13 = vld [vmem:[%s4631_s16 + $0x60] sm:$0xff] }
 0x404   : > { %v3740_v48 = vadd.f32 %v5954_v3, %v3701_v62  ;;  %v3702_v39 = vmul.f32 %v5949_v46, %v3538_v12  ;;  %v3787_v12 = vld [vmem:[%s4631_s16 + $0x78] sm:$0xff] }
 0x405   : > { %v3806_v37 = vadd.f32 %v3774_v22, %v3742_v55  ;;  %v3743_v44 = vadd.f32 %v5954_v3, %v3704_v14 }
 0x406   : > { %v3804_v19 = vadd.f32 %v3772_v61, %v3740_v48  ;;  %v3741_v40 = vadd.f32 %v5954_v3, %v3702_v39 }
 0x407   : > { %3838 = vst.msk [vmem:[%s5967_s26 + $0x10] sm:$0xff] %vm1292_vm9, %v3806_v37  ;;  %v3807_v4 = vadd.f32 %v3775_v59, %v3743_v44  ;;  %v3785_v37 = vld [vmem:[%s4631_s16 + $0x68] sm:$0xff] }
 0x408   : > { %3836 = vst.msk [vmem:[%s5967_s26] sm:$0xff] %vm1292_vm9, %v3804_v19  ;;  %v3805_v18 = vadd.f32 %v3773_v6, %v3741_v40  ;;  %v4364_v5 = vpop.f32.mrb[4].mxu1 }
 0x409   : > { %3839 = vst.msk [vmem:[%s5967_s26 + $0x18] sm:$0xff] %vm1292_vm9, %v3807_v4  ;;  %v3707_v7 = vmul.f32 %v4364_v5, %v5949_v46  ;;  %v3551_v58 = vpop.f32.mrb[5].mxu1 }
 0x40a   : > { %3837 = vst.msk [vmem:[%s5967_s26 + $0x8] sm:$0xff] %vm1292_vm9, %v3805_v18  ;;  %v3705_v21 = vmul.f32 %v5949_v46, %v3551_v58  ;;  %v4365_v8 = vpop.f32.mrb[6].mxu1 }
 0x40b   : > { %v3746_v29 = vadd.f32 %v5954_v3, %v3707_v7  ;;  %v3708_v43 = vmul.f32 %v4365_v8, %v5949_v46  ;;  %v3554_v28 = vpop.f32.mrb[7].mxu1  ;;  %v3790_v7 = vld [vmem:[%s4631_s16 + $0x90] sm:$0xff]  ;;  %v3788_v8 = vld [vmem:[%s4631_s16 + $0x80] sm:$0xff] }
 0x40c   : > { %v3744_v32 = vadd.f32 %v5954_v3, %v3705_v21  ;;  %v3706_v50 = vmul.f32 %v5949_v46, %v3554_v28  ;;  %v3791_v28 = vld [vmem:[%s4631_s16 + $0x98] sm:$0xff] }
 0x40d   : > { %v3810_v41 = vadd.f32 %v3778_v24, %v3746_v29  ;;  %v3747_v56 = vadd.f32 %v5954_v3, %v3708_v43 }
 0x40e   : > { %v3808_v10 = vadd.f32 %v3776_v51, %v3744_v32  ;;  %v3745_v63 = vadd.f32 %v5954_v3, %v3706_v50 }
 0x40f   : > { %3842 = vst.msk [vmem:[%s5967_s26 + $0x30] sm:$0xff] %vm1292_vm9, %v3810_v41  ;;  %v3811_v45 = vadd.f32 %v3779_v33, %v3747_v56  ;;  %v3789_v41 = vld [vmem:[%s4631_s16 + $0x88] sm:$0xff] }
 0x410   : > { %3840 = vst.msk [vmem:[%s5967_s26 + $0x20] sm:$0xff] %vm1292_vm9, %v3808_v10  ;;  %v3809_v35 = vadd.f32 %v3777_v31, %v3745_v63  ;;  %v4368_v16 = vpop.f32.mrb[8].mxu1 }
 0x411   : > { %3843 = vst.msk [vmem:[%s5967_s26 + $0x38] sm:$0xff] %vm1292_vm9, %v3811_v45  ;;  %v3711_v0 = vmul.f32 %v4368_v16, %v5949_v46  ;;  %v3567_v11 = vpop.f32.mrb[9].mxu1 }
 0x412   : > { %3841 = vst.msk [vmem:[%s5967_s26 + $0x28] sm:$0xff] %vm1292_vm9, %v3809_v35  ;;  %v3709_v57 = vmul.f32 %v5949_v46, %v3567_v11  ;;  %v4369_v9 = vpop.f32.mrb[10].mxu1 }
 0x413   : > { %v3750_v23 = vadd.f32 %v5954_v3, %v3711_v0  ;;  %v3712_v38 = vmul.f32 %v4369_v9, %v5949_v46  ;;  %v3570_v53 = vpop.f32.mrb[11].mxu1  ;;  %v3794_v0 = vld [vmem:[%s4631_s16 + $0xb0] sm:$0xff]  ;;  %v3792_v9 = vld [vmem:[%s4631_s16 + $0xa0] sm:$0xff] }
 0x414   : > { %v3748_v26 = vadd.f32 %v5954_v3, %v3709_v57  ;;  %v3710_v25 = vmul.f32 %v5949_v46, %v3570_v53  ;;  %v3795_v53 = vld [vmem:[%s4631_s16 + $0xb8] sm:$0xff] }
 0x415   : > { %v3814_v49 = vadd.f32 %v3782_v30, %v3750_v23  ;;  %v3751_v42 = vadd.f32 %v5954_v3, %v3712_v38 }
 0x416   : > { %v3812_v17 = vadd.f32 %v3780_v15, %v3748_v26  ;;  %v3749_v60 = vadd.f32 %v5954_v3, %v3710_v25 }
 0x417   : > { %3846 = vst.msk [vmem:[%s5967_s26 + $0x50] sm:$0xff] %vm1292_vm9, %v3814_v49  ;;  %v3815_v36 = vadd.f32 %v3783_v1, %v3751_v42  ;;  %v3793_v49 = vld [vmem:[%s4631_s16 + $0xa8] sm:$0xff] }
 0x418   : > { %3844 = vst.msk [vmem:[%s5967_s26 + $0x40] sm:$0xff] %vm1292_vm9, %v3812_v17  ;;  %v3813_v52 = vadd.f32 %v3781_v47, %v3749_v60  ;;  %v4372_v34 = vpop.f32.mrb[12].mxu1 }
 0x419   : > { %3847 = vst.msk [vmem:[%s5967_s26 + $0x58] sm:$0xff] %vm1292_vm9, %v3815_v36  ;;  %v3715_v54 = vmul.f32 %v4372_v34, %v5949_v46  ;;  %v3583_v2 = vpop.f32.mrb[13].mxu1 }
 0x41a   : > { %3845 = vst.msk [vmem:[%s5967_s26 + $0x48] sm:$0xff] %vm1292_vm9, %v3813_v52  ;;  %v3713_v20 = vmul.f32 %v5949_v46, %v3583_v2  ;;  %v4373_v22 = vpop.f32.mrb[14].mxu1 }
 0x41b   : > { %v3754_v62 = vadd.f32 %v5954_v3, %v3715_v54  ;;  %v3716_v55 = vmul.f32 %v4373_v22, %v5949_v46  ;;  %v3586_v61 = vpop.f32.mrb[15].mxu1  ;;  %v3798_v54 = vld [vmem:[%s4631_s16 + $0xd0] sm:$0xff]  ;;  %v3796_v22 = vld [vmem:[%s4631_s16 + $0xc0] sm:$0xff] }
 0x41c   : > { %v3752_v14 = vadd.f32 %v5954_v3, %v3713_v20  ;;  %v3714_v48 = vmul.f32 %v5949_v46, %v3586_v61  ;;  %v3799_v61 = vld [vmem:[%s4631_s16 + $0xd8] sm:$0xff] }
 0x41d   : > { %v3818_v59 = vadd.f32 %v3786_v27, %v3754_v62  ;;  %v3755_v39 = vadd.f32 %v5954_v3, %v3716_v55 }
 0x41e   : > { %v3816_v44 = vadd.f32 %v3784_v13, %v3752_v14  ;;  %v3753_v6 = vadd.f32 %v5954_v3, %v3714_v48 }
 0x41f   : > { %3850 = vst.msk [vmem:[%s5967_s26 + $0x70] sm:$0xff] %vm1292_vm9, %v3818_v59  ;;  %v3819_v19 = vadd.f32 %v3787_v12, %v3755_v39  ;;  %v3797_v59 = vld [vmem:[%s4631_s16 + $0xc8] sm:$0xff] }
 0x420   : > { %3848 = vst.msk [vmem:[%s5967_s26 + $0x60] sm:$0xff] %vm1292_vm9, %v3816_v44  ;;  %v3817_v40 = vadd.f32 %v3785_v37, %v3753_v6  ;;  %v4376_v4 = vpop.f32.mrb[16].mxu1 }
 0x421   : > { %3851 = vst.msk [vmem:[%s5967_s26 + $0x78] sm:$0xff] %vm1292_vm9, %v3819_v19  ;;  %v3719_v18 = vmul.f32 %v4376_v4, %v5949_v46  ;;  %v3599_v5 = vpop.f32.mrb[17].mxu1 }
 0x422   : > { %3849 = vst.msk [vmem:[%s5967_s26 + $0x68] sm:$0xff] %vm1292_vm9, %v3817_v40  ;;  %v3717_v58 = vmul.f32 %v5949_v46, %v3599_v5  ;;  %v4377_v24 = vpop.f32.mrb[18].mxu1 }
 0x423   : > { %v3758_v21 = vadd.f32 %v5954_v3, %v3719_v18  ;;  %v3720_v29 = vmul.f32 %v4377_v24, %v5949_v46  ;;  %v3602_v51 = vpop.f32.mrb[19].mxu1  ;;  %v3802_v18 = vld [vmem:[%s4631_s16 + $0xf0] sm:$0xff]  ;;  %v3800_v24 = vld [vmem:[%s4631_s16 + $0xe0] sm:$0xff] }
 0x424   : > { %v3756_v43 = vadd.f32 %v5954_v3, %v3717_v58  ;;  %v3718_v32 = vmul.f32 %v5949_v46, %v3602_v51  ;;  %v3803_v51 = vld [vmem:[%s4631_s16 + $0xf8] sm:$0xff] }
 0x425   : > { %v3822_v33 = vadd.f32 %v3790_v7, %v3758_v21  ;;  %v3759_v50 = vadd.f32 %v5954_v3, %v3720_v29 }
 0x426   : > { %v3820_v56 = vadd.f32 %v3788_v8, %v3756_v43  ;;  %v3757_v31 = vadd.f32 %v5954_v3, %v3718_v32 }
 0x427   : > { %3854 = vst.msk [vmem:[%s5967_s26 + $0x90] sm:$0xff] %vm1292_vm9, %v3822_v33  ;;  %v3823_v10 = vadd.f32 %v3791_v28, %v3759_v50  ;;  %v3801_v33 = vld [vmem:[%s4631_s16 + $0xe8] sm:$0xff] }
 0x428   : > { %3852 = vst.msk [vmem:[%s5967_s26 + $0x80] sm:$0xff] %vm1292_vm9, %v3820_v56  ;;  %v3821_v63 = vadd.f32 %v3789_v41, %v3757_v31  ;;  %v4380_v45 = vpop.f32.mrb[20].mxu1 }
 0x429   : > { %3855 = vst.msk [vmem:[%s5967_s26 + $0x98] sm:$0xff] %vm1292_vm9, %v3823_v10  ;;  %v3723_v35 = vmul.f32 %v4380_v45, %v5949_v46  ;;  %v3615_v16 = vpop.f32.mrb[21].mxu1 }
 0x42a   : > { %3853 = vst.msk [vmem:[%s5967_s26 + $0x88] sm:$0xff] %vm1292_vm9, %v3821_v63  ;;  %v3721_v11 = vmul.f32 %v5949_v46, %v3615_v16  ;;  %v4381_v30 = vpop.f32.mrb[22].mxu1 }
 0x42b   : > { %v3762_v57 = vadd.f32 %v5954_v3, %v3723_v35  ;;  %v3724_v23 = vmul.f32 %v4381_v30, %v5949_v46  ;;  %v3618_v15 = vpop.f32.mrb[23].mxu1 }
 0x42c   : > { %v3760_v38 = vadd.f32 %v5954_v3, %v3721_v11  ;;  %v3722_v26 = vmul.f32 %v5949_v46, %v3618_v15 }
 0x42d   : > { %v3826_v1 = vadd.f32 %v3794_v0, %v3762_v57  ;;  %v3763_v25 = vadd.f32 %v5954_v3, %v3724_v23 }
 0x42e   : > { %v3824_v42 = vadd.f32 %v3792_v9, %v3760_v38  ;;  %v3761_v47 = vadd.f32 %v5954_v3, %v3722_v26 }
 0x42f   : > { %3858 = vst.msk [vmem:[%s5967_s26 + $0xb0] sm:$0xff] %vm1292_vm9, %v3826_v1  ;;  %v3827_v17 = vadd.f32 %v3795_v53, %v3763_v25 }
 0x430   : > { %3856 = vst.msk [vmem:[%s5967_s26 + $0xa0] sm:$0xff] %vm1292_vm9, %v3824_v42  ;;  %v3825_v60 = vadd.f32 %v3793_v49, %v3761_v47  ;;  %v4384_v36 = vpop.f32.mrb[24].mxu1 }
 0x431   : > { %3859 = vst.msk [vmem:[%s5967_s26 + $0xb8] sm:$0xff] %vm1292_vm9, %v3827_v17  ;;  %v3727_v52 = vmul.f32 %v4384_v36, %v5949_v46  ;;  %v3631_v34 = vpop.f32.mrb[25].mxu1 }
 0x432   : > { %3857 = vst.msk [vmem:[%s5967_s26 + $0xa8] sm:$0xff] %vm1292_vm9, %v3825_v60  ;;  %v3725_v2 = vmul.f32 %v5949_v46, %v3631_v34  ;;  %v4385_v27 = vpop.f32.mrb[26].mxu1 }
 0x433   : > { %v3766_v20 = vadd.f32 %v5954_v3, %v3727_v52  ;;  %v3728_v62 = vmul.f32 %v4385_v27, %v5949_v46  ;;  %v3634_v13 = vpop.f32.mrb[27].mxu1 }
 0x434   : > { %v3764_v55 = vadd.f32 %v5954_v3, %v3725_v2  ;;  %v3726_v14 = vmul.f32 %v5949_v46, %v3634_v13 }
 0x435   : > { %v3830_v12 = vadd.f32 %v3798_v54, %v3766_v20  ;;  %v3767_v48 = vadd.f32 %v5954_v3, %v3728_v62 }
 0x436   : > { %v3828_v39 = vadd.f32 %v3796_v22, %v3764_v55  ;;  %v3765_v37 = vadd.f32 %v5954_v3, %v3726_v14 }
 0x437   : > { %3862 = vst.msk [vmem:[%s5967_s26 + $0xd0] sm:$0xff] %vm1292_vm9, %v3830_v12  ;;  %v3831_v44 = vadd.f32 %v3799_v61, %v3767_v48 }
 0x438   : > { %3860 = vst.msk [vmem:[%s5967_s26 + $0xc0] sm:$0xff] %vm1292_vm9, %v3828_v39  ;;  %v3829_v6 = vadd.f32 %v3797_v59, %v3765_v37  ;;  %v4388_v19 = vpop.f32.mrb[28].mxu1 }
 0x439   : > { %3863 = vst.msk [vmem:[%s5967_s26 + $0xd8] sm:$0xff] %vm1292_vm9, %v3831_v44  ;;  %v3731_v40 = vmul.f32 %v4388_v19, %v5949_v46  ;;  %v3647_v4 = vpop.f32.mrb[29].mxu1 }
 0x43a   : > { %3861 = vst.msk [vmem:[%s5967_s26 + $0xc8] sm:$0xff] %vm1292_vm9, %v3829_v6  ;;  %v3729_v5 = vmul.f32 %v5949_v46, %v3647_v4  ;;  %v4389_v7 = vpop.f32.mrb[30].mxu1 }
 0x43b   : > { %v3770_v58 = vadd.f32 %v5954_v3, %v3731_v40  ;;  %v3732_v21 = vmul.f32 %v4389_v7, %v5949_v46  ;;  %v3650_v8 = vpop.f32.mrb[31].mxu1 }
 0x43c   : > { %v3768_v29 = vadd.f32 %v5954_v3, %v3729_v5  ;;  %v3730_v43 = vmul.f32 %v5949_v46, %v3650_v8 }
 0x43d   : > { %v3834_v28 = vadd.f32 %v3802_v18, %v3770_v58  ;;  %v3771_v32 = vadd.f32 %v5954_v3, %v3732_v21 }
 0x43e   : > { %v3832_v50 = vadd.f32 %v3800_v24, %v3768_v29  ;;  %v3769_v41 = vadd.f32 %v5954_v3, %v3730_v43 }
 0x43f   : > { %3866 = vst.msk [vmem:[%s5967_s26 + $0xf0] sm:$0xff] %vm1292_vm9, %v3834_v28  ;;  %v3835_v56 = vadd.f32 %v3803_v51, %v3771_v32 }
 0x440   : > { %3864 = vst.msk [vmem:[%s5967_s26 + $0xe0] sm:$0xff] %vm1292_vm9, %v3832_v50  ;;  %v3833_v31 = vadd.f32 %v3801_v33, %v3769_v41 }
 0x441   : > { %3867 = vst.msk [vmem:[%s5967_s26 + $0xf8] sm:$0xff] %vm1292_vm9, %v3835_v56 }
 0x442   : > { %3865 = vst.msk [vmem:[%s5967_s26 + $0xe8] sm:$0xff] %vm1292_vm9, %v3833_v31 }
 0x443 PF: > { %s19_s30 = sadd.s32 1, %s4548_s30  }
 0x444   : > { %p16_p4 = scmp.ge.s32.totalorder %s19_s30, 4  }
 0x446   :  { %18 = sbr.rel (!%p16_p4) target bundleno = 1 (0x1), region = 90 }

</bundles_post_ra>
